<compile_context>
chip_gen: v7x
topology: tpu7x:2x2x1
jax: 0.10.0
libtpu: 0.0.40
codegen_flags: <defaults>
</compile_context>

<pallas_src>
import math
import jax
import jax.numpy as jnp
from jax.experimental import pallas as pl
from jax.experimental.pallas import tpu as pltpu  # noqa: F401  (TPU backend)

NUM_HEADS = 4


# ----------------------------------------------------------------------------
# Fused forward kernel (single invocation; all weights VMEM-resident as 2 slabs)
# ----------------------------------------------------------------------------
def _make_kernel(B, N, D):
    dh = D // NUM_HEADS

    # weight-slab block indices (each block = D rows of the (12*D, D) slab)
    W_FC1, W_FC2 = 0, 1
    W_E1 = (2, 3, 4, 5)        # wq, wk, wv, wo^T
    W_E2 = (6, 7, 8, 9)
    W_FCQ, W_FCK = 10, 11
    # bias-slab row indices (see packing order in affinity_mul_forward)
    B_FC1, B_FC2 = 0, 1
    B_E1 = 2
    B_E2 = B_E1 + 3 * NUM_HEADS + 1
    B_FCQ = B_E2 + 3 * NUM_HEADS + 1
    B_FCK = B_FCQ + 1

    def kernel(x_ref, w_ref, b_ref, o_ref):
        xf = x_ref[...]                                  # (B*N, D) f32, batch folded

        def wrows(blk, lo, hi):                          # static row view of a block
            return w_ref[blk * D + lo: blk * D + hi, :]

        def wblk(blk):
            return wrows(blk, 0, D)

        def brow(i, width=D):                            # (1, width), lane offset 0
            return b_ref[i:i + 1, 0:width]

        def mm(a, b, cdims):
            # bf16 operands, f32 accumulation on the MXU.
            return jax.lax.dot_general(
                a.astype(jnp.bfloat16), b.astype(jnp.bfloat16),
                (cdims, ((), ())), preferred_element_type=jnp.float32)

        def lin(t, wi, bi, act=None):
            # y = t @ W.T + b   (PyTorch Linear layout (out, in))
            y = mm(t, wblk(wi), ((1,), (1,))) + brow(bi)
            if act == "tanh":
                y = jnp.tanh(y)
            return y

        def sab(t, wi, b_base):
            # Multi-head multiplicative self-attention (embed_values, reduce, residual).
            wq_i, wk_i, wv_i, wot_i = wi                 # wot block holds Wo.T (in, out)
            scale = 1.0 / math.sqrt(dh)
            acc = [jnp.zeros((N, D), jnp.float32) for _ in range(B)]
            for h in range(NUM_HEADS):
                lo, hi = h * dh, (h + 1) * dh
                # head split via static weight ROW slices (tile aligned -> free)
                qh = mm(t, wrows(wq_i, lo, hi), ((1,), (1,))) + brow(b_base + h, dh)
                kh = mm(t, wrows(wk_i, lo, hi), ((1,), (1,))) + brow(
                    b_base + NUM_HEADS + h, dh)
                vh = mm(t, wrows(wv_i, lo, hi), ((1,), (1,))) + brow(
                    b_base + 2 * NUM_HEADS + h, dh)
                m_h = wrows(wot_i, lo, hi)               # (dh, D) = Wo[:, lo:hi].T
                for b in range(B):                       # static loop; sublane slices
                    r0 = b * N
                    qb = qh[r0:r0 + N, :]
                    kb = kh[r0:r0 + N, :]
                    vb = vh[r0:r0 + N, :]
                    s = mm(qb, kb, ((1,), (1,))) * scale             # (N, N)
                    s = s - jnp.max(s, axis=-1, keepdims=True)
                    p = jnp.exp(s)
                    p = p * pl.reciprocal(jnp.sum(p, axis=-1, keepdims=True),
                                          approx=True)
                    hd = mm(p, vb, ((1,), (0,)))                     # (N, dh)
                    # per-head output-projection accumulation (no lane concat)
                    acc[b] = acc[b] + mm(hd, m_h, ((1,), (0,)))      # (N, D)
            # stack batches back along sublanes (tile-aligned) + output bias + residual
            attn = jnp.concatenate(acc, axis=0) + brow(b_base + 3 * NUM_HEADS)
            return t + attn

        # fc: Linear -> Tanh -> Linear  (batch folded into sublanes)
        h0 = lin(xf, W_FC1, B_FC1, act="tanh")
        x1 = lin(h0, W_FC2, B_FC2)
        # two SAB encoder blocks
        x2 = sab(x1, W_E1, B_E1)
        x2 = sab(x2, W_E2, B_E2)
        # Q / K projections
        q = lin(x2, W_FCQ, B_FCQ)
        k = lin(x2, W_FCK, B_FCK)
        # MulComp + symmetrization: 0.5*(E + E^T) = 0.5/sqrt(D) * (Q K^T + K Q^T)
        cscale = 0.5 / math.sqrt(D)
        for b in range(B):
            r0 = b * N
            qb = q[r0:r0 + N, :]
            kb = k[r0:r0 + N, :]
            e_qk = mm(qb, kb, ((1,), (1,)))
            e_kq = mm(kb, qb, ((1,), (1,)))
            o_ref[b, :, :] = (cscale * (e_qk + e_kq)).astype(o_ref.dtype)

    return kernel


# ----------------------------------------------------------------------------
# Wrapper: pack weights/biases into 2 slabs, fold batch, single pallas_call
# ----------------------------------------------------------------------------
def affinity_mul_forward(x, params):
    B, N, Din = x.shape
    D = params["fc_w1"].shape[0]
    assert D % NUM_HEADS == 0, "hidden_size must be divisible by num_heads"
    # Slab packing below requires equal in/out widths (module default hidden=input).
    assert Din == D, "this fused kernel path assumes hidden_size == input_size"
    dh = D // NUM_HEADS

    e1, e2 = params["enc"], params["enc2"]

    # --- ONE weight slab: 12 blocks of (D, D) stacked along rows (single DMA).
    #     Wo is stored transposed so per-head output-projection slices are row slices.
    w_slab = jnp.concatenate([
        params["fc_w1"], params["fc_w2"],
        e1["wq"], e1["wk"], e1["wv"], e1["wo"].T,
        e2["wq"], e2["wk"], e2["wv"], e2["wo"].T,
        params["fcq_w"], params["fck_w"],
    ], axis=0).astype(jnp.float32)                       # (12*D, D)

    # --- ONE bias slab: per-head Q/K/V biases are pre-split on the host and placed
    #     left-aligned (lane offset 0), one row per head, so the kernel never does a
    #     non-zero-offset lane slice.
    def head_rows(bvec):                                 # (D,) -> (NUM_HEADS, D)
        return jnp.pad(bvec.reshape(NUM_HEADS, dh), ((0, 0), (0, D - dh)))

    def full_row(bvec):                                  # (D,) -> (1, D)
        return bvec.reshape(1, D)

    def sab_rows(e):
        return [head_rows(e["bq"]), head_rows(e["bk"]), head_rows(e["bv"]),
                full_row(e["bo"])]

    b_slab = jnp.concatenate(
        [full_row(params["fc_b1"]), full_row(params["fc_b2"])]
        + sab_rows(e1) + sab_rows(e2)
        + [full_row(params["fcq_b"]), full_row(params["fck_b"])],
        axis=0).astype(jnp.float32)                      # (30, D)

    xf = x.reshape(B * N, Din)                           # fold batch into sublanes

    # Un-gridded pallas_call: whole arrays land in VMEM, 3 input DMAs + 1 output DMA.
    return pl.pallas_call(
        _make_kernel(B, N, D),
        out_shape=jax.ShapeDtypeStruct((B, N, N), jnp.float32),
    )(xf, w_slab, b_slab)


# ----------------------------------------------------------------------------
# Deterministic parameter init (PyTorch-style uniform(-1/sqrt(fan_in), ..))
# ----------------------------------------------------------------------------
def _lin_init(key, out_f, in_f):
    kw, kb = jax.random.split(key)
    bound = 1.0 / math.sqrt(in_f)
    w = jax.random.uniform(kw, (out_f, in_f), jnp.float32, -bound, bound)
    b = jax.random.uniform(kb, (out_f,), jnp.float32, -bound, bound)
    return w, b


def _sab_init(key, d):
    ks = jax.random.split(key, 4)
    wq, bq = _lin_init(ks[0], d, d)
    wk, bk = _lin_init(ks[1], d, d)
    wv, bv = _lin_init(ks[2], d, d)
    wo, bo = _lin_init(ks[3], d, d)
    return {"wq": wq, "bq": bq, "wk": wk, "bk": bk,
            "wv": wv, "bv": bv, "wo": wo, "bo": bo}


def init_params(key, input_size, hidden_size):
    ks = jax.random.split(key, 6)
    fc_w1, fc_b1 = _lin_init(ks[0], hidden_size, input_size)
    fc_w2, fc_b2 = _lin_init(ks[1], hidden_size, hidden_size)
    fcq_w, fcq_b = _lin_init(ks[2], hidden_size, hidden_size)
    fck_w, fck_b = _lin_init(ks[3], hidden_size, hidden_size)
    return {
        "fc_w1": fc_w1, "fc_b1": fc_b1,
        "fc_w2": fc_w2, "fc_b2": fc_b2,
        "enc": _sab_init(ks[4], hidden_size),
        "enc2": _sab_init(ks[5], hidden_size),
        "fcq_w": fcq_w, "fcq_b": fcq_b,
        "fck_w": fck_w, "fck_b": fck_b,
    }


if __name__ == "__main__":
    B, N, D_IN = 2, 8, 32      # batch, set size, input_size (hidden defaults to input)
    key = jax.random.PRNGKey(0)
    k_x, k_p = jax.random.split(key)
    x = jax.random.normal(k_x, (B, N, D_IN), jnp.float32)
    params = init_params(k_p, D_IN, D_IN)

    logits = jax.jit(affinity_mul_forward)(x, params)
    jax.block_until_ready(logits)
    assert logits.shape == (B, N, N)
    # symmetric by construction (0.5*(QK^T + KQ^T))
    assert bool(jnp.allclose(logits, jnp.swapaxes(logits, -1, -2), atol=1e-4))
    print("KERNEL_OK")
</pallas_src>

<mosaic_0001>
module attributes {stable_mosaic.version = 11 : i64} {
  func.func @kernel(%arg0: memref<16x32xf32, #tpu.memory_space<vmem>>, %arg1: memref<384x32xf32, #tpu.memory_space<vmem>>, %arg2: memref<30x32xf32, #tpu.memory_space<vmem>>, %arg3: memref<2x8x8xf32, #tpu.memory_space<vmem>>) attributes {dimension_semantics = [], scalar_prefetch = 0 : i64, scratch_operands = 0 : i64, tpu.core_type = #tpu.core_type<tc>} {
    %c0 = arith.constant 0 : index
    %c0_0 = arith.constant 0 : index
    %0 = vector.load %arg0[%c0, %c0_0] : memref<16x32xf32, #tpu.memory_space<vmem>>, vector<16x32xf32>
    %c0_1 = arith.constant 0 : index
    %c0_2 = arith.constant 0 : index
    %1 = vector.load %arg1[%c0_1, %c0_2] : memref<384x32xf32, #tpu.memory_space<vmem>>, vector<32x32xf32>
    %2 = arith.truncf %0 : vector<16x32xf32> to vector<16x32xbf16>
    %3 = arith.truncf %1 : vector<32x32xf32> to vector<32x32xbf16>
    %cst = arith.constant dense<0.000000e+00> : vector<16x32xf32>
    %4 = tpu.matmul %2, %3, %cst {dimension_numbers = #tpu.dot_dimension_numbers<[1], [1], [0], [0], [0, 0, 1, 0], [], []>} : vector<16x32xbf16>, vector<32x32xbf16>, vector<16x32xf32> -> vector<16x32xf32>
    %c0_3 = arith.constant 0 : index
    %c0_4 = arith.constant 0 : index
    %5 = vector.load %arg2[%c0_3, %c0_4] : memref<30x32xf32, #tpu.memory_space<vmem>>, vector<1x32xf32>
    %6 = vector.broadcast %5 : vector<1x32xf32> to vector<16x32xf32>
    %7 = arith.addf %4, %6 : vector<16x32xf32>
    %8 = math.tanh %7 : vector<16x32xf32>
    %c32 = arith.constant 32 : index
    %c0_5 = arith.constant 0 : index
    %9 = vector.load %arg1[%c32, %c0_5] : memref<384x32xf32, #tpu.memory_space<vmem>>, vector<32x32xf32>
    %10 = arith.truncf %8 : vector<16x32xf32> to vector<16x32xbf16>
    %11 = arith.truncf %9 : vector<32x32xf32> to vector<32x32xbf16>
    %cst_6 = arith.constant dense<0.000000e+00> : vector<16x32xf32>
    %12 = tpu.matmul %10, %11, %cst_6 {dimension_numbers = #tpu.dot_dimension_numbers<[1], [1], [0], [0], [0, 0, 1, 0], [], []>} : vector<16x32xbf16>, vector<32x32xbf16>, vector<16x32xf32> -> vector<16x32xf32>
    %c1 = arith.constant 1 : index
    %c0_7 = arith.constant 0 : index
    %13 = vector.load %arg2[%c1, %c0_7] : memref<30x32xf32, #tpu.memory_space<vmem>>, vector<1x32xf32>
    %14 = vector.broadcast %13 : vector<1x32xf32> to vector<16x32xf32>
    %15 = arith.addf %12, %14 : vector<16x32xf32>
    %cst_8 = arith.constant 0.000000e+00 : f32
    %16 = vector.broadcast %cst_8 : f32 to vector<8x32xf32>
    %cst_9 = arith.constant 0.000000e+00 : f32
    %17 = vector.broadcast %cst_9 : f32 to vector<8x32xf32>
    %c64 = arith.constant 64 : index
    %c0_10 = arith.constant 0 : index
    %18 = vector.load %arg1[%c64, %c0_10] : memref<384x32xf32, #tpu.memory_space<vmem>>, vector<8x32xf32>
    %19 = arith.truncf %15 : vector<16x32xf32> to vector<16x32xbf16>
    %20 = arith.truncf %18 : vector<8x32xf32> to vector<8x32xbf16>
    %cst_11 = arith.constant dense<0.000000e+00> : vector<16x8xf32>
    %21 = tpu.matmul %19, %20, %cst_11 {dimension_numbers = #tpu.dot_dimension_numbers<[1], [1], [0], [0], [0, 0, 1, 0], [], []>} : vector<16x32xbf16>, vector<8x32xbf16>, vector<16x8xf32> -> vector<16x8xf32>
    %c2 = arith.constant 2 : index
    %c0_12 = arith.constant 0 : index
    %22 = vector.load %arg2[%c2, %c0_12] : memref<30x32xf32, #tpu.memory_space<vmem>>, vector<1x8xf32>
    %23 = vector.broadcast %22 : vector<1x8xf32> to vector<16x8xf32>
    %24 = arith.addf %21, %23 : vector<16x8xf32>
    %c96 = arith.constant 96 : index
    %c0_13 = arith.constant 0 : index
    %25 = vector.load %arg1[%c96, %c0_13] : memref<384x32xf32, #tpu.memory_space<vmem>>, vector<8x32xf32>
    %26 = arith.truncf %15 : vector<16x32xf32> to vector<16x32xbf16>
    %27 = arith.truncf %25 : vector<8x32xf32> to vector<8x32xbf16>
    %cst_14 = arith.constant dense<0.000000e+00> : vector<16x8xf32>
    %28 = tpu.matmul %26, %27, %cst_14 {dimension_numbers = #tpu.dot_dimension_numbers<[1], [1], [0], [0], [0, 0, 1, 0], [], []>} : vector<16x32xbf16>, vector<8x32xbf16>, vector<16x8xf32> -> vector<16x8xf32>
    %c6 = arith.constant 6 : index
    %c0_15 = arith.constant 0 : index
    %29 = vector.load %arg2[%c6, %c0_15] : memref<30x32xf32, #tpu.memory_space<vmem>>, vector<1x8xf32>
    %30 = vector.broadcast %29 : vector<1x8xf32> to vector<16x8xf32>
    %31 = arith.addf %28, %30 : vector<16x8xf32>
    %c128 = arith.constant 128 : index
    %c0_16 = arith.constant 0 : index
    %32 = vector.load %arg1[%c128, %c0_16] : memref<384x32xf32, #tpu.memory_space<vmem>>, vector<8x32xf32>
    %33 = arith.truncf %15 : vector<16x32xf32> to vector<16x32xbf16>
    %34 = arith.truncf %32 : vector<8x32xf32> to vector<8x32xbf16>
    %cst_17 = arith.constant dense<0.000000e+00> : vector<16x8xf32>
    %35 = tpu.matmul %33, %34, %cst_17 {dimension_numbers = #tpu.dot_dimension_numbers<[1], [1], [0], [0], [0, 0, 1, 0], [], []>} : vector<16x32xbf16>, vector<8x32xbf16>, vector<16x8xf32> -> vector<16x8xf32>
    %c10 = arith.constant 10 : index
    %c0_18 = arith.constant 0 : index
    %36 = vector.load %arg2[%c10, %c0_18] : memref<30x32xf32, #tpu.memory_space<vmem>>, vector<1x8xf32>
    %37 = vector.broadcast %36 : vector<1x8xf32> to vector<16x8xf32>
    %38 = arith.addf %35, %37 : vector<16x8xf32>
    %c160 = arith.constant 160 : index
    %c0_19 = arith.constant 0 : index
    %39 = vector.load %arg1[%c160, %c0_19] : memref<384x32xf32, #tpu.memory_space<vmem>>, vector<8x32xf32>
    %40 = vector.extract_strided_slice %24 {offsets = [0, 0], sizes = [8, 8], strides = [1, 1]} : vector<16x8xf32> to vector<8x8xf32>
    %41 = vector.extract_strided_slice %31 {offsets = [0, 0], sizes = [8, 8], strides = [1, 1]} : vector<16x8xf32> to vector<8x8xf32>
    %42 = vector.extract_strided_slice %38 {offsets = [0, 0], sizes = [8, 8], strides = [1, 1]} : vector<16x8xf32> to vector<8x8xf32>
    %43 = arith.truncf %40 : vector<8x8xf32> to vector<8x8xbf16>
    %44 = arith.truncf %41 : vector<8x8xf32> to vector<8x8xbf16>
    %cst_20 = arith.constant dense<0.000000e+00> : vector<8x8xf32>
    %45 = tpu.matmul %43, %44, %cst_20 {dimension_numbers = #tpu.dot_dimension_numbers<[1], [1], [0], [0], [0, 0, 1, 0], [], []>} : vector<8x8xbf16>, vector<8x8xbf16>, vector<8x8xf32> -> vector<8x8xf32>
    %cst_21 = arith.constant 0.353553385 : f32
    %46 = vector.broadcast %cst_21 : f32 to vector<8x8xf32>
    %47 = arith.mulf %45, %46 : vector<8x8xf32>
    %cst_22 = arith.constant dense<0xFF800000> : vector<8xf32>
    %48 = vector.multi_reduction <maximumf>, %47, %cst_22 [1] : vector<8x8xf32> to vector<8xf32>
    %49 = vector.shape_cast %48 : vector<8xf32> to vector<8x1xf32>
    %50 = vector.broadcast %49 : vector<8x1xf32> to vector<8x8xf32>
    %51 = arith.subf %47, %50 : vector<8x8xf32>
    %52 = math.exp %51 : vector<8x8xf32>
    %cst_23 = arith.constant dense<0.000000e+00> : vector<8xf32>
    %53 = vector.multi_reduction <add>, %52, %cst_23 [1] : vector<8x8xf32> to vector<8xf32>
    %54 = vector.shape_cast %53 : vector<8xf32> to vector<8x1xf32>
    %55 = tpu.reciprocal %54 {approx = true} : vector<8x1xf32> -> vector<8x1xf32>
    %56 = vector.broadcast %55 : vector<8x1xf32> to vector<8x8xf32>
    %57 = arith.mulf %52, %56 : vector<8x8xf32>
    %58 = arith.truncf %57 : vector<8x8xf32> to vector<8x8xbf16>
    %59 = arith.truncf %42 : vector<8x8xf32> to vector<8x8xbf16>
    %cst_24 = arith.constant dense<0.000000e+00> : vector<8x8xf32>
    %60 = tpu.matmul %58, %59, %cst_24 {dimension_numbers = #tpu.dot_dimension_numbers<[1], [0], [0], [1], [0, 0, 1, 1], [], []>} : vector<8x8xbf16>, vector<8x8xbf16>, vector<8x8xf32> -> vector<8x8xf32>
    %61 = arith.truncf %60 : vector<8x8xf32> to vector<8x8xbf16>
    %62 = arith.truncf %39 : vector<8x32xf32> to vector<8x32xbf16>
    %cst_25 = arith.constant dense<0.000000e+00> : vector<8x32xf32>
    %63 = tpu.matmul %61, %62, %cst_25 {dimension_numbers = #tpu.dot_dimension_numbers<[1], [0], [0], [1], [0, 0, 1, 1], [], []>} : vector<8x8xbf16>, vector<8x32xbf16>, vector<8x32xf32> -> vector<8x32xf32>
    %64 = arith.addf %16, %63 : vector<8x32xf32>
    %65 = vector.extract_strided_slice %24 {offsets = [8, 0], sizes = [8, 8], strides = [1, 1]} : vector<16x8xf32> to vector<8x8xf32>
    %66 = vector.extract_strided_slice %31 {offsets = [8, 0], sizes = [8, 8], strides = [1, 1]} : vector<16x8xf32> to vector<8x8xf32>
    %67 = vector.extract_strided_slice %38 {offsets = [8, 0], sizes = [8, 8], strides = [1, 1]} : vector<16x8xf32> to vector<8x8xf32>
    %68 = arith.truncf %65 : vector<8x8xf32> to vector<8x8xbf16>
    %69 = arith.truncf %66 : vector<8x8xf32> to vector<8x8xbf16>
    %cst_26 = arith.constant dense<0.000000e+00> : vector<8x8xf32>
    %70 = tpu.matmul %68, %69, %cst_26 {dimension_numbers = #tpu.dot_dimension_numbers<[1], [1], [0], [0], [0, 0, 1, 0], [], []>} : vector<8x8xbf16>, vector<8x8xbf16>, vector<8x8xf32> -> vector<8x8xf32>
    %cst_27 = arith.constant 0.353553385 : f32
    %71 = vector.broadcast %cst_27 : f32 to vector<8x8xf32>
    %72 = arith.mulf %70, %71 : vector<8x8xf32>
    %cst_28 = arith.constant dense<0xFF800000> : vector<8xf32>
    %73 = vector.multi_reduction <maximumf>, %72, %cst_28 [1] : vector<8x8xf32> to vector<8xf32>
    %74 = vector.shape_cast %73 : vector<8xf32> to vector<8x1xf32>
    %75 = vector.broadcast %74 : vector<8x1xf32> to vector<8x8xf32>
    %76 = arith.subf %72, %75 : vector<8x8xf32>
    %77 = math.exp %76 : vector<8x8xf32>
    %cst_29 = arith.constant dense<0.000000e+00> : vector<8xf32>
    %78 = vector.multi_reduction <add>, %77, %cst_29 [1] : vector<8x8xf32> to vector<8xf32>
    %79 = vector.shape_cast %78 : vector<8xf32> to vector<8x1xf32>
    %80 = tpu.reciprocal %79 {approx = true} : vector<8x1xf32> -> vector<8x1xf32>
    %81 = vector.broadcast %80 : vector<8x1xf32> to vector<8x8xf32>
    %82 = arith.mulf %77, %81 : vector<8x8xf32>
    %83 = arith.truncf %82 : vector<8x8xf32> to vector<8x8xbf16>
    %84 = arith.truncf %67 : vector<8x8xf32> to vector<8x8xbf16>
    %cst_30 = arith.constant dense<0.000000e+00> : vector<8x8xf32>
    %85 = tpu.matmul %83, %84, %cst_30 {dimension_numbers = #tpu.dot_dimension_numbers<[1], [0], [0], [1], [0, 0, 1, 1], [], []>} : vector<8x8xbf16>, vector<8x8xbf16>, vector<8x8xf32> -> vector<8x8xf32>
    %86 = arith.truncf %85 : vector<8x8xf32> to vector<8x8xbf16>
    %87 = arith.truncf %39 : vector<8x32xf32> to vector<8x32xbf16>
    %cst_31 = arith.constant dense<0.000000e+00> : vector<8x32xf32>
    %88 = tpu.matmul %86, %87, %cst_31 {dimension_numbers = #tpu.dot_dimension_numbers<[1], [0], [0], [1], [0, 0, 1, 1], [], []>} : vector<8x8xbf16>, vector<8x32xbf16>, vector<8x32xf32> -> vector<8x32xf32>
    %89 = arith.addf %17, %88 : vector<8x32xf32>
    %c72 = arith.constant 72 : index
    %c0_32 = arith.constant 0 : index
    %90 = vector.load %arg1[%c72, %c0_32] : memref<384x32xf32, #tpu.memory_space<vmem>>, vector<8x32xf32>
    %91 = arith.truncf %15 : vector<16x32xf32> to vector<16x32xbf16>
    %92 = arith.truncf %90 : vector<8x32xf32> to vector<8x32xbf16>
    %cst_33 = arith.constant dense<0.000000e+00> : vector<16x8xf32>
    %93 = tpu.matmul %91, %92, %cst_33 {dimension_numbers = #tpu.dot_dimension_numbers<[1], [1], [0], [0], [0, 0, 1, 0], [], []>} : vector<16x32xbf16>, vector<8x32xbf16>, vector<16x8xf32> -> vector<16x8xf32>
    %c3 = arith.constant 3 : index
    %c0_34 = arith.constant 0 : index
    %94 = vector.load %arg2[%c3, %c0_34] : memref<30x32xf32, #tpu.memory_space<vmem>>, vector<1x8xf32>
    %95 = vector.broadcast %94 : vector<1x8xf32> to vector<16x8xf32>
    %96 = arith.addf %93, %95 : vector<16x8xf32>
    %c104 = arith.constant 104 : index
    %c0_35 = arith.constant 0 : index
    %97 = vector.load %arg1[%c104, %c0_35] : memref<384x32xf32, #tpu.memory_space<vmem>>, vector<8x32xf32>
    %98 = arith.truncf %15 : vector<16x32xf32> to vector<16x32xbf16>
    %99 = arith.truncf %97 : vector<8x32xf32> to vector<8x32xbf16>
    %cst_36 = arith.constant dense<0.000000e+00> : vector<16x8xf32>
    %100 = tpu.matmul %98, %99, %cst_36 {dimension_numbers = #tpu.dot_dimension_numbers<[1], [1], [0], [0], [0, 0, 1, 0], [], []>} : vector<16x32xbf16>, vector<8x32xbf16>, vector<16x8xf32> -> vector<16x8xf32>
    %c7 = arith.constant 7 : index
    %c0_37 = arith.constant 0 : index
    %101 = vector.load %arg2[%c7, %c0_37] : memref<30x32xf32, #tpu.memory_space<vmem>>, vector<1x8xf32>
    %102 = vector.broadcast %101 : vector<1x8xf32> to vector<16x8xf32>
    %103 = arith.addf %100, %102 : vector<16x8xf32>
    %c136 = arith.constant 136 : index
    %c0_38 = arith.constant 0 : index
    %104 = vector.load %arg1[%c136, %c0_38] : memref<384x32xf32, #tpu.memory_space<vmem>>, vector<8x32xf32>
    %105 = arith.truncf %15 : vector<16x32xf32> to vector<16x32xbf16>
    %106 = arith.truncf %104 : vector<8x32xf32> to vector<8x32xbf16>
    %cst_39 = arith.constant dense<0.000000e+00> : vector<16x8xf32>
    %107 = tpu.matmul %105, %106, %cst_39 {dimension_numbers = #tpu.dot_dimension_numbers<[1], [1], [0], [0], [0, 0, 1, 0], [], []>} : vector<16x32xbf16>, vector<8x32xbf16>, vector<16x8xf32> -> vector<16x8xf32>
    %c11 = arith.constant 11 : index
    %c0_40 = arith.constant 0 : index
    %108 = vector.load %arg2[%c11, %c0_40] : memref<30x32xf32, #tpu.memory_space<vmem>>, vector<1x8xf32>
    %109 = vector.broadcast %108 : vector<1x8xf32> to vector<16x8xf32>
    %110 = arith.addf %107, %109 : vector<16x8xf32>
    %c168 = arith.constant 168 : index
    %c0_41 = arith.constant 0 : index
    %111 = vector.load %arg1[%c168, %c0_41] : memref<384x32xf32, #tpu.memory_space<vmem>>, vector<8x32xf32>
    %112 = vector.extract_strided_slice %96 {offsets = [0, 0], sizes = [8, 8], strides = [1, 1]} : vector<16x8xf32> to vector<8x8xf32>
    %113 = vector.extract_strided_slice %103 {offsets = [0, 0], sizes = [8, 8], strides = [1, 1]} : vector<16x8xf32> to vector<8x8xf32>
    %114 = vector.extract_strided_slice %110 {offsets = [0, 0], sizes = [8, 8], strides = [1, 1]} : vector<16x8xf32> to vector<8x8xf32>
    %115 = arith.truncf %112 : vector<8x8xf32> to vector<8x8xbf16>
    %116 = arith.truncf %113 : vector<8x8xf32> to vector<8x8xbf16>
    %cst_42 = arith.constant dense<0.000000e+00> : vector<8x8xf32>
    %117 = tpu.matmul %115, %116, %cst_42 {dimension_numbers = #tpu.dot_dimension_numbers<[1], [1], [0], [0], [0, 0, 1, 0], [], []>} : vector<8x8xbf16>, vector<8x8xbf16>, vector<8x8xf32> -> vector<8x8xf32>
    %cst_43 = arith.constant 0.353553385 : f32
    %118 = vector.broadcast %cst_43 : f32 to vector<8x8xf32>
    %119 = arith.mulf %117, %118 : vector<8x8xf32>
    %cst_44 = arith.constant dense<0xFF800000> : vector<8xf32>
    %120 = vector.multi_reduction <maximumf>, %119, %cst_44 [1] : vector<8x8xf32> to vector<8xf32>
    %121 = vector.shape_cast %120 : vector<8xf32> to vector<8x1xf32>
    %122 = vector.broadcast %121 : vector<8x1xf32> to vector<8x8xf32>
    %123 = arith.subf %119, %122 : vector<8x8xf32>
    %124 = math.exp %123 : vector<8x8xf32>
    %cst_45 = arith.constant dense<0.000000e+00> : vector<8xf32>
    %125 = vector.multi_reduction <add>, %124, %cst_45 [1] : vector<8x8xf32> to vector<8xf32>
    %126 = vector.shape_cast %125 : vector<8xf32> to vector<8x1xf32>
    %127 = tpu.reciprocal %126 {approx = true} : vector<8x1xf32> -> vector<8x1xf32>
    %128 = vector.broadcast %127 : vector<8x1xf32> to vector<8x8xf32>
    %129 = arith.mulf %124, %128 : vector<8x8xf32>
    %130 = arith.truncf %129 : vector<8x8xf32> to vector<8x8xbf16>
    %131 = arith.truncf %114 : vector<8x8xf32> to vector<8x8xbf16>
    %cst_46 = arith.constant dense<0.000000e+00> : vector<8x8xf32>
    %132 = tpu.matmul %130, %131, %cst_46 {dimension_numbers = #tpu.dot_dimension_numbers<[1], [0], [0], [1], [0, 0, 1, 1], [], []>} : vector<8x8xbf16>, vector<8x8xbf16>, vector<8x8xf32> -> vector<8x8xf32>
    %133 = arith.truncf %132 : vector<8x8xf32> to vector<8x8xbf16>
    %134 = arith.truncf %111 : vector<8x32xf32> to vector<8x32xbf16>
    %cst_47 = arith.constant dense<0.000000e+00> : vector<8x32xf32>
    %135 = tpu.matmul %133, %134, %cst_47 {dimension_numbers = #tpu.dot_dimension_numbers<[1], [0], [0], [1], [0, 0, 1, 1], [], []>} : vector<8x8xbf16>, vector<8x32xbf16>, vector<8x32xf32> -> vector<8x32xf32>
    %136 = arith.addf %64, %135 : vector<8x32xf32>
    %137 = vector.extract_strided_slice %96 {offsets = [8, 0], sizes = [8, 8], strides = [1, 1]} : vector<16x8xf32> to vector<8x8xf32>
    %138 = vector.extract_strided_slice %103 {offsets = [8, 0], sizes = [8, 8], strides = [1, 1]} : vector<16x8xf32> to vector<8x8xf32>
    %139 = vector.extract_strided_slice %110 {offsets = [8, 0], sizes = [8, 8], strides = [1, 1]} : vector<16x8xf32> to vector<8x8xf32>
    %140 = arith.truncf %137 : vector<8x8xf32> to vector<8x8xbf16>
    %141 = arith.truncf %138 : vector<8x8xf32> to vector<8x8xbf16>
    %cst_48 = arith.constant dense<0.000000e+00> : vector<8x8xf32>
    %142 = tpu.matmul %140, %141, %cst_48 {dimension_numbers = #tpu.dot_dimension_numbers<[1], [1], [0], [0], [0, 0, 1, 0], [], []>} : vector<8x8xbf16>, vector<8x8xbf16>, vector<8x8xf32> -> vector<8x8xf32>
    %cst_49 = arith.constant 0.353553385 : f32
    %143 = vector.broadcast %cst_49 : f32 to vector<8x8xf32>
    %144 = arith.mulf %142, %143 : vector<8x8xf32>
    %cst_50 = arith.constant dense<0xFF800000> : vector<8xf32>
    %145 = vector.multi_reduction <maximumf>, %144, %cst_50 [1] : vector<8x8xf32> to vector<8xf32>
    %146 = vector.shape_cast %145 : vector<8xf32> to vector<8x1xf32>
    %147 = vector.broadcast %146 : vector<8x1xf32> to vector<8x8xf32>
    %148 = arith.subf %144, %147 : vector<8x8xf32>
    %149 = math.exp %148 : vector<8x8xf32>
    %cst_51 = arith.constant dense<0.000000e+00> : vector<8xf32>
    %150 = vector.multi_reduction <add>, %149, %cst_51 [1] : vector<8x8xf32> to vector<8xf32>
    %151 = vector.shape_cast %150 : vector<8xf32> to vector<8x1xf32>
    %152 = tpu.reciprocal %151 {approx = true} : vector<8x1xf32> -> vector<8x1xf32>
    %153 = vector.broadcast %152 : vector<8x1xf32> to vector<8x8xf32>
    %154 = arith.mulf %149, %153 : vector<8x8xf32>
    %155 = arith.truncf %154 : vector<8x8xf32> to vector<8x8xbf16>
    %156 = arith.truncf %139 : vector<8x8xf32> to vector<8x8xbf16>
    %cst_52 = arith.constant dense<0.000000e+00> : vector<8x8xf32>
    %157 = tpu.matmul %155, %156, %cst_52 {dimension_numbers = #tpu.dot_dimension_numbers<[1], [0], [0], [1], [0, 0, 1, 1], [], []>} : vector<8x8xbf16>, vector<8x8xbf16>, vector<8x8xf32> -> vector<8x8xf32>
    %158 = arith.truncf %157 : vector<8x8xf32> to vector<8x8xbf16>
    %159 = arith.truncf %111 : vector<8x32xf32> to vector<8x32xbf16>
    %cst_53 = arith.constant dense<0.000000e+00> : vector<8x32xf32>
    %160 = tpu.matmul %158, %159, %cst_53 {dimension_numbers = #tpu.dot_dimension_numbers<[1], [0], [0], [1], [0, 0, 1, 1], [], []>} : vector<8x8xbf16>, vector<8x32xbf16>, vector<8x32xf32> -> vector<8x32xf32>
    %161 = arith.addf %89, %160 : vector<8x32xf32>
    %c80 = arith.constant 80 : index
    %c0_54 = arith.constant 0 : index
    %162 = vector.load %arg1[%c80, %c0_54] : memref<384x32xf32, #tpu.memory_space<vmem>>, vector<8x32xf32>
    %163 = arith.truncf %15 : vector<16x32xf32> to vector<16x32xbf16>
    %164 = arith.truncf %162 : vector<8x32xf32> to vector<8x32xbf16>
    %cst_55 = arith.constant dense<0.000000e+00> : vector<16x8xf32>
    %165 = tpu.matmul %163, %164, %cst_55 {dimension_numbers = #tpu.dot_dimension_numbers<[1], [1], [0], [0], [0, 0, 1, 0], [], []>} : vector<16x32xbf16>, vector<8x32xbf16>, vector<16x8xf32> -> vector<16x8xf32>
    %c4 = arith.constant 4 : index
    %c0_56 = arith.constant 0 : index
    %166 = vector.load %arg2[%c4, %c0_56] : memref<30x32xf32, #tpu.memory_space<vmem>>, vector<1x8xf32>
    %167 = vector.broadcast %166 : vector<1x8xf32> to vector<16x8xf32>
    %168 = arith.addf %165, %167 : vector<16x8xf32>
    %c112 = arith.constant 112 : index
    %c0_57 = arith.constant 0 : index
    %169 = vector.load %arg1[%c112, %c0_57] : memref<384x32xf32, #tpu.memory_space<vmem>>, vector<8x32xf32>
    %170 = arith.truncf %15 : vector<16x32xf32> to vector<16x32xbf16>
    %171 = arith.truncf %169 : vector<8x32xf32> to vector<8x32xbf16>
    %cst_58 = arith.constant dense<0.000000e+00> : vector<16x8xf32>
    %172 = tpu.matmul %170, %171, %cst_58 {dimension_numbers = #tpu.dot_dimension_numbers<[1], [1], [0], [0], [0, 0, 1, 0], [], []>} : vector<16x32xbf16>, vector<8x32xbf16>, vector<16x8xf32> -> vector<16x8xf32>
    %c8 = arith.constant 8 : index
    %c0_59 = arith.constant 0 : index
    %173 = vector.load %arg2[%c8, %c0_59] : memref<30x32xf32, #tpu.memory_space<vmem>>, vector<1x8xf32>
    %174 = vector.broadcast %173 : vector<1x8xf32> to vector<16x8xf32>
    %175 = arith.addf %172, %174 : vector<16x8xf32>
    %c144 = arith.constant 144 : index
    %c0_60 = arith.constant 0 : index
    %176 = vector.load %arg1[%c144, %c0_60] : memref<384x32xf32, #tpu.memory_space<vmem>>, vector<8x32xf32>
    %177 = arith.truncf %15 : vector<16x32xf32> to vector<16x32xbf16>
    %178 = arith.truncf %176 : vector<8x32xf32> to vector<8x32xbf16>
    %cst_61 = arith.constant dense<0.000000e+00> : vector<16x8xf32>
    %179 = tpu.matmul %177, %178, %cst_61 {dimension_numbers = #tpu.dot_dimension_numbers<[1], [1], [0], [0], [0, 0, 1, 0], [], []>} : vector<16x32xbf16>, vector<8x32xbf16>, vector<16x8xf32> -> vector<16x8xf32>
    %c12 = arith.constant 12 : index
    %c0_62 = arith.constant 0 : index
    %180 = vector.load %arg2[%c12, %c0_62] : memref<30x32xf32, #tpu.memory_space<vmem>>, vector<1x8xf32>
    %181 = vector.broadcast %180 : vector<1x8xf32> to vector<16x8xf32>
    %182 = arith.addf %179, %181 : vector<16x8xf32>
    %c176 = arith.constant 176 : index
    %c0_63 = arith.constant 0 : index
    %183 = vector.load %arg1[%c176, %c0_63] : memref<384x32xf32, #tpu.memory_space<vmem>>, vector<8x32xf32>
    %184 = vector.extract_strided_slice %168 {offsets = [0, 0], sizes = [8, 8], strides = [1, 1]} : vector<16x8xf32> to vector<8x8xf32>
    %185 = vector.extract_strided_slice %175 {offsets = [0, 0], sizes = [8, 8], strides = [1, 1]} : vector<16x8xf32> to vector<8x8xf32>
    %186 = vector.extract_strided_slice %182 {offsets = [0, 0], sizes = [8, 8], strides = [1, 1]} : vector<16x8xf32> to vector<8x8xf32>
    %187 = arith.truncf %184 : vector<8x8xf32> to vector<8x8xbf16>
    %188 = arith.truncf %185 : vector<8x8xf32> to vector<8x8xbf16>
    %cst_64 = arith.constant dense<0.000000e+00> : vector<8x8xf32>
    %189 = tpu.matmul %187, %188, %cst_64 {dimension_numbers = #tpu.dot_dimension_numbers<[1], [1], [0], [0], [0, 0, 1, 0], [], []>} : vector<8x8xbf16>, vector<8x8xbf16>, vector<8x8xf32> -> vector<8x8xf32>
    %cst_65 = arith.constant 0.353553385 : f32
    %190 = vector.broadcast %cst_65 : f32 to vector<8x8xf32>
    %191 = arith.mulf %189, %190 : vector<8x8xf32>
    %cst_66 = arith.constant dense<0xFF800000> : vector<8xf32>
    %192 = vector.multi_reduction <maximumf>, %191, %cst_66 [1] : vector<8x8xf32> to vector<8xf32>
    %193 = vector.shape_cast %192 : vector<8xf32> to vector<8x1xf32>
    %194 = vector.broadcast %193 : vector<8x1xf32> to vector<8x8xf32>
    %195 = arith.subf %191, %194 : vector<8x8xf32>
    %196 = math.exp %195 : vector<8x8xf32>
    %cst_67 = arith.constant dense<0.000000e+00> : vector<8xf32>
    %197 = vector.multi_reduction <add>, %196, %cst_67 [1] : vector<8x8xf32> to vector<8xf32>
    %198 = vector.shape_cast %197 : vector<8xf32> to vector<8x1xf32>
    %199 = tpu.reciprocal %198 {approx = true} : vector<8x1xf32> -> vector<8x1xf32>
    %200 = vector.broadcast %199 : vector<8x1xf32> to vector<8x8xf32>
    %201 = arith.mulf %196, %200 : vector<8x8xf32>
    %202 = arith.truncf %201 : vector<8x8xf32> to vector<8x8xbf16>
    %203 = arith.truncf %186 : vector<8x8xf32> to vector<8x8xbf16>
    %cst_68 = arith.constant dense<0.000000e+00> : vector<8x8xf32>
    %204 = tpu.matmul %202, %203, %cst_68 {dimension_numbers = #tpu.dot_dimension_numbers<[1], [0], [0], [1], [0, 0, 1, 1], [], []>} : vector<8x8xbf16>, vector<8x8xbf16>, vector<8x8xf32> -> vector<8x8xf32>
    %205 = arith.truncf %204 : vector<8x8xf32> to vector<8x8xbf16>
    %206 = arith.truncf %183 : vector<8x32xf32> to vector<8x32xbf16>
    %cst_69 = arith.constant dense<0.000000e+00> : vector<8x32xf32>
    %207 = tpu.matmul %205, %206, %cst_69 {dimension_numbers = #tpu.dot_dimension_numbers<[1], [0], [0], [1], [0, 0, 1, 1], [], []>} : vector<8x8xbf16>, vector<8x32xbf16>, vector<8x32xf32> -> vector<8x32xf32>
    %208 = arith.addf %136, %207 : vector<8x32xf32>
    %209 = vector.extract_strided_slice %168 {offsets = [8, 0], sizes = [8, 8], strides = [1, 1]} : vector<16x8xf32> to vector<8x8xf32>
    %210 = vector.extract_strided_slice %175 {offsets = [8, 0], sizes = [8, 8], strides = [1, 1]} : vector<16x8xf32> to vector<8x8xf32>
    %211 = vector.extract_strided_slice %182 {offsets = [8, 0], sizes = [8, 8], strides = [1, 1]} : vector<16x8xf32> to vector<8x8xf32>
    %212 = arith.truncf %209 : vector<8x8xf32> to vector<8x8xbf16>
    %213 = arith.truncf %210 : vector<8x8xf32> to vector<8x8xbf16>
    %cst_70 = arith.constant dense<0.000000e+00> : vector<8x8xf32>
    %214 = tpu.matmul %212, %213, %cst_70 {dimension_numbers = #tpu.dot_dimension_numbers<[1], [1], [0], [0], [0, 0, 1, 0], [], []>} : vector<8x8xbf16>, vector<8x8xbf16>, vector<8x8xf32> -> vector<8x8xf32>
    %cst_71 = arith.constant 0.353553385 : f32
    %215 = vector.broadcast %cst_71 : f32 to vector<8x8xf32>
    %216 = arith.mulf %214, %215 : vector<8x8xf32>
    %cst_72 = arith.constant dense<0xFF800000> : vector<8xf32>
    %217 = vector.multi_reduction <maximumf>, %216, %cst_72 [1] : vector<8x8xf32> to vector<8xf32>
    %218 = vector.shape_cast %217 : vector<8xf32> to vector<8x1xf32>
    %219 = vector.broadcast %218 : vector<8x1xf32> to vector<8x8xf32>
    %220 = arith.subf %216, %219 : vector<8x8xf32>
    %221 = math.exp %220 : vector<8x8xf32>
    %cst_73 = arith.constant dense<0.000000e+00> : vector<8xf32>
    %222 = vector.multi_reduction <add>, %221, %cst_73 [1] : vector<8x8xf32> to vector<8xf32>
    %223 = vector.shape_cast %222 : vector<8xf32> to vector<8x1xf32>
    %224 = tpu.reciprocal %223 {approx = true} : vector<8x1xf32> -> vector<8x1xf32>
    %225 = vector.broadcast %224 : vector<8x1xf32> to vector<8x8xf32>
    %226 = arith.mulf %221, %225 : vector<8x8xf32>
    %227 = arith.truncf %226 : vector<8x8xf32> to vector<8x8xbf16>
    %228 = arith.truncf %211 : vector<8x8xf32> to vector<8x8xbf16>
    %cst_74 = arith.constant dense<0.000000e+00> : vector<8x8xf32>
    %229 = tpu.matmul %227, %228, %cst_74 {dimension_numbers = #tpu.dot_dimension_numbers<[1], [0], [0], [1], [0, 0, 1, 1], [], []>} : vector<8x8xbf16>, vector<8x8xbf16>, vector<8x8xf32> -> vector<8x8xf32>
    %230 = arith.truncf %229 : vector<8x8xf32> to vector<8x8xbf16>
    %231 = arith.truncf %183 : vector<8x32xf32> to vector<8x32xbf16>
    %cst_75 = arith.constant dense<0.000000e+00> : vector<8x32xf32>
    %232 = tpu.matmul %230, %231, %cst_75 {dimension_numbers = #tpu.dot_dimension_numbers<[1], [0], [0], [1], [0, 0, 1, 1], [], []>} : vector<8x8xbf16>, vector<8x32xbf16>, vector<8x32xf32> -> vector<8x32xf32>
    %233 = arith.addf %161, %232 : vector<8x32xf32>
    %c88 = arith.constant 88 : index
    %c0_76 = arith.constant 0 : index
    %234 = vector.load %arg1[%c88, %c0_76] : memref<384x32xf32, #tpu.memory_space<vmem>>, vector<8x32xf32>
    %235 = arith.truncf %15 : vector<16x32xf32> to vector<16x32xbf16>
    %236 = arith.truncf %234 : vector<8x32xf32> to vector<8x32xbf16>
    %cst_77 = arith.constant dense<0.000000e+00> : vector<16x8xf32>
    %237 = tpu.matmul %235, %236, %cst_77 {dimension_numbers = #tpu.dot_dimension_numbers<[1], [1], [0], [0], [0, 0, 1, 0], [], []>} : vector<16x32xbf16>, vector<8x32xbf16>, vector<16x8xf32> -> vector<16x8xf32>
    %c5 = arith.constant 5 : index
    %c0_78 = arith.constant 0 : index
    %238 = vector.load %arg2[%c5, %c0_78] : memref<30x32xf32, #tpu.memory_space<vmem>>, vector<1x8xf32>
    %239 = vector.broadcast %238 : vector<1x8xf32> to vector<16x8xf32>
    %240 = arith.addf %237, %239 : vector<16x8xf32>
    %c120 = arith.constant 120 : index
    %c0_79 = arith.constant 0 : index
    %241 = vector.load %arg1[%c120, %c0_79] : memref<384x32xf32, #tpu.memory_space<vmem>>, vector<8x32xf32>
    %242 = arith.truncf %15 : vector<16x32xf32> to vector<16x32xbf16>
    %243 = arith.truncf %241 : vector<8x32xf32> to vector<8x32xbf16>
    %cst_80 = arith.constant dense<0.000000e+00> : vector<16x8xf32>
    %244 = tpu.matmul %242, %243, %cst_80 {dimension_numbers = #tpu.dot_dimension_numbers<[1], [1], [0], [0], [0, 0, 1, 0], [], []>} : vector<16x32xbf16>, vector<8x32xbf16>, vector<16x8xf32> -> vector<16x8xf32>
    %c9 = arith.constant 9 : index
    %c0_81 = arith.constant 0 : index
    %245 = vector.load %arg2[%c9, %c0_81] : memref<30x32xf32, #tpu.memory_space<vmem>>, vector<1x8xf32>
    %246 = vector.broadcast %245 : vector<1x8xf32> to vector<16x8xf32>
    %247 = arith.addf %244, %246 : vector<16x8xf32>
    %c152 = arith.constant 152 : index
    %c0_82 = arith.constant 0 : index
    %248 = vector.load %arg1[%c152, %c0_82] : memref<384x32xf32, #tpu.memory_space<vmem>>, vector<8x32xf32>
    %249 = arith.truncf %15 : vector<16x32xf32> to vector<16x32xbf16>
    %250 = arith.truncf %248 : vector<8x32xf32> to vector<8x32xbf16>
    %cst_83 = arith.constant dense<0.000000e+00> : vector<16x8xf32>
    %251 = tpu.matmul %249, %250, %cst_83 {dimension_numbers = #tpu.dot_dimension_numbers<[1], [1], [0], [0], [0, 0, 1, 0], [], []>} : vector<16x32xbf16>, vector<8x32xbf16>, vector<16x8xf32> -> vector<16x8xf32>
    %c13 = arith.constant 13 : index
    %c0_84 = arith.constant 0 : index
    %252 = vector.load %arg2[%c13, %c0_84] : memref<30x32xf32, #tpu.memory_space<vmem>>, vector<1x8xf32>
    %253 = vector.broadcast %252 : vector<1x8xf32> to vector<16x8xf32>
    %254 = arith.addf %251, %253 : vector<16x8xf32>
    %c184 = arith.constant 184 : index
    %c0_85 = arith.constant 0 : index
    %255 = vector.load %arg1[%c184, %c0_85] : memref<384x32xf32, #tpu.memory_space<vmem>>, vector<8x32xf32>
    %256 = vector.extract_strided_slice %240 {offsets = [0, 0], sizes = [8, 8], strides = [1, 1]} : vector<16x8xf32> to vector<8x8xf32>
    %257 = vector.extract_strided_slice %247 {offsets = [0, 0], sizes = [8, 8], strides = [1, 1]} : vector<16x8xf32> to vector<8x8xf32>
    %258 = vector.extract_strided_slice %254 {offsets = [0, 0], sizes = [8, 8], strides = [1, 1]} : vector<16x8xf32> to vector<8x8xf32>
    %259 = arith.truncf %256 : vector<8x8xf32> to vector<8x8xbf16>
    %260 = arith.truncf %257 : vector<8x8xf32> to vector<8x8xbf16>
    %cst_86 = arith.constant dense<0.000000e+00> : vector<8x8xf32>
    %261 = tpu.matmul %259, %260, %cst_86 {dimension_numbers = #tpu.dot_dimension_numbers<[1], [1], [0], [0], [0, 0, 1, 0], [], []>} : vector<8x8xbf16>, vector<8x8xbf16>, vector<8x8xf32> -> vector<8x8xf32>
    %cst_87 = arith.constant 0.353553385 : f32
    %262 = vector.broadcast %cst_87 : f32 to vector<8x8xf32>
    %263 = arith.mulf %261, %262 : vector<8x8xf32>
    %cst_88 = arith.constant dense<0xFF800000> : vector<8xf32>
    %264 = vector.multi_reduction <maximumf>, %263, %cst_88 [1] : vector<8x8xf32> to vector<8xf32>
    %265 = vector.shape_cast %264 : vector<8xf32> to vector<8x1xf32>
    %266 = vector.broadcast %265 : vector<8x1xf32> to vector<8x8xf32>
    %267 = arith.subf %263, %266 : vector<8x8xf32>
    %268 = math.exp %267 : vector<8x8xf32>
    %cst_89 = arith.constant dense<0.000000e+00> : vector<8xf32>
    %269 = vector.multi_reduction <add>, %268, %cst_89 [1] : vector<8x8xf32> to vector<8xf32>
    %270 = vector.shape_cast %269 : vector<8xf32> to vector<8x1xf32>
    %271 = tpu.reciprocal %270 {approx = true} : vector<8x1xf32> -> vector<8x1xf32>
    %272 = vector.broadcast %271 : vector<8x1xf32> to vector<8x8xf32>
    %273 = arith.mulf %268, %272 : vector<8x8xf32>
    %274 = arith.truncf %273 : vector<8x8xf32> to vector<8x8xbf16>
    %275 = arith.truncf %258 : vector<8x8xf32> to vector<8x8xbf16>
    %cst_90 = arith.constant dense<0.000000e+00> : vector<8x8xf32>
    %276 = tpu.matmul %274, %275, %cst_90 {dimension_numbers = #tpu.dot_dimension_numbers<[1], [0], [0], [1], [0, 0, 1, 1], [], []>} : vector<8x8xbf16>, vector<8x8xbf16>, vector<8x8xf32> -> vector<8x8xf32>
    %277 = arith.truncf %276 : vector<8x8xf32> to vector<8x8xbf16>
    %278 = arith.truncf %255 : vector<8x32xf32> to vector<8x32xbf16>
    %cst_91 = arith.constant dense<0.000000e+00> : vector<8x32xf32>
    %279 = tpu.matmul %277, %278, %cst_91 {dimension_numbers = #tpu.dot_dimension_numbers<[1], [0], [0], [1], [0, 0, 1, 1], [], []>} : vector<8x8xbf16>, vector<8x32xbf16>, vector<8x32xf32> -> vector<8x32xf32>
    %280 = arith.addf %208, %279 : vector<8x32xf32>
    %281 = vector.extract_strided_slice %240 {offsets = [8, 0], sizes = [8, 8], strides = [1, 1]} : vector<16x8xf32> to vector<8x8xf32>
    %282 = vector.extract_strided_slice %247 {offsets = [8, 0], sizes = [8, 8], strides = [1, 1]} : vector<16x8xf32> to vector<8x8xf32>
    %283 = vector.extract_strided_slice %254 {offsets = [8, 0], sizes = [8, 8], strides = [1, 1]} : vector<16x8xf32> to vector<8x8xf32>
    %284 = arith.truncf %281 : vector<8x8xf32> to vector<8x8xbf16>
    %285 = arith.truncf %282 : vector<8x8xf32> to vector<8x8xbf16>
    %cst_92 = arith.constant dense<0.000000e+00> : vector<8x8xf32>
    %286 = tpu.matmul %284, %285, %cst_92 {dimension_numbers = #tpu.dot_dimension_numbers<[1], [1], [0], [0], [0, 0, 1, 0], [], []>} : vector<8x8xbf16>, vector<8x8xbf16>, vector<8x8xf32> -> vector<8x8xf32>
    %cst_93 = arith.constant 0.353553385 : f32
    %287 = vector.broadcast %cst_93 : f32 to vector<8x8xf32>
    %288 = arith.mulf %286, %287 : vector<8x8xf32>
    %cst_94 = arith.constant dense<0xFF800000> : vector<8xf32>
    %289 = vector.multi_reduction <maximumf>, %288, %cst_94 [1] : vector<8x8xf32> to vector<8xf32>
    %290 = vector.shape_cast %289 : vector<8xf32> to vector<8x1xf32>
    %291 = vector.broadcast %290 : vector<8x1xf32> to vector<8x8xf32>
    %292 = arith.subf %288, %291 : vector<8x8xf32>
    %293 = math.exp %292 : vector<8x8xf32>
    %cst_95 = arith.constant dense<0.000000e+00> : vector<8xf32>
    %294 = vector.multi_reduction <add>, %293, %cst_95 [1] : vector<8x8xf32> to vector<8xf32>
    %295 = vector.shape_cast %294 : vector<8xf32> to vector<8x1xf32>
    %296 = tpu.reciprocal %295 {approx = true} : vector<8x1xf32> -> vector<8x1xf32>
    %297 = vector.broadcast %296 : vector<8x1xf32> to vector<8x8xf32>
    %298 = arith.mulf %293, %297 : vector<8x8xf32>
    %299 = arith.truncf %298 : vector<8x8xf32> to vector<8x8xbf16>
    %300 = arith.truncf %283 : vector<8x8xf32> to vector<8x8xbf16>
    %cst_96 = arith.constant dense<0.000000e+00> : vector<8x8xf32>
    %301 = tpu.matmul %299, %300, %cst_96 {dimension_numbers = #tpu.dot_dimension_numbers<[1], [0], [0], [1], [0, 0, 1, 1], [], []>} : vector<8x8xbf16>, vector<8x8xbf16>, vector<8x8xf32> -> vector<8x8xf32>
    %302 = arith.truncf %301 : vector<8x8xf32> to vector<8x8xbf16>
    %303 = arith.truncf %255 : vector<8x32xf32> to vector<8x32xbf16>
    %cst_97 = arith.constant dense<0.000000e+00> : vector<8x32xf32>
    %304 = tpu.matmul %302, %303, %cst_97 {dimension_numbers = #tpu.dot_dimension_numbers<[1], [0], [0], [1], [0, 0, 1, 1], [], []>} : vector<8x8xbf16>, vector<8x32xbf16>, vector<8x32xf32> -> vector<8x32xf32>
    %305 = arith.addf %233, %304 : vector<8x32xf32>
    %306 = tpu.concatenate %280, %305 in 0 : vector<8x32xf32>, vector<8x32xf32> -> vector<16x32xf32>
    %c14 = arith.constant 14 : index
    %c0_98 = arith.constant 0 : index
    %307 = vector.load %arg2[%c14, %c0_98] : memref<30x32xf32, #tpu.memory_space<vmem>>, vector<1x32xf32>
    %308 = vector.broadcast %307 : vector<1x32xf32> to vector<16x32xf32>
    %309 = arith.addf %306, %308 : vector<16x32xf32>
    %310 = arith.addf %15, %309 : vector<16x32xf32>
    %cst_99 = arith.constant 0.000000e+00 : f32
    %311 = vector.broadcast %cst_99 : f32 to vector<8x32xf32>
    %cst_100 = arith.constant 0.000000e+00 : f32
    %312 = vector.broadcast %cst_100 : f32 to vector<8x32xf32>
    %c192 = arith.constant 192 : index
    %c0_101 = arith.constant 0 : index
    %313 = vector.load %arg1[%c192, %c0_101] : memref<384x32xf32, #tpu.memory_space<vmem>>, vector<8x32xf32>
    %314 = arith.truncf %310 : vector<16x32xf32> to vector<16x32xbf16>
    %315 = arith.truncf %313 : vector<8x32xf32> to vector<8x32xbf16>
    %cst_102 = arith.constant dense<0.000000e+00> : vector<16x8xf32>
    %316 = tpu.matmul %314, %315, %cst_102 {dimension_numbers = #tpu.dot_dimension_numbers<[1], [1], [0], [0], [0, 0, 1, 0], [], []>} : vector<16x32xbf16>, vector<8x32xbf16>, vector<16x8xf32> -> vector<16x8xf32>
    %c15 = arith.constant 15 : index
    %c0_103 = arith.constant 0 : index
    %317 = vector.load %arg2[%c15, %c0_103] : memref<30x32xf32, #tpu.memory_space<vmem>>, vector<1x8xf32>
    %318 = vector.broadcast %317 : vector<1x8xf32> to vector<16x8xf32>
    %319 = arith.addf %316, %318 : vector<16x8xf32>
    %c224 = arith.constant 224 : index
    %c0_104 = arith.constant 0 : index
    %320 = vector.load %arg1[%c224, %c0_104] : memref<384x32xf32, #tpu.memory_space<vmem>>, vector<8x32xf32>
    %321 = arith.truncf %310 : vector<16x32xf32> to vector<16x32xbf16>
    %322 = arith.truncf %320 : vector<8x32xf32> to vector<8x32xbf16>
    %cst_105 = arith.constant dense<0.000000e+00> : vector<16x8xf32>
    %323 = tpu.matmul %321, %322, %cst_105 {dimension_numbers = #tpu.dot_dimension_numbers<[1], [1], [0], [0], [0, 0, 1, 0], [], []>} : vector<16x32xbf16>, vector<8x32xbf16>, vector<16x8xf32> -> vector<16x8xf32>
    %c19 = arith.constant 19 : index
    %c0_106 = arith.constant 0 : index
    %324 = vector.load %arg2[%c19, %c0_106] : memref<30x32xf32, #tpu.memory_space<vmem>>, vector<1x8xf32>
    %325 = vector.broadcast %324 : vector<1x8xf32> to vector<16x8xf32>
    %326 = arith.addf %323, %325 : vector<16x8xf32>
    %c256 = arith.constant 256 : index
    %c0_107 = arith.constant 0 : index
    %327 = vector.load %arg1[%c256, %c0_107] : memref<384x32xf32, #tpu.memory_space<vmem>>, vector<8x32xf32>
    %328 = arith.truncf %310 : vector<16x32xf32> to vector<16x32xbf16>
    %329 = arith.truncf %327 : vector<8x32xf32> to vector<8x32xbf16>
    %cst_108 = arith.constant dense<0.000000e+00> : vector<16x8xf32>
    %330 = tpu.matmul %328, %329, %cst_108 {dimension_numbers = #tpu.dot_dimension_numbers<[1], [1], [0], [0], [0, 0, 1, 0], [], []>} : vector<16x32xbf16>, vector<8x32xbf16>, vector<16x8xf32> -> vector<16x8xf32>
    %c23 = arith.constant 23 : index
    %c0_109 = arith.constant 0 : index
    %331 = vector.load %arg2[%c23, %c0_109] : memref<30x32xf32, #tpu.memory_space<vmem>>, vector<1x8xf32>
    %332 = vector.broadcast %331 : vector<1x8xf32> to vector<16x8xf32>
    %333 = arith.addf %330, %332 : vector<16x8xf32>
    %c288 = arith.constant 288 : index
    %c0_110 = arith.constant 0 : index
    %334 = vector.load %arg1[%c288, %c0_110] : memref<384x32xf32, #tpu.memory_space<vmem>>, vector<8x32xf32>
    %335 = vector.extract_strided_slice %319 {offsets = [0, 0], sizes = [8, 8], strides = [1, 1]} : vector<16x8xf32> to vector<8x8xf32>
    %336 = vector.extract_strided_slice %326 {offsets = [0, 0], sizes = [8, 8], strides = [1, 1]} : vector<16x8xf32> to vector<8x8xf32>
    %337 = vector.extract_strided_slice %333 {offsets = [0, 0], sizes = [8, 8], strides = [1, 1]} : vector<16x8xf32> to vector<8x8xf32>
    %338 = arith.truncf %335 : vector<8x8xf32> to vector<8x8xbf16>
    %339 = arith.truncf %336 : vector<8x8xf32> to vector<8x8xbf16>
    %cst_111 = arith.constant dense<0.000000e+00> : vector<8x8xf32>
    %340 = tpu.matmul %338, %339, %cst_111 {dimension_numbers = #tpu.dot_dimension_numbers<[1], [1], [0], [0], [0, 0, 1, 0], [], []>} : vector<8x8xbf16>, vector<8x8xbf16>, vector<8x8xf32> -> vector<8x8xf32>
    %cst_112 = arith.constant 0.353553385 : f32
    %341 = vector.broadcast %cst_112 : f32 to vector<8x8xf32>
    %342 = arith.mulf %340, %341 : vector<8x8xf32>
    %cst_113 = arith.constant dense<0xFF800000> : vector<8xf32>
    %343 = vector.multi_reduction <maximumf>, %342, %cst_113 [1] : vector<8x8xf32> to vector<8xf32>
    %344 = vector.shape_cast %343 : vector<8xf32> to vector<8x1xf32>
    %345 = vector.broadcast %344 : vector<8x1xf32> to vector<8x8xf32>
    %346 = arith.subf %342, %345 : vector<8x8xf32>
    %347 = math.exp %346 : vector<8x8xf32>
    %cst_114 = arith.constant dense<0.000000e+00> : vector<8xf32>
    %348 = vector.multi_reduction <add>, %347, %cst_114 [1] : vector<8x8xf32> to vector<8xf32>
    %349 = vector.shape_cast %348 : vector<8xf32> to vector<8x1xf32>
    %350 = tpu.reciprocal %349 {approx = true} : vector<8x1xf32> -> vector<8x1xf32>
    %351 = vector.broadcast %350 : vector<8x1xf32> to vector<8x8xf32>
    %352 = arith.mulf %347, %351 : vector<8x8xf32>
    %353 = arith.truncf %352 : vector<8x8xf32> to vector<8x8xbf16>
    %354 = arith.truncf %337 : vector<8x8xf32> to vector<8x8xbf16>
    %cst_115 = arith.constant dense<0.000000e+00> : vector<8x8xf32>
    %355 = tpu.matmul %353, %354, %cst_115 {dimension_numbers = #tpu.dot_dimension_numbers<[1], [0], [0], [1], [0, 0, 1, 1], [], []>} : vector<8x8xbf16>, vector<8x8xbf16>, vector<8x8xf32> -> vector<8x8xf32>
    %356 = arith.truncf %355 : vector<8x8xf32> to vector<8x8xbf16>
    %357 = arith.truncf %334 : vector<8x32xf32> to vector<8x32xbf16>
    %cst_116 = arith.constant dense<0.000000e+00> : vector<8x32xf32>
    %358 = tpu.matmul %356, %357, %cst_116 {dimension_numbers = #tpu.dot_dimension_numbers<[1], [0], [0], [1], [0, 0, 1, 1], [], []>} : vector<8x8xbf16>, vector<8x32xbf16>, vector<8x32xf32> -> vector<8x32xf32>
    %359 = arith.addf %311, %358 : vector<8x32xf32>
    %360 = vector.extract_strided_slice %319 {offsets = [8, 0], sizes = [8, 8], strides = [1, 1]} : vector<16x8xf32> to vector<8x8xf32>
    %361 = vector.extract_strided_slice %326 {offsets = [8, 0], sizes = [8, 8], strides = [1, 1]} : vector<16x8xf32> to vector<8x8xf32>
    %362 = vector.extract_strided_slice %333 {offsets = [8, 0], sizes = [8, 8], strides = [1, 1]} : vector<16x8xf32> to vector<8x8xf32>
    %363 = arith.truncf %360 : vector<8x8xf32> to vector<8x8xbf16>
    %364 = arith.truncf %361 : vector<8x8xf32> to vector<8x8xbf16>
    %cst_117 = arith.constant dense<0.000000e+00> : vector<8x8xf32>
    %365 = tpu.matmul %363, %364, %cst_117 {dimension_numbers = #tpu.dot_dimension_numbers<[1], [1], [0], [0], [0, 0, 1, 0], [], []>} : vector<8x8xbf16>, vector<8x8xbf16>, vector<8x8xf32> -> vector<8x8xf32>
    %cst_118 = arith.constant 0.353553385 : f32
    %366 = vector.broadcast %cst_118 : f32 to vector<8x8xf32>
    %367 = arith.mulf %365, %366 : vector<8x8xf32>
    %cst_119 = arith.constant dense<0xFF800000> : vector<8xf32>
    %368 = vector.multi_reduction <maximumf>, %367, %cst_119 [1] : vector<8x8xf32> to vector<8xf32>
    %369 = vector.shape_cast %368 : vector<8xf32> to vector<8x1xf32>
    %370 = vector.broadcast %369 : vector<8x1xf32> to vector<8x8xf32>
    %371 = arith.subf %367, %370 : vector<8x8xf32>
    %372 = math.exp %371 : vector<8x8xf32>
    %cst_120 = arith.constant dense<0.000000e+00> : vector<8xf32>
    %373 = vector.multi_reduction <add>, %372, %cst_120 [1] : vector<8x8xf32> to vector<8xf32>
    %374 = vector.shape_cast %373 : vector<8xf32> to vector<8x1xf32>
    %375 = tpu.reciprocal %374 {approx = true} : vector<8x1xf32> -> vector<8x1xf32>
    %376 = vector.broadcast %375 : vector<8x1xf32> to vector<8x8xf32>
    %377 = arith.mulf %372, %376 : vector<8x8xf32>
    %378 = arith.truncf %377 : vector<8x8xf32> to vector<8x8xbf16>
    %379 = arith.truncf %362 : vector<8x8xf32> to vector<8x8xbf16>
    %cst_121 = arith.constant dense<0.000000e+00> : vector<8x8xf32>
    %380 = tpu.matmul %378, %379, %cst_121 {dimension_numbers = #tpu.dot_dimension_numbers<[1], [0], [0], [1], [0, 0, 1, 1], [], []>} : vector<8x8xbf16>, vector<8x8xbf16>, vector<8x8xf32> -> vector<8x8xf32>
    %381 = arith.truncf %380 : vector<8x8xf32> to vector<8x8xbf16>
    %382 = arith.truncf %334 : vector<8x32xf32> to vector<8x32xbf16>
    %cst_122 = arith.constant dense<0.000000e+00> : vector<8x32xf32>
    %383 = tpu.matmul %381, %382, %cst_122 {dimension_numbers = #tpu.dot_dimension_numbers<[1], [0], [0], [1], [0, 0, 1, 1], [], []>} : vector<8x8xbf16>, vector<8x32xbf16>, vector<8x32xf32> -> vector<8x32xf32>
    %384 = arith.addf %312, %383 : vector<8x32xf32>
    %c200 = arith.constant 200 : index
    %c0_123 = arith.constant 0 : index
    %385 = vector.load %arg1[%c200, %c0_123] : memref<384x32xf32, #tpu.memory_space<vmem>>, vector<8x32xf32>
    %386 = arith.truncf %310 : vector<16x32xf32> to vector<16x32xbf16>
    %387 = arith.truncf %385 : vector<8x32xf32> to vector<8x32xbf16>
    %cst_124 = arith.constant dense<0.000000e+00> : vector<16x8xf32>
    %388 = tpu.matmul %386, %387, %cst_124 {dimension_numbers = #tpu.dot_dimension_numbers<[1], [1], [0], [0], [0, 0, 1, 0], [], []>} : vector<16x32xbf16>, vector<8x32xbf16>, vector<16x8xf32> -> vector<16x8xf32>
    %c16 = arith.constant 16 : index
    %c0_125 = arith.constant 0 : index
    %389 = vector.load %arg2[%c16, %c0_125] : memref<30x32xf32, #tpu.memory_space<vmem>>, vector<1x8xf32>
    %390 = vector.broadcast %389 : vector<1x8xf32> to vector<16x8xf32>
    %391 = arith.addf %388, %390 : vector<16x8xf32>
    %c232 = arith.constant 232 : index
    %c0_126 = arith.constant 0 : index
    %392 = vector.load %arg1[%c232, %c0_126] : memref<384x32xf32, #tpu.memory_space<vmem>>, vector<8x32xf32>
    %393 = arith.truncf %310 : vector<16x32xf32> to vector<16x32xbf16>
    %394 = arith.truncf %392 : vector<8x32xf32> to vector<8x32xbf16>
    %cst_127 = arith.constant dense<0.000000e+00> : vector<16x8xf32>
    %395 = tpu.matmul %393, %394, %cst_127 {dimension_numbers = #tpu.dot_dimension_numbers<[1], [1], [0], [0], [0, 0, 1, 0], [], []>} : vector<16x32xbf16>, vector<8x32xbf16>, vector<16x8xf32> -> vector<16x8xf32>
    %c20 = arith.constant 20 : index
    %c0_128 = arith.constant 0 : index
    %396 = vector.load %arg2[%c20, %c0_128] : memref<30x32xf32, #tpu.memory_space<vmem>>, vector<1x8xf32>
    %397 = vector.broadcast %396 : vector<1x8xf32> to vector<16x8xf32>
    %398 = arith.addf %395, %397 : vector<16x8xf32>
    %c264 = arith.constant 264 : index
    %c0_129 = arith.constant 0 : index
    %399 = vector.load %arg1[%c264, %c0_129] : memref<384x32xf32, #tpu.memory_space<vmem>>, vector<8x32xf32>
    %400 = arith.truncf %310 : vector<16x32xf32> to vector<16x32xbf16>
    %401 = arith.truncf %399 : vector<8x32xf32> to vector<8x32xbf16>
    %cst_130 = arith.constant dense<0.000000e+00> : vector<16x8xf32>
    %402 = tpu.matmul %400, %401, %cst_130 {dimension_numbers = #tpu.dot_dimension_numbers<[1], [1], [0], [0], [0, 0, 1, 0], [], []>} : vector<16x32xbf16>, vector<8x32xbf16>, vector<16x8xf32> -> vector<16x8xf32>
    %c24 = arith.constant 24 : index
    %c0_131 = arith.constant 0 : index
    %403 = vector.load %arg2[%c24, %c0_131] : memref<30x32xf32, #tpu.memory_space<vmem>>, vector<1x8xf32>
    %404 = vector.broadcast %403 : vector<1x8xf32> to vector<16x8xf32>
    %405 = arith.addf %402, %404 : vector<16x8xf32>
    %c296 = arith.constant 296 : index
    %c0_132 = arith.constant 0 : index
    %406 = vector.load %arg1[%c296, %c0_132] : memref<384x32xf32, #tpu.memory_space<vmem>>, vector<8x32xf32>
    %407 = vector.extract_strided_slice %391 {offsets = [0, 0], sizes = [8, 8], strides = [1, 1]} : vector<16x8xf32> to vector<8x8xf32>
    %408 = vector.extract_strided_slice %398 {offsets = [0, 0], sizes = [8, 8], strides = [1, 1]} : vector<16x8xf32> to vector<8x8xf32>
    %409 = vector.extract_strided_slice %405 {offsets = [0, 0], sizes = [8, 8], strides = [1, 1]} : vector<16x8xf32> to vector<8x8xf32>
    %410 = arith.truncf %407 : vector<8x8xf32> to vector<8x8xbf16>
    %411 = arith.truncf %408 : vector<8x8xf32> to vector<8x8xbf16>
    %cst_133 = arith.constant dense<0.000000e+00> : vector<8x8xf32>
    %412 = tpu.matmul %410, %411, %cst_133 {dimension_numbers = #tpu.dot_dimension_numbers<[1], [1], [0], [0], [0, 0, 1, 0], [], []>} : vector<8x8xbf16>, vector<8x8xbf16>, vector<8x8xf32> -> vector<8x8xf32>
    %cst_134 = arith.constant 0.353553385 : f32
    %413 = vector.broadcast %cst_134 : f32 to vector<8x8xf32>
    %414 = arith.mulf %412, %413 : vector<8x8xf32>
    %cst_135 = arith.constant dense<0xFF800000> : vector<8xf32>
    %415 = vector.multi_reduction <maximumf>, %414, %cst_135 [1] : vector<8x8xf32> to vector<8xf32>
    %416 = vector.shape_cast %415 : vector<8xf32> to vector<8x1xf32>
    %417 = vector.broadcast %416 : vector<8x1xf32> to vector<8x8xf32>
    %418 = arith.subf %414, %417 : vector<8x8xf32>
    %419 = math.exp %418 : vector<8x8xf32>
    %cst_136 = arith.constant dense<0.000000e+00> : vector<8xf32>
    %420 = vector.multi_reduction <add>, %419, %cst_136 [1] : vector<8x8xf32> to vector<8xf32>
    %421 = vector.shape_cast %420 : vector<8xf32> to vector<8x1xf32>
    %422 = tpu.reciprocal %421 {approx = true} : vector<8x1xf32> -> vector<8x1xf32>
    %423 = vector.broadcast %422 : vector<8x1xf32> to vector<8x8xf32>
    %424 = arith.mulf %419, %423 : vector<8x8xf32>
    %425 = arith.truncf %424 : vector<8x8xf32> to vector<8x8xbf16>
    %426 = arith.truncf %409 : vector<8x8xf32> to vector<8x8xbf16>
    %cst_137 = arith.constant dense<0.000000e+00> : vector<8x8xf32>
    %427 = tpu.matmul %425, %426, %cst_137 {dimension_numbers = #tpu.dot_dimension_numbers<[1], [0], [0], [1], [0, 0, 1, 1], [], []>} : vector<8x8xbf16>, vector<8x8xbf16>, vector<8x8xf32> -> vector<8x8xf32>
    %428 = arith.truncf %427 : vector<8x8xf32> to vector<8x8xbf16>
    %429 = arith.truncf %406 : vector<8x32xf32> to vector<8x32xbf16>
    %cst_138 = arith.constant dense<0.000000e+00> : vector<8x32xf32>
    %430 = tpu.matmul %428, %429, %cst_138 {dimension_numbers = #tpu.dot_dimension_numbers<[1], [0], [0], [1], [0, 0, 1, 1], [], []>} : vector<8x8xbf16>, vector<8x32xbf16>, vector<8x32xf32> -> vector<8x32xf32>
    %431 = arith.addf %359, %430 : vector<8x32xf32>
    %432 = vector.extract_strided_slice %391 {offsets = [8, 0], sizes = [8, 8], strides = [1, 1]} : vector<16x8xf32> to vector<8x8xf32>
    %433 = vector.extract_strided_slice %398 {offsets = [8, 0], sizes = [8, 8], strides = [1, 1]} : vector<16x8xf32> to vector<8x8xf32>
    %434 = vector.extract_strided_slice %405 {offsets = [8, 0], sizes = [8, 8], strides = [1, 1]} : vector<16x8xf32> to vector<8x8xf32>
    %435 = arith.truncf %432 : vector<8x8xf32> to vector<8x8xbf16>
    %436 = arith.truncf %433 : vector<8x8xf32> to vector<8x8xbf16>
    %cst_139 = arith.constant dense<0.000000e+00> : vector<8x8xf32>
    %437 = tpu.matmul %435, %436, %cst_139 {dimension_numbers = #tpu.dot_dimension_numbers<[1], [1], [0], [0], [0, 0, 1, 0], [], []>} : vector<8x8xbf16>, vector<8x8xbf16>, vector<8x8xf32> -> vector<8x8xf32>
    %cst_140 = arith.constant 0.353553385 : f32
    %438 = vector.broadcast %cst_140 : f32 to vector<8x8xf32>
    %439 = arith.mulf %437, %438 : vector<8x8xf32>
    %cst_141 = arith.constant dense<0xFF800000> : vector<8xf32>
    %440 = vector.multi_reduction <maximumf>, %439, %cst_141 [1] : vector<8x8xf32> to vector<8xf32>
    %441 = vector.shape_cast %440 : vector<8xf32> to vector<8x1xf32>
    %442 = vector.broadcast %441 : vector<8x1xf32> to vector<8x8xf32>
    %443 = arith.subf %439, %442 : vector<8x8xf32>
    %444 = math.exp %443 : vector<8x8xf32>
    %cst_142 = arith.constant dense<0.000000e+00> : vector<8xf32>
    %445 = vector.multi_reduction <add>, %444, %cst_142 [1] : vector<8x8xf32> to vector<8xf32>
    %446 = vector.shape_cast %445 : vector<8xf32> to vector<8x1xf32>
    %447 = tpu.reciprocal %446 {approx = true} : vector<8x1xf32> -> vector<8x1xf32>
    %448 = vector.broadcast %447 : vector<8x1xf32> to vector<8x8xf32>
    %449 = arith.mulf %444, %448 : vector<8x8xf32>
    %450 = arith.truncf %449 : vector<8x8xf32> to vector<8x8xbf16>
    %451 = arith.truncf %434 : vector<8x8xf32> to vector<8x8xbf16>
    %cst_143 = arith.constant dense<0.000000e+00> : vector<8x8xf32>
    %452 = tpu.matmul %450, %451, %cst_143 {dimension_numbers = #tpu.dot_dimension_numbers<[1], [0], [0], [1], [0, 0, 1, 1], [], []>} : vector<8x8xbf16>, vector<8x8xbf16>, vector<8x8xf32> -> vector<8x8xf32>
    %453 = arith.truncf %452 : vector<8x8xf32> to vector<8x8xbf16>
    %454 = arith.truncf %406 : vector<8x32xf32> to vector<8x32xbf16>
    %cst_144 = arith.constant dense<0.000000e+00> : vector<8x32xf32>
    %455 = tpu.matmul %453, %454, %cst_144 {dimension_numbers = #tpu.dot_dimension_numbers<[1], [0], [0], [1], [0, 0, 1, 1], [], []>} : vector<8x8xbf16>, vector<8x32xbf16>, vector<8x32xf32> -> vector<8x32xf32>
    %456 = arith.addf %384, %455 : vector<8x32xf32>
    %c208 = arith.constant 208 : index
    %c0_145 = arith.constant 0 : index
    %457 = vector.load %arg1[%c208, %c0_145] : memref<384x32xf32, #tpu.memory_space<vmem>>, vector<8x32xf32>
    %458 = arith.truncf %310 : vector<16x32xf32> to vector<16x32xbf16>
    %459 = arith.truncf %457 : vector<8x32xf32> to vector<8x32xbf16>
    %cst_146 = arith.constant dense<0.000000e+00> : vector<16x8xf32>
    %460 = tpu.matmul %458, %459, %cst_146 {dimension_numbers = #tpu.dot_dimension_numbers<[1], [1], [0], [0], [0, 0, 1, 0], [], []>} : vector<16x32xbf16>, vector<8x32xbf16>, vector<16x8xf32> -> vector<16x8xf32>
    %c17 = arith.constant 17 : index
    %c0_147 = arith.constant 0 : index
    %461 = vector.load %arg2[%c17, %c0_147] : memref<30x32xf32, #tpu.memory_space<vmem>>, vector<1x8xf32>
    %462 = vector.broadcast %461 : vector<1x8xf32> to vector<16x8xf32>
    %463 = arith.addf %460, %462 : vector<16x8xf32>
    %c240 = arith.constant 240 : index
    %c0_148 = arith.constant 0 : index
    %464 = vector.load %arg1[%c240, %c0_148] : memref<384x32xf32, #tpu.memory_space<vmem>>, vector<8x32xf32>
    %465 = arith.truncf %310 : vector<16x32xf32> to vector<16x32xbf16>
    %466 = arith.truncf %464 : vector<8x32xf32> to vector<8x32xbf16>
    %cst_149 = arith.constant dense<0.000000e+00> : vector<16x8xf32>
    %467 = tpu.matmul %465, %466, %cst_149 {dimension_numbers = #tpu.dot_dimension_numbers<[1], [1], [0], [0], [0, 0, 1, 0], [], []>} : vector<16x32xbf16>, vector<8x32xbf16>, vector<16x8xf32> -> vector<16x8xf32>
    %c21 = arith.constant 21 : index
    %c0_150 = arith.constant 0 : index
    %468 = vector.load %arg2[%c21, %c0_150] : memref<30x32xf32, #tpu.memory_space<vmem>>, vector<1x8xf32>
    %469 = vector.broadcast %468 : vector<1x8xf32> to vector<16x8xf32>
    %470 = arith.addf %467, %469 : vector<16x8xf32>
    %c272 = arith.constant 272 : index
    %c0_151 = arith.constant 0 : index
    %471 = vector.load %arg1[%c272, %c0_151] : memref<384x32xf32, #tpu.memory_space<vmem>>, vector<8x32xf32>
    %472 = arith.truncf %310 : vector<16x32xf32> to vector<16x32xbf16>
    %473 = arith.truncf %471 : vector<8x32xf32> to vector<8x32xbf16>
    %cst_152 = arith.constant dense<0.000000e+00> : vector<16x8xf32>
    %474 = tpu.matmul %472, %473, %cst_152 {dimension_numbers = #tpu.dot_dimension_numbers<[1], [1], [0], [0], [0, 0, 1, 0], [], []>} : vector<16x32xbf16>, vector<8x32xbf16>, vector<16x8xf32> -> vector<16x8xf32>
    %c25 = arith.constant 25 : index
    %c0_153 = arith.constant 0 : index
    %475 = vector.load %arg2[%c25, %c0_153] : memref<30x32xf32, #tpu.memory_space<vmem>>, vector<1x8xf32>
    %476 = vector.broadcast %475 : vector<1x8xf32> to vector<16x8xf32>
    %477 = arith.addf %474, %476 : vector<16x8xf32>
    %c304 = arith.constant 304 : index
    %c0_154 = arith.constant 0 : index
    %478 = vector.load %arg1[%c304, %c0_154] : memref<384x32xf32, #tpu.memory_space<vmem>>, vector<8x32xf32>
    %479 = vector.extract_strided_slice %463 {offsets = [0, 0], sizes = [8, 8], strides = [1, 1]} : vector<16x8xf32> to vector<8x8xf32>
    %480 = vector.extract_strided_slice %470 {offsets = [0, 0], sizes = [8, 8], strides = [1, 1]} : vector<16x8xf32> to vector<8x8xf32>
    %481 = vector.extract_strided_slice %477 {offsets = [0, 0], sizes = [8, 8], strides = [1, 1]} : vector<16x8xf32> to vector<8x8xf32>
    %482 = arith.truncf %479 : vector<8x8xf32> to vector<8x8xbf16>
    %483 = arith.truncf %480 : vector<8x8xf32> to vector<8x8xbf16>
    %cst_155 = arith.constant dense<0.000000e+00> : vector<8x8xf32>
    %484 = tpu.matmul %482, %483, %cst_155 {dimension_numbers = #tpu.dot_dimension_numbers<[1], [1], [0], [0], [0, 0, 1, 0], [], []>} : vector<8x8xbf16>, vector<8x8xbf16>, vector<8x8xf32> -> vector<8x8xf32>
    %cst_156 = arith.constant 0.353553385 : f32
    %485 = vector.broadcast %cst_156 : f32 to vector<8x8xf32>
    %486 = arith.mulf %484, %485 : vector<8x8xf32>
    %cst_157 = arith.constant dense<0xFF800000> : vector<8xf32>
    %487 = vector.multi_reduction <maximumf>, %486, %cst_157 [1] : vector<8x8xf32> to vector<8xf32>
    %488 = vector.shape_cast %487 : vector<8xf32> to vector<8x1xf32>
    %489 = vector.broadcast %488 : vector<8x1xf32> to vector<8x8xf32>
    %490 = arith.subf %486, %489 : vector<8x8xf32>
    %491 = math.exp %490 : vector<8x8xf32>
    %cst_158 = arith.constant dense<0.000000e+00> : vector<8xf32>
    %492 = vector.multi_reduction <add>, %491, %cst_158 [1] : vector<8x8xf32> to vector<8xf32>
    %493 = vector.shape_cast %492 : vector<8xf32> to vector<8x1xf32>
    %494 = tpu.reciprocal %493 {approx = true} : vector<8x1xf32> -> vector<8x1xf32>
    %495 = vector.broadcast %494 : vector<8x1xf32> to vector<8x8xf32>
    %496 = arith.mulf %491, %495 : vector<8x8xf32>
    %497 = arith.truncf %496 : vector<8x8xf32> to vector<8x8xbf16>
    %498 = arith.truncf %481 : vector<8x8xf32> to vector<8x8xbf16>
    %cst_159 = arith.constant dense<0.000000e+00> : vector<8x8xf32>
    %499 = tpu.matmul %497, %498, %cst_159 {dimension_numbers = #tpu.dot_dimension_numbers<[1], [0], [0], [1], [0, 0, 1, 1], [], []>} : vector<8x8xbf16>, vector<8x8xbf16>, vector<8x8xf32> -> vector<8x8xf32>
    %500 = arith.truncf %499 : vector<8x8xf32> to vector<8x8xbf16>
    %501 = arith.truncf %478 : vector<8x32xf32> to vector<8x32xbf16>
    %cst_160 = arith.constant dense<0.000000e+00> : vector<8x32xf32>
    %502 = tpu.matmul %500, %501, %cst_160 {dimension_numbers = #tpu.dot_dimension_numbers<[1], [0], [0], [1], [0, 0, 1, 1], [], []>} : vector<8x8xbf16>, vector<8x32xbf16>, vector<8x32xf32> -> vector<8x32xf32>
    %503 = arith.addf %431, %502 : vector<8x32xf32>
    %504 = vector.extract_strided_slice %463 {offsets = [8, 0], sizes = [8, 8], strides = [1, 1]} : vector<16x8xf32> to vector<8x8xf32>
    %505 = vector.extract_strided_slice %470 {offsets = [8, 0], sizes = [8, 8], strides = [1, 1]} : vector<16x8xf32> to vector<8x8xf32>
    %506 = vector.extract_strided_slice %477 {offsets = [8, 0], sizes = [8, 8], strides = [1, 1]} : vector<16x8xf32> to vector<8x8xf32>
    %507 = arith.truncf %504 : vector<8x8xf32> to vector<8x8xbf16>
    %508 = arith.truncf %505 : vector<8x8xf32> to vector<8x8xbf16>
    %cst_161 = arith.constant dense<0.000000e+00> : vector<8x8xf32>
    %509 = tpu.matmul %507, %508, %cst_161 {dimension_numbers = #tpu.dot_dimension_numbers<[1], [1], [0], [0], [0, 0, 1, 0], [], []>} : vector<8x8xbf16>, vector<8x8xbf16>, vector<8x8xf32> -> vector<8x8xf32>
    %cst_162 = arith.constant 0.353553385 : f32
    %510 = vector.broadcast %cst_162 : f32 to vector<8x8xf32>
    %511 = arith.mulf %509, %510 : vector<8x8xf32>
    %cst_163 = arith.constant dense<0xFF800000> : vector<8xf32>
    %512 = vector.multi_reduction <maximumf>, %511, %cst_163 [1] : vector<8x8xf32> to vector<8xf32>
    %513 = vector.shape_cast %512 : vector<8xf32> to vector<8x1xf32>
    %514 = vector.broadcast %513 : vector<8x1xf32> to vector<8x8xf32>
    %515 = arith.subf %511, %514 : vector<8x8xf32>
    %516 = math.exp %515 : vector<8x8xf32>
    %cst_164 = arith.constant dense<0.000000e+00> : vector<8xf32>
    %517 = vector.multi_reduction <add>, %516, %cst_164 [1] : vector<8x8xf32> to vector<8xf32>
    %518 = vector.shape_cast %517 : vector<8xf32> to vector<8x1xf32>
    %519 = tpu.reciprocal %518 {approx = true} : vector<8x1xf32> -> vector<8x1xf32>
    %520 = vector.broadcast %519 : vector<8x1xf32> to vector<8x8xf32>
    %521 = arith.mulf %516, %520 : vector<8x8xf32>
    %522 = arith.truncf %521 : vector<8x8xf32> to vector<8x8xbf16>
    %523 = arith.truncf %506 : vector<8x8xf32> to vector<8x8xbf16>
    %cst_165 = arith.constant dense<0.000000e+00> : vector<8x8xf32>
    %524 = tpu.matmul %522, %523, %cst_165 {dimension_numbers = #tpu.dot_dimension_numbers<[1], [0], [0], [1], [0, 0, 1, 1], [], []>} : vector<8x8xbf16>, vector<8x8xbf16>, vector<8x8xf32> -> vector<8x8xf32>
    %525 = arith.truncf %524 : vector<8x8xf32> to vector<8x8xbf16>
    %526 = arith.truncf %478 : vector<8x32xf32> to vector<8x32xbf16>
    %cst_166 = arith.constant dense<0.000000e+00> : vector<8x32xf32>
    %527 = tpu.matmul %525, %526, %cst_166 {dimension_numbers = #tpu.dot_dimension_numbers<[1], [0], [0], [1], [0, 0, 1, 1], [], []>} : vector<8x8xbf16>, vector<8x32xbf16>, vector<8x32xf32> -> vector<8x32xf32>
    %528 = arith.addf %456, %527 : vector<8x32xf32>
    %c216 = arith.constant 216 : index
    %c0_167 = arith.constant 0 : index
    %529 = vector.load %arg1[%c216, %c0_167] : memref<384x32xf32, #tpu.memory_space<vmem>>, vector<8x32xf32>
    %530 = arith.truncf %310 : vector<16x32xf32> to vector<16x32xbf16>
    %531 = arith.truncf %529 : vector<8x32xf32> to vector<8x32xbf16>
    %cst_168 = arith.constant dense<0.000000e+00> : vector<16x8xf32>
    %532 = tpu.matmul %530, %531, %cst_168 {dimension_numbers = #tpu.dot_dimension_numbers<[1], [1], [0], [0], [0, 0, 1, 0], [], []>} : vector<16x32xbf16>, vector<8x32xbf16>, vector<16x8xf32> -> vector<16x8xf32>
    %c18 = arith.constant 18 : index
    %c0_169 = arith.constant 0 : index
    %533 = vector.load %arg2[%c18, %c0_169] : memref<30x32xf32, #tpu.memory_space<vmem>>, vector<1x8xf32>
    %534 = vector.broadcast %533 : vector<1x8xf32> to vector<16x8xf32>
    %535 = arith.addf %532, %534 : vector<16x8xf32>
    %c248 = arith.constant 248 : index
    %c0_170 = arith.constant 0 : index
    %536 = vector.load %arg1[%c248, %c0_170] : memref<384x32xf32, #tpu.memory_space<vmem>>, vector<8x32xf32>
    %537 = arith.truncf %310 : vector<16x32xf32> to vector<16x32xbf16>
    %538 = arith.truncf %536 : vector<8x32xf32> to vector<8x32xbf16>
    %cst_171 = arith.constant dense<0.000000e+00> : vector<16x8xf32>
    %539 = tpu.matmul %537, %538, %cst_171 {dimension_numbers = #tpu.dot_dimension_numbers<[1], [1], [0], [0], [0, 0, 1, 0], [], []>} : vector<16x32xbf16>, vector<8x32xbf16>, vector<16x8xf32> -> vector<16x8xf32>
    %c22 = arith.constant 22 : index
    %c0_172 = arith.constant 0 : index
    %540 = vector.load %arg2[%c22, %c0_172] : memref<30x32xf32, #tpu.memory_space<vmem>>, vector<1x8xf32>
    %541 = vector.broadcast %540 : vector<1x8xf32> to vector<16x8xf32>
    %542 = arith.addf %539, %541 : vector<16x8xf32>
    %c280 = arith.constant 280 : index
    %c0_173 = arith.constant 0 : index
    %543 = vector.load %arg1[%c280, %c0_173] : memref<384x32xf32, #tpu.memory_space<vmem>>, vector<8x32xf32>
    %544 = arith.truncf %310 : vector<16x32xf32> to vector<16x32xbf16>
    %545 = arith.truncf %543 : vector<8x32xf32> to vector<8x32xbf16>
    %cst_174 = arith.constant dense<0.000000e+00> : vector<16x8xf32>
    %546 = tpu.matmul %544, %545, %cst_174 {dimension_numbers = #tpu.dot_dimension_numbers<[1], [1], [0], [0], [0, 0, 1, 0], [], []>} : vector<16x32xbf16>, vector<8x32xbf16>, vector<16x8xf32> -> vector<16x8xf32>
    %c26 = arith.constant 26 : index
    %c0_175 = arith.constant 0 : index
    %547 = vector.load %arg2[%c26, %c0_175] : memref<30x32xf32, #tpu.memory_space<vmem>>, vector<1x8xf32>
    %548 = vector.broadcast %547 : vector<1x8xf32> to vector<16x8xf32>
    %549 = arith.addf %546, %548 : vector<16x8xf32>
    %c312 = arith.constant 312 : index
    %c0_176 = arith.constant 0 : index
    %550 = vector.load %arg1[%c312, %c0_176] : memref<384x32xf32, #tpu.memory_space<vmem>>, vector<8x32xf32>
    %551 = vector.extract_strided_slice %535 {offsets = [0, 0], sizes = [8, 8], strides = [1, 1]} : vector<16x8xf32> to vector<8x8xf32>
    %552 = vector.extract_strided_slice %542 {offsets = [0, 0], sizes = [8, 8], strides = [1, 1]} : vector<16x8xf32> to vector<8x8xf32>
    %553 = vector.extract_strided_slice %549 {offsets = [0, 0], sizes = [8, 8], strides = [1, 1]} : vector<16x8xf32> to vector<8x8xf32>
    %554 = arith.truncf %551 : vector<8x8xf32> to vector<8x8xbf16>
    %555 = arith.truncf %552 : vector<8x8xf32> to vector<8x8xbf16>
    %cst_177 = arith.constant dense<0.000000e+00> : vector<8x8xf32>
    %556 = tpu.matmul %554, %555, %cst_177 {dimension_numbers = #tpu.dot_dimension_numbers<[1], [1], [0], [0], [0, 0, 1, 0], [], []>} : vector<8x8xbf16>, vector<8x8xbf16>, vector<8x8xf32> -> vector<8x8xf32>
    %cst_178 = arith.constant 0.353553385 : f32
    %557 = vector.broadcast %cst_178 : f32 to vector<8x8xf32>
    %558 = arith.mulf %556, %557 : vector<8x8xf32>
    %cst_179 = arith.constant dense<0xFF800000> : vector<8xf32>
    %559 = vector.multi_reduction <maximumf>, %558, %cst_179 [1] : vector<8x8xf32> to vector<8xf32>
    %560 = vector.shape_cast %559 : vector<8xf32> to vector<8x1xf32>
    %561 = vector.broadcast %560 : vector<8x1xf32> to vector<8x8xf32>
    %562 = arith.subf %558, %561 : vector<8x8xf32>
    %563 = math.exp %562 : vector<8x8xf32>
    %cst_180 = arith.constant dense<0.000000e+00> : vector<8xf32>
    %564 = vector.multi_reduction <add>, %563, %cst_180 [1] : vector<8x8xf32> to vector<8xf32>
    %565 = vector.shape_cast %564 : vector<8xf32> to vector<8x1xf32>
    %566 = tpu.reciprocal %565 {approx = true} : vector<8x1xf32> -> vector<8x1xf32>
    %567 = vector.broadcast %566 : vector<8x1xf32> to vector<8x8xf32>
    %568 = arith.mulf %563, %567 : vector<8x8xf32>
    %569 = arith.truncf %568 : vector<8x8xf32> to vector<8x8xbf16>
    %570 = arith.truncf %553 : vector<8x8xf32> to vector<8x8xbf16>
    %cst_181 = arith.constant dense<0.000000e+00> : vector<8x8xf32>
    %571 = tpu.matmul %569, %570, %cst_181 {dimension_numbers = #tpu.dot_dimension_numbers<[1], [0], [0], [1], [0, 0, 1, 1], [], []>} : vector<8x8xbf16>, vector<8x8xbf16>, vector<8x8xf32> -> vector<8x8xf32>
    %572 = arith.truncf %571 : vector<8x8xf32> to vector<8x8xbf16>
    %573 = arith.truncf %550 : vector<8x32xf32> to vector<8x32xbf16>
    %cst_182 = arith.constant dense<0.000000e+00> : vector<8x32xf32>
    %574 = tpu.matmul %572, %573, %cst_182 {dimension_numbers = #tpu.dot_dimension_numbers<[1], [0], [0], [1], [0, 0, 1, 1], [], []>} : vector<8x8xbf16>, vector<8x32xbf16>, vector<8x32xf32> -> vector<8x32xf32>
    %575 = arith.addf %503, %574 : vector<8x32xf32>
    %576 = vector.extract_strided_slice %535 {offsets = [8, 0], sizes = [8, 8], strides = [1, 1]} : vector<16x8xf32> to vector<8x8xf32>
    %577 = vector.extract_strided_slice %542 {offsets = [8, 0], sizes = [8, 8], strides = [1, 1]} : vector<16x8xf32> to vector<8x8xf32>
    %578 = vector.extract_strided_slice %549 {offsets = [8, 0], sizes = [8, 8], strides = [1, 1]} : vector<16x8xf32> to vector<8x8xf32>
    %579 = arith.truncf %576 : vector<8x8xf32> to vector<8x8xbf16>
    %580 = arith.truncf %577 : vector<8x8xf32> to vector<8x8xbf16>
    %cst_183 = arith.constant dense<0.000000e+00> : vector<8x8xf32>
    %581 = tpu.matmul %579, %580, %cst_183 {dimension_numbers = #tpu.dot_dimension_numbers<[1], [1], [0], [0], [0, 0, 1, 0], [], []>} : vector<8x8xbf16>, vector<8x8xbf16>, vector<8x8xf32> -> vector<8x8xf32>
    %cst_184 = arith.constant 0.353553385 : f32
    %582 = vector.broadcast %cst_184 : f32 to vector<8x8xf32>
    %583 = arith.mulf %581, %582 : vector<8x8xf32>
    %cst_185 = arith.constant dense<0xFF800000> : vector<8xf32>
    %584 = vector.multi_reduction <maximumf>, %583, %cst_185 [1] : vector<8x8xf32> to vector<8xf32>
    %585 = vector.shape_cast %584 : vector<8xf32> to vector<8x1xf32>
    %586 = vector.broadcast %585 : vector<8x1xf32> to vector<8x8xf32>
    %587 = arith.subf %583, %586 : vector<8x8xf32>
    %588 = math.exp %587 : vector<8x8xf32>
    %cst_186 = arith.constant dense<0.000000e+00> : vector<8xf32>
    %589 = vector.multi_reduction <add>, %588, %cst_186 [1] : vector<8x8xf32> to vector<8xf32>
    %590 = vector.shape_cast %589 : vector<8xf32> to vector<8x1xf32>
    %591 = tpu.reciprocal %590 {approx = true} : vector<8x1xf32> -> vector<8x1xf32>
    %592 = vector.broadcast %591 : vector<8x1xf32> to vector<8x8xf32>
    %593 = arith.mulf %588, %592 : vector<8x8xf32>
    %594 = arith.truncf %593 : vector<8x8xf32> to vector<8x8xbf16>
    %595 = arith.truncf %578 : vector<8x8xf32> to vector<8x8xbf16>
    %cst_187 = arith.constant dense<0.000000e+00> : vector<8x8xf32>
    %596 = tpu.matmul %594, %595, %cst_187 {dimension_numbers = #tpu.dot_dimension_numbers<[1], [0], [0], [1], [0, 0, 1, 1], [], []>} : vector<8x8xbf16>, vector<8x8xbf16>, vector<8x8xf32> -> vector<8x8xf32>
    %597 = arith.truncf %596 : vector<8x8xf32> to vector<8x8xbf16>
    %598 = arith.truncf %550 : vector<8x32xf32> to vector<8x32xbf16>
    %cst_188 = arith.constant dense<0.000000e+00> : vector<8x32xf32>
    %599 = tpu.matmul %597, %598, %cst_188 {dimension_numbers = #tpu.dot_dimension_numbers<[1], [0], [0], [1], [0, 0, 1, 1], [], []>} : vector<8x8xbf16>, vector<8x32xbf16>, vector<8x32xf32> -> vector<8x32xf32>
    %600 = arith.addf %528, %599 : vector<8x32xf32>
    %601 = tpu.concatenate %575, %600 in 0 : vector<8x32xf32>, vector<8x32xf32> -> vector<16x32xf32>
    %c27 = arith.constant 27 : index
    %c0_189 = arith.constant 0 : index
    %602 = vector.load %arg2[%c27, %c0_189] : memref<30x32xf32, #tpu.memory_space<vmem>>, vector<1x32xf32>
    %603 = vector.broadcast %602 : vector<1x32xf32> to vector<16x32xf32>
    %604 = arith.addf %601, %603 : vector<16x32xf32>
    %605 = arith.addf %310, %604 : vector<16x32xf32>
    %c320 = arith.constant 320 : index
    %c0_190 = arith.constant 0 : index
    %606 = vector.load %arg1[%c320, %c0_190] : memref<384x32xf32, #tpu.memory_space<vmem>>, vector<32x32xf32>
    %607 = arith.truncf %605 : vector<16x32xf32> to vector<16x32xbf16>
    %608 = arith.truncf %606 : vector<32x32xf32> to vector<32x32xbf16>
    %cst_191 = arith.constant dense<0.000000e+00> : vector<16x32xf32>
    %609 = tpu.matmul %607, %608, %cst_191 {dimension_numbers = #tpu.dot_dimension_numbers<[1], [1], [0], [0], [0, 0, 1, 0], [], []>} : vector<16x32xbf16>, vector<32x32xbf16>, vector<16x32xf32> -> vector<16x32xf32>
    %c28 = arith.constant 28 : index
    %c0_192 = arith.constant 0 : index
    %610 = vector.load %arg2[%c28, %c0_192] : memref<30x32xf32, #tpu.memory_space<vmem>>, vector<1x32xf32>
    %611 = vector.broadcast %610 : vector<1x32xf32> to vector<16x32xf32>
    %612 = arith.addf %609, %611 : vector<16x32xf32>
    %c352 = arith.constant 352 : index
    %c0_193 = arith.constant 0 : index
    %613 = vector.load %arg1[%c352, %c0_193] : memref<384x32xf32, #tpu.memory_space<vmem>>, vector<32x32xf32>
    %614 = arith.truncf %605 : vector<16x32xf32> to vector<16x32xbf16>
    %615 = arith.truncf %613 : vector<32x32xf32> to vector<32x32xbf16>
    %cst_194 = arith.constant dense<0.000000e+00> : vector<16x32xf32>
    %616 = tpu.matmul %614, %615, %cst_194 {dimension_numbers = #tpu.dot_dimension_numbers<[1], [1], [0], [0], [0, 0, 1, 0], [], []>} : vector<16x32xbf16>, vector<32x32xbf16>, vector<16x32xf32> -> vector<16x32xf32>
    %c29 = arith.constant 29 : index
    %c0_195 = arith.constant 0 : index
    %617 = vector.load %arg2[%c29, %c0_195] : memref<30x32xf32, #tpu.memory_space<vmem>>, vector<1x32xf32>
    %618 = vector.broadcast %617 : vector<1x32xf32> to vector<16x32xf32>
    %619 = arith.addf %616, %618 : vector<16x32xf32>
    %620 = vector.extract_strided_slice %612 {offsets = [0, 0], sizes = [8, 32], strides = [1, 1]} : vector<16x32xf32> to vector<8x32xf32>
    %621 = vector.extract_strided_slice %619 {offsets = [0, 0], sizes = [8, 32], strides = [1, 1]} : vector<16x32xf32> to vector<8x32xf32>
    %622 = arith.truncf %620 : vector<8x32xf32> to vector<8x32xbf16>
    %623 = arith.truncf %621 : vector<8x32xf32> to vector<8x32xbf16>
    %cst_196 = arith.constant dense<0.000000e+00> : vector<8x8xf32>
    %624 = tpu.matmul %622, %623, %cst_196 {dimension_numbers = #tpu.dot_dimension_numbers<[1], [1], [0], [0], [0, 0, 1, 0], [], []>} : vector<8x32xbf16>, vector<8x32xbf16>, vector<8x8xf32> -> vector<8x8xf32>
    %625 = arith.truncf %621 : vector<8x32xf32> to vector<8x32xbf16>
    %626 = arith.truncf %620 : vector<8x32xf32> to vector<8x32xbf16>
    %cst_197 = arith.constant dense<0.000000e+00> : vector<8x8xf32>
    %627 = tpu.matmul %625, %626, %cst_197 {dimension_numbers = #tpu.dot_dimension_numbers<[1], [1], [0], [0], [0, 0, 1, 0], [], []>} : vector<8x32xbf16>, vector<8x32xbf16>, vector<8x8xf32> -> vector<8x8xf32>
    %628 = arith.addf %624, %627 : vector<8x8xf32>
    %cst_198 = arith.constant 0.0883883461 : f32
    %629 = vector.broadcast %cst_198 : f32 to vector<8x8xf32>
    %630 = arith.mulf %629, %628 : vector<8x8xf32>
    %c0_199 = arith.constant 0 : index
    %c0_200 = arith.constant 0 : index
    %c0_201 = arith.constant 0 : index
    %631 = vector.load %arg3[%c0_199, %c0_200, %c0_201] : memref<2x8x8xf32, #tpu.memory_space<vmem>>, vector<1x8x8xf32>
    %632 = vector.shape_cast %631 : vector<1x8x8xf32> to vector<8x8xf32>
    %633 = vector.shape_cast %630 : vector<8x8xf32> to vector<1x8x8xf32>
    tpu.vector_store %arg3[%c0_199, %c0_200, %c0_201], %633 {strides = array<i32>} : memref<2x8x8xf32, #tpu.memory_space<vmem>>, vector<1x8x8xf32>,
    %634 = vector.extract_strided_slice %612 {offsets = [8, 0], sizes = [8, 32], strides = [1, 1]} : vector<16x32xf32> to vector<8x32xf32>
    %635 = vector.extract_strided_slice %619 {offsets = [8, 0], sizes = [8, 32], strides = [1, 1]} : vector<16x32xf32> to vector<8x32xf32>
    %636 = arith.truncf %634 : vector<8x32xf32> to vector<8x32xbf16>
    %637 = arith.truncf %635 : vector<8x32xf32> to vector<8x32xbf16>
    %cst_202 = arith.constant dense<0.000000e+00> : vector<8x8xf32>
    %638 = tpu.matmul %636, %637, %cst_202 {dimension_numbers = #tpu.dot_dimension_numbers<[1], [1], [0], [0], [0, 0, 1, 0], [], []>} : vector<8x32xbf16>, vector<8x32xbf16>, vector<8x8xf32> -> vector<8x8xf32>
    %639 = arith.truncf %635 : vector<8x32xf32> to vector<8x32xbf16>
    %640 = arith.truncf %634 : vector<8x32xf32> to vector<8x32xbf16>
    %cst_203 = arith.constant dense<0.000000e+00> : vector<8x8xf32>
    %641 = tpu.matmul %639, %640, %cst_203 {dimension_numbers = #tpu.dot_dimension_numbers<[1], [1], [0], [0], [0, 0, 1, 0], [], []>} : vector<8x32xbf16>, vector<8x32xbf16>, vector<8x8xf32> -> vector<8x8xf32>
    %642 = arith.addf %638, %641 : vector<8x8xf32>
    %cst_204 = arith.constant 0.0883883461 : f32
    %643 = vector.broadcast %cst_204 : f32 to vector<8x8xf32>
    %644 = arith.mulf %643, %642 : vector<8x8xf32>
    %c1_205 = arith.constant 1 : index
    %c0_206 = arith.constant 0 : index
    %c0_207 = arith.constant 0 : index
    %645 = vector.load %arg3[%c1_205, %c0_206, %c0_207] : memref<2x8x8xf32, #tpu.memory_space<vmem>>, vector<1x8x8xf32>
    %646 = vector.shape_cast %645 : vector<1x8x8xf32> to vector<8x8xf32>
    %647 = vector.shape_cast %644 : vector<8x8xf32> to vector<1x8x8xf32>
    tpu.vector_store %arg3[%c1_205, %c0_206, %c0_207], %647 {strides = array<i32>} : memref<2x8x8xf32, #tpu.memory_space<vmem>>, vector<1x8x8xf32>,
    return
  }
}

</mosaic_0001>

<bundles_post_ra>
// kernel: affinity_mul_forward.1
= control target key start
LH: loop header
LB: loop body
LE: loop exit
PB: predicated region body
PF: predicated region fallthrough
CT: control target
= control target key end

     0   :  { %vm30_vm0 = vcmask 261120   ;;  %v5061_v2 = vmov 0.0   ;;  %vm5062_vm1 = vmmov 0   ;;  %s5902_s0 = inlined_call_operand.vmem [shape: f32[16,32], index: 0, kind: input, shape index: {}]   ;;  %s5903_s1 = inlined_call_operand.vmem [shape: f32[384,32], index: 1, kind: input, shape index: {}]   ;;  %s5904_s2 = inlined_call_operand.vmem [shape: f32[30,32], index: 2, kind: input, shape index: {}]   ;;  %s5905_s3 = inlined_call_operand.hbm [shape: f32[2,8,8], index: 3, kind: output, shape index: {}]  }
   0x1   :  { %v18_v0 = vld [vmem:[%s5903_s1] sm:$0xff]  ;;  %v19_v1 = vld [vmem:[%s5903_s1 + $0x8] sm:$0xff]  ;;  %4468 = vmatprep.subr.bf16.mxu0 %v5061_v2  ;;  %4472 = vmatprep.mubr.msk.bf16.mxu0 %vm5062_vm1, %v5061_v2  ;;  %v20_v4 = vld [vmem:[%s5903_s1 + $0x10] sm:$0xff] }
   0x2   :  { %v23_v3 = vpack.c.bf16 %v19_v1, %v18_v0  ;;  %v21_v5 = vld [vmem:[%s5903_s1 + $0x18] sm:$0xff]  ;;  %4476 = vmatprep.subr.bf16.mxu1 %v5061_v2  ;;  %4480 = vmatprep.mubr.msk.bf16.mxu1 %vm5062_vm1, %v5061_v2 }
   0x3   :  { %8 = vsyncpa [#allocation3], 0  ;;  %v24_v7 = vpack.c.bf16 %v21_v5, %v20_v4  ;;  %v16_v9 = vld [vmem:[%s5902_s0] sm:$0xff]  ;;  %v17_v10 = vld [vmem:[%s5902_s0 + $0x8] sm:$0xff]  ;;  %vm305_vm2 = vcmask 64512   ;;  %vm369_vm3 = vcmask 1043456  }
   0x4   :  { %v35_v6 = vsel %vm30_vm0, %v23_v3, 0  ;;  %v22_v11 = vpack.c.bf16 %v17_v10, %v16_v9  ;;  %v83_v12 = vld [vmem:[%s5903_s1 + $0x20] sm:$0xff]  ;;  %v84_v13 = vld [vmem:[%s5903_s1 + $0x28] sm:$0xff]  ;;  %v85_v16 = vld [vmem:[%s5903_s1 + $0x30] sm:$0xff] }
   0x5   :  { %4469 = vmatpush3.bf16.xpose.msra.mxu0 %v35_v6  ;;  %v38_v8 = vsel %vm30_vm0, %v24_v7, 0  ;;  %v88_v14 = vpack.c.bf16 %v84_v13, %v83_v12  ;;  %v86_v17 = vld [vmem:[%s5903_s1 + $0x38] sm:$0xff]  ;;  %v4194_v20 = vld [vmem:[%s5904_s2] ss:$0 sm:$0xff]  ;;  %v4196_v37 = vld [vmem:[%s5904_s2 + $0x1] ss:$0 sm:$0xff] }
   0x6   :  { %4470 = vmatprep.subr.bf16.mxu0 %v5061_v2  ;;  %v89_v18 = vpack.c.bf16 %v86_v17, %v85_v16  ;;  %v145_v30 = vld [vmem:[%s5903_s1 + $0x40] sm:$0xff]  ;;  %v4202_v61 = vld [vmem:[%s5904_s2 + $0xa] ss:$0 sm:$0xff] }
   0x7   :  { %v99_v15 = vsel %vm30_vm0, %v88_v14, 0  ;;  %v200_v31 = vld [vmem:[%s5903_s1 + $0x60] sm:$0xff]  ;;  %v147_v32 = vpack.c.bf16 %v145_v30, %v145_v30  ;;  %v524_v9 = vld [vmem:[%s5903_s1 + $0x48] sm:$0xff] }
   0x8   :  { %4477 = vmatpush3.bf16.xpose.msra.mxu1 %v99_v15  ;;  %v102_v19 = vsel %vm30_vm0, %v89_v18, 0  ;;  %v201_v33 = vpack.c.bf16 %v200_v31, %v200_v31  ;;  %v251_v36 = vld [vmem:[%s5903_s1 + $0x80] sm:$0xff]  ;;  %v525_v13 = vpack.c.bf16 %v524_v9, %v524_v9  ;;  %v626_v16 = vld [vmem:[%s5903_s1 + $0x88] sm:$0xff] }
   0x9   :  { %4478 = vmatprep.subr.bf16.mxu1 %v5061_v2  ;;  %v157_v34 = vsel %vm30_vm0, %v147_v32, 0  ;;  %v252_v40 = vpack.c.bf16 %v251_v36, %v251_v36  ;;  %v4200_v47 = vld [vmem:[%s5904_s2 + $0x6] ss:$0 sm:$0xff]  ;;  %v4198_v58 = vld [vmem:[%s5904_s2 + $0x2] ss:$0 sm:$0xff]  ;;  %v627_v17 = vpack.c.bf16 %v626_v16, %v626_v16 }
   0xa   :  { %v208_v35 = vsel %vm30_vm0, %v201_v33, 0  ;;  %v532_v15 = vsel %vm30_vm0, %v525_v13, 0  ;;  %v5225_v33 = vld [vmem:[%s5904_s2 + $0x3] ss:$0 sm:$0xff] }
   0xb   :  { %v259_v46 = vsel %vm30_vm0, %v252_v40, 0  ;;  %v634_v18 = vsel %vm30_vm0, %v627_v17, 0  ;;  %v4210_v17 = vld [vmem:[%s5904_s2 + $0x7] ss:$0 sm:$0xff] }
   0xd   :  { %4471 = vmatpush3.bf16.xpose.msra.mxu0 %v38_v8 }
   0xe   :  { %4484 = vmatprep.subr.bf16.mxu0 %v5061_v2 }
  0x10   :  { %4479 = vmatpush3.bf16.xpose.msra.mxu1 %v102_v19 }
  0x11   :  { %4490 = vmatprep.subr.bf16.mxu1 %v5061_v2 }
  0x14   :  { %4473 = vmatmul.mubr.msk.bf16.vlgmr.msra.gmra.mrb[0].mxu0 %vm30_vm0, %v22_v11 }
  0x15   :  { %4486 = vmatprep.mubr.msk.bf16.mxu0 %vm5062_vm1, %v5061_v2  ;;  %4485 = vmatpush3.bf16.xpose.msra.mxu0 %v157_v34 }
  0x16   :  { %4496 = vmatprep.subr.bf16.mxu0 %v5061_v2 }
  0xe7   :  { %v74_v21 = vpop.f32.mrb[0].mxu0 }
  0xe8   :  { %v75_v22 = vadd.f32 %v4194_v20, %v74_v21  ;;  %v4474_v23 = vpop.f32.mrb[1].mxu0 }
  0xe9   :  { %v77_v24 = vpop.f32.mrb[2].mxu0 }
  0xea   :  { %v78_v25 = vadd.f32 %v4194_v20, %v77_v24  ;;  %v4475_v26 = vpop.f32.mrb[3].mxu0  ;;  %4969 = vtanh.f32 %v75_v22 }
  0xec   :  { %4971 = vtanh.f32 %v78_v25 }
  0xf4   :  { %v4970_v27 = vpop.eup %4969 }
  0xf6   :  { %v4972_v28 = vpop.eup %4971 }
  0xf7   :  { %v87_v29 = vpack.c.bf16 %v4972_v28, %v4970_v27 }
  0xf9   :  { %4481 = vmatmul.mubr.msk.bf16.vlgmr.msra.gmra.mrb[0].mxu1 %vm30_vm0, %v87_v29 }
  0xfa   :  { %4492 = vmatprep.mubr.msk.bf16.mxu1 %vm5062_vm1, %v5061_v2  ;;  %4491 = vmatpush3.bf16.xpose.msra.mxu1 %v208_v35 }
  0xfb   :  { %4502 = vmatprep.subr.bf16.mxu1 %v5061_v2 }
 0x1cc   :  { %v138_v38 = vpop.f32.mrb[0].mxu1 }
 0x1cd   :  { %v4482_v39 = vpop.f32.mrb[1].mxu1  ;;  %v5155_v42 = vadd.f32 %v4196_v37, %v138_v38 }
 0x1ce   :  { %v141_v41 = vpop.f32.mrb[2].mxu1 }
 0x1cf   :  { %v5157_v43 = vadd.f32 %v4196_v37, %v141_v41  ;;  %v4483_v44 = vpop.f32.mrb[3].mxu1  ;;  %v4212_v37 = vld [vmem:[%s5904_s2 + $0xb] ss:$0 sm:$0xff] }
 0x1d1   :  { %v5161_v45 = vpack.c.bf16 %v5157_v43, %v5155_v42 }
 0x1d3   :  { %4487 = vmatmul.mubr.msk.bf16.vlgmr.msra.gmra.mrb[4].mxu0 %vm30_vm0, %v5161_v45  ;;  %4493 = vmatmul.mubr.msk.bf16.vlgmr.msra.gmra.mrb[4].mxu1 %vm30_vm0, %v5161_v45 }
 0x1d4   :  { %4497 = vmatpush3.bf16.xpose.msra.mxu0 %v259_v46  ;;  %4498 = vmatprep.mubr.msk.bf16.mxu0 %vm5062_vm1, %v5061_v2 }
 0x1d5   :  { %4504 = vmatprep.mubr.msk.bf16.mxu1 %vm5062_vm1, %v5061_v2  ;;  %4508 = vmatprep.subr.bf16.mxu0 %v5061_v2 }
 0x1db   :  { %4499 = vmatmul.mubr.msk.bf16.vlgmr.msra.gmra.mrb[8].mxu0 %vm30_vm0, %v5161_v45 }
 0x1dc   :  { %4510 = vmatprep.mubr.msk.bf16.mxu0 %vm5062_vm1, %v5061_v2 }
 0x2a6   :  { %v193_v48 = vpop.f32.mrb[4].mxu0  ;;  %v244_v49 = vpop.f32.mrb[4].mxu1 }
 0x2a7   :  { %v245_v50 = vadd.f32 %v4200_v47, %v244_v49  ;;  %v4488_v51 = vpop.f32.mrb[5].mxu0  ;;  %v4494_v52 = vpop.f32.mrb[5].mxu1  ;;  %v194_v62 = vadd.f32 %v4198_v58, %v193_v48 }
 0x2a8   :  { %v196_v53 = vpop.f32.mrb[6].mxu0  ;;  %v247_v54 = vpop.f32.mrb[6].mxu1 }
 0x2a9   :  { %v304_v55 = vpack.c.bf16 %v245_v50, %v245_v50  ;;  %v4489_v56 = vpop.f32.mrb[7].mxu0  ;;  %v4495_v57 = vpop.f32.mrb[7].mxu1  ;;  %v248_v60 = vadd.f32 %v4200_v47, %v247_v54  ;;  %v303_v5 = vpack.c.bf16 %v194_v62, %v194_v62  ;;  %v197_v12 = vadd.f32 %v4198_v58, %v196_v53 }
 0x2ab   :  { %v310_v59 = vsel %vm305_vm2, %v304_v55, 0  ;;  %v416_v0 = vpack.c.bf16 %v248_v60, %v248_v60  ;;  %v415_v14 = vpack.c.bf16 %v197_v12, %v197_v12 }
 0x2ac   :  { %4503 = vmatpush3.bf16.xpose.msra.mxu1 %v310_v59 }
 0x2ad   :  { %4514 = vmatprep.subr.bf16.mxu1 %v5061_v2  ;;  %v421_v10 = vsel %vm305_vm2, %v416_v0, 0 }
 0x2ae   :  { %v295_v63 = vpop.f32.mrb[8].mxu0 }
 0x2af   :  { %v296_v1 = vadd.f32 %v4202_v61, %v295_v63  ;;  %v4500_v3 = vpop.f32.mrb[9].mxu0 }
 0x2b0   :  { %v298_v4 = vpop.f32.mrb[10].mxu0  ;;  %v575_v3 = vld [vmem:[%s5903_s1 + $0x68] sm:$0xff] }
 0x2b1   :  { %v365_v6 = vpack.c.bf16 %v296_v1, %v296_v1  ;;  %v5188_v7 = vadd.f32 %v4202_v61, %v298_v4  ;;  %v4501_v8 = vpop.f32.mrb[11].mxu0 }
 0x2b3   :  { %v371_v11 = vsel %vm369_vm3, %v365_v6, 0  ;;  %4505 = vmatmul.mubr.msk.bf16.vlgmr.msra.gmra.mrb[8].mxu1 %vm305_vm2, %v303_v5  ;;  %v476_v62 = vpack.c.bf16 %v5188_v7, %v5188_v7  ;;  %v576_v5 = vpack.c.bf16 %v575_v3, %v575_v3 }
 0x2b4   :  { %4509 = vmatpush3.bf16.msra.mxu0 %v371_v11  ;;  %4515 = vmatpush3.bf16.xpose.msra.mxu1 %v421_v10 }
 0x2b5   :  { %4516 = vmatprep.mubr.msk.bf16.mxu1 %vm5062_vm1, %v5061_v2  ;;  %4526 = vmatprep.subr.bf16.mxu1 %v5061_v2  ;;  %v481_v1 = vsel %vm369_vm3, %v476_v62, 0  ;;  %v583_v8 = vsel %vm30_vm0, %v576_v5, 0 }
 0x2b6   :  { %4520 = vmatprep.subr.bf16.mxu0 %v5061_v2 }
 0x2bb   :  { %4517 = vmatmul.mubr.msk.bf16.vlgmr.msra.gmra.mrb[12].mxu1 %vm305_vm2, %v415_v14 }
 0x2bc   :  { %4527 = vmatpush3.bf16.xpose.msra.mxu1 %v532_v15  ;;  %4528 = vmatprep.mubr.msk.bf16.mxu1 %vm5062_vm1, %v5061_v2 }
 0x2bd   :  { %4538 = vmatprep.subr.bf16.mxu1 %v5061_v2 }
 0x2c3   :  { %4529 = vmatmul.mubr.msk.bf16.vlgmr.msra.gmra.mrb[16].mxu1 %vm30_vm0, %v5161_v45 }
 0x2c4   :  { %4539 = vmatpush3.bf16.xpose.msra.mxu1 %v634_v18  ;;  %4540 = vmatprep.mubr.msk.bf16.mxu1 %vm5062_vm1, %v5061_v2 }
 0x2c5   :  { %4550 = vmatprep.subr.bf16.mxu1 %v5061_v2 }
 0x2cb   :  { %4541 = vmatmul.mubr.msk.bf16.vlgmr.msra.gmra.mrb[20].mxu1 %vm30_vm0, %v5161_v45 }
 0x2cc   :  { %4552 = vmatprep.mubr.msk.bf16.mxu1 %vm5062_vm1, %v5061_v2 }
 0x386   :  { %v346_v19 = vpop.f32.mrb[8].mxu1 }
 0x387   :  { %v352_v20 = vmul.f32 0.35355338, %v346_v19  ;;  %v4506_v21 = vpop.f32.mrb[9].mxu1 }
 0x388   :  { %v349_v22 = vpop.f32.mrb[10].mxu1 }
 0x389   :  { %v4507_v23 = vpop.f32.mrb[11].mxu1  ;;  %v353_v24 = vsel %vm305_vm2, %v352_v20, -inf }
 0x38a   :  { %354 = vmax.xlane.f32.xlu0 %v353_v24 }
 0x38e   :  { %v457_v25 = vpop.f32.mrb[12].mxu1 }
 0x38f   :  { %v463_v26 = vmul.f32 0.35355338, %v457_v25  ;;  %v4518_v27 = vpop.f32.mrb[13].mxu1 }
 0x390   :  { %v460_v28 = vpop.f32.mrb[14].mxu1 }
 0x391   :  { %v4519_v29 = vpop.f32.mrb[15].mxu1  ;;  %v464_v30 = vsel %vm305_vm2, %v463_v26, -inf }
 0x392   :  { %465 = vmax.xlane.f32.xlu0 %v464_v30 }
 0x396   :  { %v5220_v31 = vpop.f32.mrb[16].mxu1 }
 0x397   :  { %v4530_v32 = vpop.f32.mrb[17].mxu1 }
 0x398   :  { %v571_v34 = vpop.f32.mrb[18].mxu1 }
 0x399   :  { %v5228_v35 = vadd.f32 %v5225_v33, %v571_v34  ;;  %v4531_v36 = vpop.f32.mrb[19].mxu1 }
 0x39e   :  { %v670_v38 = vpop.f32.mrb[20].mxu1 }
 0x39f   :  { %v671_v39 = vadd.f32 %v4212_v37, %v670_v38  ;;  %v4542_v40 = vpop.f32.mrb[21].mxu1 }
 0x3a0   :  { %v673_v41 = vpop.f32.mrb[22].mxu1  ;;  %v677_v40 = vld [vmem:[%s5903_s1 + $0xa8] sm:$0xff] }
 0x3a1   :  { %v739_v44 = vpack.c.bf16 %v671_v39, %v671_v39  ;;  %v5233_v46 = vadd.f32 %v4212_v37, %v673_v41  ;;  %v4543_v47 = vpop.f32.mrb[23].mxu1  ;;  %v787_v41 = vpack.c.bf16 %v677_v40, %v677_v40 }
 0x3a3   :  { %v744_v48 = vsel %vm369_vm3, %v739_v44, 0  ;;  %v792_v44 = vsel %vm369_vm3, %v787_v41, 0 }
 0x3a4   :  { %4551 = vmatpush3.bf16.msra.mxu1 %v744_v48  ;;  %v302_v48 = vld [vmem:[%s5903_s1 + $0xa0] sm:$0xff] }
 0x3a5   :  { %4562 = vmatprep.subr.bf16.mxu1 %v5061_v2 }
 0x417   :  { %v355_v49 = vpop.xlane.xlu0 %354 }
 0x418   :  { %v356_v50 = vsub.f32 %v352_v20, %v355_v49  ;;  %v414_v49 = vpack.c.bf16 %v302_v48, %v302_v48  ;;  %v4224_v48 = vld [vmem:[%s5904_s2 + $0x8] ss:$0 sm:$0xff] }
 0x41a   :  { %v357_v51 = vmul.f32 1.442695, %v356_v50 }
 0x41c   :  { %4973 = vpow2.f32 %v357_v51 }
 0x41f   :  { %v466_v52 = vpop.xlane.xlu0 %465 }
 0x420   :  { %v467_v53 = vsub.f32 %v463_v26, %v466_v52  ;;  %v569_v26 = vadd.f32 %v5225_v33, %v5220_v31 }
 0x422   :  { %v468_v54 = vmul.f32 1.442695, %v467_v53  ;;  %v678_v27 = vpack.c.bf16 %v569_v26, %v569_v26  ;;  %v838_v53 = vsel %vm369_vm3, %v414_v49, 0 }
 0x424   :  { %4975 = vpow2.f32 %v468_v54  ;;  %v941_v54 = vpack.c.bf16 %v5233_v46, %v5233_v46 }
 0x426   :  { %v4974_v55 = vpop.eup %4973 }
 0x427   :  { %v359_v56 = vsel %vm305_vm2, %v4974_v55, 0.0 }
 0x428   :  { %360 = vadd.xlane.f32.xlu1 %v359_v56  ;;  %v946_v56 = vsel %vm369_vm3, %v941_v54, 0 }
 0x42e   :  { %v4976_v57 = vpop.eup %4975 }
 0x42f   :  { %v470_v58 = vsel %vm305_vm2, %v4976_v57, 0.0 }
 0x430   :  { %471 = vadd.xlane.f32.xlu1 %v470_v58 }
 0x4b5   :  { %v361_v59 = vpop.xlane.xlu1 %360 }
 0x4b6   :  { %4977 = vrcp.f32 %v361_v59 }
 0x4bd   :  { %v472_v60 = vpop.xlane.xlu1 %471 }
 0x4be   :  { %4979 = vrcp.f32 %v472_v60 }
 0x4c0   :  { %v4978_v61 = vpop.eup %4977 }
 0x4c1   :  { %v363_v63 = vmul.f32 %v4978_v61, %v4974_v55 }
 0x4c3   :  { %v364_v0 = vpack.c.bf16 %v363_v63, %v363_v63 }
 0x4c5   :  { %4511 = vmatmul.mubr.msk.bf16.vlgmr.msra.gmra.mrb[12].mxu0 %vm305_vm2, %v364_v0  ;;  %v880_v0 = vpack.c.bf16 %v5228_v35, %v5228_v35 }
 0x4c6   :  { %4521 = vmatpush3.bf16.msra.mxu0 %v481_v1  ;;  %4522 = vmatprep.mubr.msk.bf16.mxu0 %vm5062_vm1, %v5061_v2 }
 0x4c7   :  { %4532 = vmatprep.subr.bf16.mxu0 %v5061_v2 }
 0x4c8   :  { %v4980_v4 = vpop.eup %4979 }
 0x4c9   :  { %v474_v6 = vmul.f32 %v4980_v4, %v4976_v57 }
 0x4cb   :  { %v475_v7 = vpack.c.bf16 %v474_v6, %v474_v6 }
 0x4cd   :  { %4523 = vmatmul.mubr.msk.bf16.vlgmr.msra.gmra.mrb[16].mxu0 %vm305_vm2, %v475_v7 }
 0x4ce   :  { %4534 = vmatprep.mubr.msk.bf16.mxu0 %vm5062_vm1, %v5061_v2 }
 0x4cf   :  { %4533 = vmatpush3.bf16.xpose.msra.mxu0 %v583_v8 }
 0x4d0   :  { %4544 = vmatprep.subr.bf16.mxu0 %v5061_v2 }
 0x4d6   :  { %4535 = vmatmul.mubr.msk.bf16.vlgmr.msra.gmra.mrb[20].mxu0 %vm30_vm0, %v5161_v45 }
 0x4d7   :  { %4546 = vmatprep.mubr.msk.bf16.mxu0 %vm5062_vm1, %v5061_v2 }
 0x598   :  { %v407_v9 = vpop.f32.mrb[12].mxu0 }
 0x599   :  { %v4512_v10 = vpop.f32.mrb[13].mxu0  ;;  %v413_v55 = vpack.c.bf16 %v407_v9, %v407_v9 }
 0x59a   :  { %v410_v11 = vpop.f32.mrb[14].mxu0 }
 0x59b   :  { %v4513_v12 = vpop.f32.mrb[15].mxu0 }
 0x5a0   :  { %v5258_v13 = vpop.f32.mrb[16].mxu0 }
 0x5a1   :  { %v4524_v14 = vpop.f32.mrb[17].mxu0 }
 0x5a2   :  { %v520_v15 = vpop.f32.mrb[18].mxu0 }
 0x5a3   :  { %v4525_v16 = vpop.f32.mrb[19].mxu0 }
 0x5a9   :  { %v619_v18 = vpop.f32.mrb[20].mxu0 }
 0x5aa   :  { %v620_v19 = vadd.f32 %v4210_v17, %v619_v18  ;;  %v4536_v20 = vpop.f32.mrb[21].mxu0 }
 0x5ab   :  { %v622_v21 = vpop.f32.mrb[22].mxu0 }
 0x5ac   :  { %v679_v22 = vpack.c.bf16 %v620_v19, %v620_v19  ;;  %v623_v23 = vadd.f32 %v4210_v17, %v622_v21  ;;  %v4537_v24 = vpop.f32.mrb[23].mxu0 }
 0x5ae   :  { %v684_v25 = vsel %vm305_vm2, %v679_v22, 0  ;;  %v881_v57 = vpack.c.bf16 %v623_v23, %v623_v23 }
 0x5af   :  { %4545 = vmatpush3.bf16.xpose.msra.mxu0 %v684_v25  ;;  %v1126_v25 = vld [vmem:[%s5903_s1 + $0x70] sm:$0xff] }
 0x5b0   :  { %4556 = vmatprep.subr.bf16.mxu0 %v5061_v2  ;;  %v886_v62 = vsel %vm305_vm2, %v881_v57, 0  ;;  %v1127_v26 = vpack.c.bf16 %v1126_v25, %v1126_v25 }
 0x5b6   :  { %4547 = vmatmul.mubr.msk.bf16.vlgmr.msra.gmra.mrb[24].mxu0 %vm305_vm2, %v678_v27  ;;  %v523_v27 = vpack.c.bf16 %v5258_v13, %v5258_v13  ;;  %v1075_v13 = vld [vmem:[%s5903_s1 + $0x50] sm:$0xff] }
 0x5b7   :  { %4558 = vmatprep.mubr.msk.bf16.mxu0 %vm5062_vm1, %v5061_v2  ;;  %4557 = vmatpush3.bf16.msra.mxu0 %v792_v44 }
 0x5b8   :  { %4568 = vmatprep.subr.bf16.mxu0 %v5061_v2 }
 0x689   :  { %v720_v28 = vpop.f32.mrb[24].mxu0 }
 0x68a   :  { %v726_v29 = vmul.f32 0.35355338, %v720_v28  ;;  %v4548_v30 = vpop.f32.mrb[25].mxu0  ;;  %v1134_v28 = vsel %vm30_vm0, %v1127_v26, 0 }
 0x68b   :  { %v723_v32 = vpop.f32.mrb[26].mxu0 }
 0x68c   :  { %v4549_v34 = vpop.f32.mrb[27].mxu0  ;;  %v727_v36 = vsel %vm305_vm2, %v726_v29, -inf }
 0x68d   :  { %728 = vmax.xlane.f32.xlu0 %v727_v36 }
 0x71a   :  { %v729_v37 = vpop.xlane.xlu0 %728 }
 0x71b   :  { %v730_v38 = vsub.f32 %v726_v29, %v729_v37  ;;  %v1076_v29 = vpack.c.bf16 %v1075_v13, %v1075_v13 }
 0x71d   :  { %v731_v39 = vmul.f32 1.442695, %v730_v38  ;;  %v1083_v36 = vsel %vm30_vm0, %v1076_v29, 0  ;;  %v1177_v38 = vld [vmem:[%s5903_s1 + $0x90] sm:$0xff] }
 0x71f   :  { %4981 = vpow2.f32 %v731_v39 }
 0x729   :  { %v4982_v31 = vpop.eup %4981 }
 0x72a   :  { %v733_v33 = vsel %vm305_vm2, %v4982_v31, 0.0 }
 0x72b   :  { %734 = vadd.xlane.f32.xlu1 %v733_v33 }
 0x7b8   :  { %v735_v47 = vpop.xlane.xlu1 %734 }
 0x7b9   :  { %4983 = vrcp.f32 %v735_v47 }
 0x7c3   :  { %v4984_v50 = vpop.eup %4983 }
 0x7c4   :  { %v737_v51 = vmul.f32 %v4984_v50, %v4982_v31  ;;  %v1178_v31 = vpack.c.bf16 %v1177_v38, %v1177_v38 }
 0x7c6   :  { %v738_v52 = vpack.c.bf16 %v737_v51, %v737_v51  ;;  %v1185_v41 = vsel %vm30_vm0, %v1178_v31, 0 }
 0x7c8   :  { %4553 = vmatmul.mubr.msk.bf16.vlgmr.msra.gmra.mrb[24].mxu1 %vm305_vm2, %v738_v52 }
 0x7c9   :  { %4563 = vmatpush3.bf16.msra.mxu1 %v838_v53  ;;  %4564 = vmatprep.mubr.msk.bf16.mxu1 %vm5062_vm1, %v5061_v2 }
 0x7ca   :  { %4574 = vmatprep.subr.bf16.mxu1 %v5061_v2 }
 0x7d0   :  { %4565 = vmatmul.mubr.msk.bf16.vlgmr.msra.gmra.mrb[28].mxu1 %vm305_vm2, %v413_v55 }
 0x7d1   :  { %4575 = vmatpush3.bf16.msra.mxu1 %v946_v56  ;;  %4576 = vmatprep.mubr.msk.bf16.mxu1 %vm5062_vm1, %v5061_v2 }
 0x7d2   :  { %4586 = vmatprep.subr.bf16.mxu1 %v5061_v2 }
 0x89b   :  { %v780_v58 = vpop.f32.mrb[24].mxu1 }
 0x89c   :  { %v786_v59 = vpack.c.bf16 %v780_v58, %v780_v58  ;;  %v4554_v60 = vpop.f32.mrb[25].mxu1 }
 0x89d   :  { %v783_v61 = vpop.f32.mrb[26].mxu1 }
 0x89e   :  { %v4555_v63 = vpop.f32.mrb[27].mxu1  ;;  %4559 = vmatmul.mubr.msk.bf16.vlgmr.msra.gmra.mrb[28].mxu0 %vm305_vm2, %v786_v59 }
 0x89f   :  { %4569 = vmatpush3.bf16.xpose.msra.mxu0 %v886_v62  ;;  %4570 = vmatprep.mubr.msk.bf16.mxu0 %vm5062_vm1, %v5061_v2  ;;  %v4222_v62 = vld [vmem:[%s5904_s2 + $0x4] ss:$0 sm:$0xff] }
 0x8a0   :  { %4580 = vmatprep.subr.bf16.mxu0 %v5061_v2 }
 0x8a3   :  { %v874_v46 = vpop.f32.mrb[28].mxu1 }
 0x8a4   :  { %v4566_v1 = vpop.f32.mrb[29].mxu1 }
 0x8a5   :  { %v877_v3 = vpop.f32.mrb[30].mxu1 }
 0x8a6   :  { %v4567_v4 = vpop.f32.mrb[31].mxu1  ;;  %4571 = vmatmul.mubr.msk.bf16.vlgmr.msra.gmra.mrb[32].mxu0 %vm305_vm2, %v880_v0 }
 0x8a7   :  { %4581 = vmatpush3.bf16.msra.mxu0 %v792_v44  ;;  %4582 = vmatprep.mubr.msk.bf16.mxu0 %vm5062_vm1, %v5061_v2 }
 0x8a8   :  { %4592 = vmatprep.subr.bf16.mxu0 %v5061_v2 }
 0x971   :  { %v828_v5 = vpop.f32.mrb[28].mxu0 }
 0x972   :  { %v5303_v6 = vadd.f32 %v874_v46, %v828_v5  ;;  %v4560_v7 = vpop.f32.mrb[29].mxu0 }
 0x973   :  { %v831_v8 = vpop.f32.mrb[30].mxu0  ;;  %v4226_v7 = vld [vmem:[%s5904_s2 + $0xc] ss:$0 sm:$0xff] }
 0x974   :  { %v4561_v9 = vpop.f32.mrb[31].mxu0 }
 0x979   :  { %v922_v10 = vpop.f32.mrb[32].mxu0 }
 0x97a   :  { %v928_v11 = vmul.f32 0.35355338, %v922_v10  ;;  %v4572_v35 = vpop.f32.mrb[33].mxu0 }
 0x97b   :  { %v925_v12 = vpop.f32.mrb[34].mxu0 }
 0x97c   :  { %v4573_v14 = vpop.f32.mrb[35].mxu0  ;;  %v929_v15 = vsel %vm305_vm2, %v928_v11, -inf }
 0x97d   :  { %930 = vmax.xlane.f32.xlu0 %v929_v15 }
 0xa0a   :  { %v931_v16 = vpop.xlane.xlu0 %930 }
 0xa0b   :  { %v932_v17 = vsub.f32 %v928_v11, %v931_v16 }
 0xa0d   :  { %v933_v18 = vmul.f32 1.442695, %v932_v17 }
 0xa0f   :  { %4985 = vpow2.f32 %v933_v18 }
 0xa19   :  { %v4986_v19 = vpop.eup %4985 }
 0xa1a   :  { %v935_v20 = vsel %vm305_vm2, %v4986_v19, 0.0 }
 0xa1b   :  { %936 = vadd.xlane.f32.xlu1 %v935_v20 }
 0xaa8   :  { %v937_v21 = vpop.xlane.xlu1 %936 }
 0xaa9   :  { %4987 = vrcp.f32 %v937_v21 }
 0xab3   :  { %v4988_v22 = vpop.eup %4987 }
 0xab4   :  { %v939_v23 = vmul.f32 %v4988_v22, %v4986_v19 }
 0xab6   :  { %v940_v24 = vpack.c.bf16 %v939_v23, %v939_v23 }
 0xab8   :  { %4577 = vmatmul.mubr.msk.bf16.vlgmr.msra.gmra.mrb[32].mxu1 %vm305_vm2, %v940_v24 }
 0xab9   :  { %4587 = vmatpush3.bf16.msra.mxu1 %v838_v53  ;;  %4588 = vmatprep.mubr.msk.bf16.mxu1 %vm5062_vm1, %v5061_v2 }
 0xaba   :  { %4598 = vmatprep.subr.bf16.mxu1 %v5061_v2 }
 0xac0   :  { %4589 = vmatmul.mubr.msk.bf16.vlgmr.msra.gmra.mrb[36].mxu1 %vm305_vm2, %v523_v27  ;;  %v1228_v27 = vld [vmem:[%s5903_s1 + $0xb0] sm:$0xff] }
 0xac1   :  { %4600 = vmatprep.mubr.msk.bf16.mxu1 %vm5062_vm1, %v5061_v2 }
 0xac2   :  { %4599 = vmatpush3.bf16.xpose.msra.mxu1 %v1134_v28  ;;  %v1338_v28 = vpack.c.bf16 %v1228_v27, %v1228_v27 }
 0xac3   :  { %4610 = vmatprep.subr.bf16.mxu1 %v5061_v2 }
 0xac4   :  { %v1343_v13 = vsel %vm369_vm3, %v1338_v28, 0 }
 0xac9   :  { %4601 = vmatmul.mubr.msk.bf16.vlgmr.msra.gmra.mrb[40].mxu1 %vm30_vm0, %v5161_v45 }
 0xaca   :  { %4612 = vmatprep.mubr.msk.bf16.mxu1 %vm5062_vm1, %v5061_v2 }
 0xb8b   :  { %v982_v30 = vpop.f32.mrb[32].mxu1 }
 0xb8c   :  { %v988_v32 = vpack.c.bf16 %v982_v30, %v982_v30  ;;  %v4578_v34 = vpop.f32.mrb[33].mxu1 }
 0xb8d   :  { %v985_v37 = vpop.f32.mrb[34].mxu1 }
 0xb8e   :  { %v4579_v39 = vpop.f32.mrb[35].mxu1  ;;  %4583 = vmatmul.mubr.msk.bf16.vlgmr.msra.gmra.mrb[36].mxu0 %vm305_vm2, %v988_v32 }
 0xb8f   :  { %4593 = vmatpush3.bf16.xpose.msra.mxu0 %v1083_v36  ;;  %4594 = vmatprep.mubr.msk.bf16.mxu0 %vm5062_vm1, %v5061_v2 }
 0xb90   :  { %4604 = vmatprep.subr.bf16.mxu0 %v5061_v2 }
 0xb93   :  { %v1069_v33 = vpop.f32.mrb[36].mxu1 }
 0xb94   :  { %v4590_v40 = vpop.f32.mrb[37].mxu1 }
 0xb95   :  { %v1072_v44 = vpop.f32.mrb[38].mxu1 }
 0xb96   :  { %v4591_v47 = vpop.f32.mrb[39].mxu1  ;;  %4595 = vmatmul.mubr.msk.bf16.vlgmr.msra.gmra.mrb[40].mxu0 %vm30_vm0, %v5161_v45 }
 0xb97   :  { %4605 = vmatpush3.bf16.xpose.msra.mxu0 %v1185_v41  ;;  %4606 = vmatprep.mubr.msk.bf16.mxu0 %vm5062_vm1, %v5061_v2 }
 0xb98   :  { %4616 = vmatprep.subr.bf16.mxu0 %v5061_v2 }
 0xb9c   :  { %v1170_v49 = vpop.f32.mrb[40].mxu1 }
 0xb9d   :  { %v1171_v50 = vadd.f32 %v4224_v48, %v1170_v49  ;;  %v4602_v51 = vpop.f32.mrb[41].mxu1 }
 0xb9e   :  { %v1173_v52 = vpop.f32.mrb[42].mxu1  ;;  %4607 = vmatmul.mubr.msk.bf16.vlgmr.msra.gmra.mrb[44].mxu0 %vm30_vm0, %v5161_v45 }
 0xb9f   :  { %v1230_v53 = vpack.c.bf16 %v1171_v50, %v1171_v50  ;;  %v1174_v54 = vadd.f32 %v4224_v48, %v1173_v52  ;;  %v4603_v55 = vpop.f32.mrb[43].mxu1  ;;  %4618 = vmatprep.mubr.msk.bf16.mxu0 %vm5062_vm1, %v5061_v2 }
 0xba1   :  { %v1235_v56 = vsel %vm305_vm2, %v1230_v53, 0  ;;  %v1387_v32 = vpack.c.bf16 %v1174_v54, %v1174_v54 }
 0xba2   :  { %4611 = vmatpush3.bf16.xpose.msra.mxu1 %v1235_v56 }
 0xba3   :  { %4622 = vmatprep.subr.bf16.mxu1 %v5061_v2  ;;  %v1392_v37 = vsel %vm305_vm2, %v1387_v32, 0 }
 0xc61   :  { %v1026_v57 = vpop.f32.mrb[36].mxu0 }
 0xc62   :  { %v5351_v58 = vadd.f32 %v1069_v33, %v1026_v57  ;;  %v4584_v59 = vpop.f32.mrb[37].mxu0 }
 0xc63   :  { %v1029_v60 = vpop.f32.mrb[38].mxu0 }
 0xc64   :  { %v4585_v61 = vpop.f32.mrb[39].mxu0 }
 0xc69   :  { %v1119_v63 = vpop.f32.mrb[40].mxu0 }
 0xc6a   :  { %v1120_v46 = vadd.f32 %v4222_v62, %v1119_v63  ;;  %v4596_v0 = vpop.f32.mrb[41].mxu0 }
 0xc6b   :  { %v1122_v1 = vpop.f32.mrb[42].mxu0 }
 0xc6c   :  { %v1229_v3 = vpack.c.bf16 %v1120_v46, %v1120_v46  ;;  %v1123_v4 = vadd.f32 %v4222_v62, %v1122_v1  ;;  %v4597_v5 = vpop.f32.mrb[43].mxu0  ;;  %v1539_v1 = vld [vmem:[%s5903_s1 + $0x58] sm:$0xff] }
 0xc6e   :  { %4613 = vmatmul.mubr.msk.bf16.vlgmr.msra.gmra.mrb[44].mxu1 %vm305_vm2, %v1229_v3  ;;  %v1386_v38 = vpack.c.bf16 %v1123_v4, %v1123_v4  ;;  %v1540_v3 = vpack.c.bf16 %v1539_v1, %v1539_v1 }
 0xc6f   :  { %4624 = vmatprep.mubr.msk.bf16.mxu1 %vm5062_vm1, %v5061_v2  ;;  %4623 = vmatpush3.bf16.msra.mxu1 %v1343_v13 }
 0xc70   :  { %4634 = vmatprep.subr.bf16.mxu1 %v5061_v2 }
 0xc71   :  { %v1221_v8 = vpop.f32.mrb[44].mxu0 }
 0xc72   :  { %v1222_v9 = vadd.f32 %v4226_v7, %v1221_v8  ;;  %v4608_v10 = vpop.f32.mrb[45].mxu0  ;;  %v1547_v8 = vsel %vm30_vm0, %v1540_v3, 0 }
 0xc73   :  { %v1224_v11 = vpop.f32.mrb[46].mxu0 }
 0xc74   :  { %v1290_v35 = vpack.c.bf16 %v1222_v9, %v1222_v9  ;;  %v1225_v12 = vadd.f32 %v4226_v7, %v1224_v11  ;;  %v4609_v14 = vpop.f32.mrb[47].mxu0  ;;  %v1590_v11 = vld [vmem:[%s5903_s1 + $0x78] sm:$0xff] }
 0xc76   :  { %v1295_v15 = vsel %vm369_vm3, %v1290_v35, 0  ;;  %v1447_v39 = vpack.c.bf16 %v1225_v12, %v1225_v12  ;;  %v1591_v35 = vpack.c.bf16 %v1590_v11, %v1590_v11 }
 0xc77   :  { %4617 = vmatpush3.bf16.msra.mxu0 %v1295_v15 }
 0xc78   :  { %4628 = vmatprep.subr.bf16.mxu0 %v5061_v2  ;;  %v1452_v44 = vsel %vm369_vm3, %v1447_v39, 0 }
 0xd41   :  { %v1271_v16 = vpop.f32.mrb[44].mxu1 }
 0xd42   :  { %v1277_v17 = vmul.f32 0.35355338, %v1271_v16  ;;  %v4614_v18 = vpop.f32.mrb[45].mxu1  ;;  %v1598_v16 = vsel %vm30_vm0, %v1591_v35, 0 }
 0xd43   :  { %v1274_v19 = vpop.f32.mrb[46].mxu1 }
 0xd44   :  { %v4615_v20 = vpop.f32.mrb[47].mxu1  ;;  %v1278_v21 = vsel %vm305_vm2, %v1277_v17, -inf }
 0xd45   :  { %1279 = vmax.xlane.f32.xlu0 %v1278_v21  ;;  %v4234_v21 = vld [vmem:[%s5904_s2 + $0x5] ss:$0 sm:$0xff] }
 0xdd2   :  { %v1280_v22 = vpop.xlane.xlu0 %1279 }
 0xdd3   :  { %v1281_v23 = vsub.f32 %v1277_v17, %v1280_v22 }
 0xdd5   :  { %v1282_v24 = vmul.f32 1.442695, %v1281_v23 }
 0xdd7   :  { %4989 = vpow2.f32 %v1282_v24 }
 0xde1   :  { %v4990_v25 = vpop.eup %4989 }
 0xde2   :  { %v1284_v26 = vsel %vm305_vm2, %v4990_v25, 0.0 }
 0xde3   :  { %1285 = vadd.xlane.f32.xlu1 %v1284_v26 }
 0xe70   :  { %v1286_v29 = vpop.xlane.xlu1 %1285 }
 0xe71   :  { %4991 = vrcp.f32 %v1286_v29 }
 0xe7b   :  { %v4992_v30 = vpop.eup %4991 }
 0xe7c   :  { %v1288_v34 = vmul.f32 %v4992_v30, %v4990_v25  ;;  %v4238_v25 = vld [vmem:[%s5904_s2 + $0xd] ss:$0 sm:$0xff] }
 0xe7e   :  { %v1289_v36 = vpack.c.bf16 %v1288_v34, %v1288_v34 }
 0xe80   :  { %4619 = vmatmul.mubr.msk.bf16.vlgmr.msra.gmra.mrb[48].mxu0 %vm305_vm2, %v1289_v36 }
 0xe81   :  { %4629 = vmatpush3.bf16.xpose.msra.mxu0 %v1392_v37  ;;  %4630 = vmatprep.mubr.msk.bf16.mxu0 %vm5062_vm1, %v5061_v2 }
 0xe82   :  { %4640 = vmatprep.subr.bf16.mxu0 %v5061_v2 }
 0xe88   :  { %4631 = vmatmul.mubr.msk.bf16.vlgmr.msra.gmra.mrb[52].mxu0 %vm305_vm2, %v1386_v38 }
 0xe89   :  { %4641 = vmatpush3.bf16.msra.mxu0 %v1343_v13  ;;  %4642 = vmatprep.mubr.msk.bf16.mxu0 %vm5062_vm1, %v5061_v2 }
 0xe8a   :  { %4652 = vmatprep.subr.bf16.mxu0 %v5061_v2 }
 0xf53   :  { %v1331_v31 = vpop.f32.mrb[48].mxu0 }
 0xf54   :  { %v1337_v33 = vpack.c.bf16 %v1331_v31, %v1331_v31  ;;  %v4620_v40 = vpop.f32.mrb[49].mxu0  ;;  %v4236_v31 = vld [vmem:[%s5904_s2 + $0x9] ss:$0 sm:$0xff] }
 0xf55   :  { %v1334_v41 = vpop.f32.mrb[50].mxu0 }
 0xf56   :  { %v4621_v47 = vpop.f32.mrb[51].mxu0  ;;  %4625 = vmatmul.mubr.msk.bf16.vlgmr.msra.gmra.mrb[48].mxu1 %vm305_vm2, %v1337_v33 }
 0xf57   :  { %4635 = vmatpush3.bf16.msra.mxu1 %v1452_v44  ;;  %4636 = vmatprep.mubr.msk.bf16.mxu1 %vm5062_vm1, %v5061_v2 }
 0xf58   :  { %4646 = vmatprep.subr.bf16.mxu1 %v5061_v2 }
 0xf5b   :  { %v1428_v48 = vpop.f32.mrb[52].mxu0 }
 0xf5c   :  { %v1434_v49 = vmul.f32 0.35355338, %v1428_v48  ;;  %v4632_v50 = vpop.f32.mrb[53].mxu0 }
 0xf5d   :  { %v1431_v51 = vpop.f32.mrb[54].mxu0 }
 0xf5e   :  { %v4633_v52 = vpop.f32.mrb[55].mxu0  ;;  %v1435_v53 = vsel %vm305_vm2, %v1434_v49, -inf }
 0xf5f   :  { %1436 = vmax.xlane.f32.xlu0 %v1435_v53 }
 0xfec   :  { %v1437_v54 = vpop.xlane.xlu0 %1436 }
 0xfed   :  { %v1438_v55 = vsub.f32 %v1434_v49, %v1437_v54 }
 0xfef   :  { %v1439_v56 = vmul.f32 1.442695, %v1438_v55 }
 0xff1   :  { %4993 = vpow2.f32 %v1439_v56 }
 0xffb   :  { %v4994_v57 = vpop.eup %4993 }
 0xffc   :  { %v1441_v59 = vsel %vm305_vm2, %v4994_v57, 0.0 }
 0xffd   :  { %1442 = vadd.xlane.f32.xlu1 %v1441_v59 }
0x1029   :  { %v1379_v60 = vpop.f32.mrb[48].mxu1 }
0x102a   :  { %v5388_v61 = vadd.f32 %v1379_v60, %v5303_v6  ;;  %v4626_v62 = vpop.f32.mrb[49].mxu1  ;;  %v1641_v6 = vld [vmem:[%s5903_s1 + $0x98] sm:$0xff] }
0x102b   :  { %v1382_v63 = vpop.f32.mrb[50].mxu1  ;;  %v1642_v9 = vpack.c.bf16 %v1641_v6, %v1641_v6 }
0x102c   :  { %v4627_v46 = vpop.f32.mrb[51].mxu1 }
0x102d   :  { %v1649_v10 = vsel %vm30_vm0, %v1642_v9, 0 }
0x108a   :  { %v1443_v0 = vpop.xlane.xlu1 %1442 }
0x108b   :  { %4995 = vrcp.f32 %v1443_v0  ;;  %v1692_v0 = vld [vmem:[%s5903_s1 + $0xb8] sm:$0xff] }
0x108c   :  { %v1802_v1 = vpack.c.bf16 %v1692_v0, %v1692_v0 }
0x108e   :  { %v1807_v3 = vsel %vm369_vm3, %v1802_v1, 0 }
0x1095   :  { %v4996_v4 = vpop.eup %4995 }
0x1096   :  { %v1445_v5 = vmul.f32 %v4996_v4, %v4994_v57 }
0x1098   :  { %v1446_v7 = vpack.c.bf16 %v1445_v5, %v1445_v5 }
0x109a   :  { %4637 = vmatmul.mubr.msk.bf16.vlgmr.msra.gmra.mrb[52].mxu1 %vm305_vm2, %v1446_v7 }
0x109b   :  { %4647 = vmatpush3.bf16.xpose.msra.mxu1 %v1547_v8  ;;  %4648 = vmatprep.mubr.msk.bf16.mxu1 %vm5062_vm1, %v5061_v2 }
0x109c   :  { %4658 = vmatprep.subr.bf16.mxu1 %v5061_v2 }
0x10a2   :  { %4649 = vmatmul.mubr.msk.bf16.vlgmr.msra.gmra.mrb[56].mxu1 %vm30_vm0, %v5161_v45 }
0x10a3   :  { %4659 = vmatpush3.bf16.xpose.msra.mxu1 %v1649_v10  ;;  %4660 = vmatprep.mubr.msk.bf16.mxu1 %vm5062_vm1, %v5061_v2 }
0x10a4   :  { %4670 = vmatprep.subr.bf16.mxu1 %v5061_v2 }
0x10aa   :  { %4661 = vmatmul.mubr.msk.bf16.vlgmr.msra.gmra.mrb[60].mxu1 %vm30_vm0, %v5161_v45 }
0x10ab   :  { %4672 = vmatprep.mubr.msk.bf16.mxu1 %vm5062_vm1, %v5061_v2 }
0x116d   :  { %v1488_v12 = vpop.f32.mrb[52].mxu1 }
0x116e   :  { %v1494_v14 = vpack.c.bf16 %v1488_v12, %v1488_v12  ;;  %v4638_v15 = vpop.f32.mrb[53].mxu1 }
0x116f   :  { %v1491_v17 = vpop.f32.mrb[54].mxu1 }
0x1170   :  { %v4639_v18 = vpop.f32.mrb[55].mxu1  ;;  %4643 = vmatmul.mubr.msk.bf16.vlgmr.msra.gmra.mrb[56].mxu0 %vm305_vm2, %v1494_v14 }
0x1171   :  { %4653 = vmatpush3.bf16.xpose.msra.mxu0 %v1598_v16  ;;  %4654 = vmatprep.mubr.msk.bf16.mxu0 %vm5062_vm1, %v5061_v2 }
0x1172   :  { %4664 = vmatprep.subr.bf16.mxu0 %v5061_v2 }
0x1175   :  { %v1583_v19 = vpop.f32.mrb[56].mxu1 }
0x1176   :  { %v4650_v20 = vpop.f32.mrb[57].mxu1  ;;  %v1584_v51 = vadd.f32 %v4234_v21, %v1583_v19 }
0x1177   :  { %v1586_v22 = vpop.f32.mrb[58].mxu1 }
0x1178   :  { %v5422_v23 = vadd.f32 %v4234_v21, %v1586_v22  ;;  %v4651_v24 = vpop.f32.mrb[59].mxu1  ;;  %4655 = vmatmul.mubr.msk.bf16.vlgmr.msra.gmra.mrb[60].mxu0 %vm30_vm0, %v5161_v45 }
0x1179   :  { %4666 = vmatprep.mubr.msk.bf16.mxu0 %vm5062_vm1, %v5061_v2 }
0x117a   :  { %v1850_v10 = vpack.c.bf16 %v5422_v23, %v5422_v23 }
0x117d   :  { %v1685_v26 = vpop.f32.mrb[60].mxu1 }
0x117e   :  { %v1686_v27 = vadd.f32 %v4238_v25, %v1685_v26  ;;  %v4662_v28 = vpop.f32.mrb[61].mxu1 }
0x117f   :  { %v1688_v13 = vpop.f32.mrb[62].mxu1 }
0x1180   :  { %v1754_v29 = vpack.c.bf16 %v1686_v27, %v1686_v27  ;;  %v5431_v30 = vadd.f32 %v4238_v25, %v1688_v13  ;;  %v4663_v32 = vpop.f32.mrb[63].mxu1 }
0x1182   :  { %v1759_v34 = vsel %vm369_vm3, %v1754_v29, 0  ;;  %v1911_v11 = vpack.c.bf16 %v5431_v30, %v5431_v30 }
0x1183   :  { %4671 = vmatpush3.bf16.msra.mxu1 %v1759_v34 }
0x1184   :  { %4682 = vmatprep.subr.bf16.mxu1 %v5061_v2  ;;  %v1916_v16 = vsel %vm369_vm3, %v1911_v11, 0  ;;  %v4247_v11 = vld [vmem:[%s5904_s2 + $0xf] ss:$0 sm:$0xff] }
0x1243   :  { %v1532_v45 = vpop.f32.mrb[56].mxu0 }
0x1244   :  { %v5436_v36 = vadd.f32 %v1532_v45, %v5351_v58  ;;  %v4644_v37 = vpop.f32.mrb[57].mxu0  ;;  %v1693_v58 = vpack.c.bf16 %v1584_v51, %v1584_v51 }
0x1245   :  { %v1535_v38 = vpop.f32.mrb[58].mxu0 }
0x1246   :  { %v4645_v39 = vpop.f32.mrb[59].mxu0 }
0x124b   :  { %v1634_v33 = vpop.f32.mrb[60].mxu0 }
0x124c   :  { %v1635_v40 = vadd.f32 %v4236_v31, %v1634_v33  ;;  %v4656_v41 = vpop.f32.mrb[61].mxu0 }
0x124d   :  { %v1637_v44 = vpop.f32.mrb[62].mxu0 }
0x124e   :  { %v1694_v47 = vpack.c.bf16 %v1635_v40, %v1635_v40  ;;  %v1638_v48 = vadd.f32 %v4236_v31, %v1637_v44  ;;  %v4657_v49 = vpop.f32.mrb[63].mxu0 }
0x1250   :  { %v1699_v50 = vsel %vm305_vm2, %v1694_v47, 0  ;;  %v1851_v7 = vpack.c.bf16 %v1638_v48, %v1638_v48  ;;  %v2067_v47 = vld [vmem:[%s5903_s1 + $0xe0] sm:$0xff] }
0x1251   :  { %4665 = vmatpush3.bf16.xpose.msra.mxu0 %v1699_v50  ;;  %v2068_v49 = vpack.c.bf16 %v2067_v47, %v2067_v47 }
0x1252   :  { %4676 = vmatprep.subr.bf16.mxu0 %v5061_v2  ;;  %v1856_v9 = vsel %vm305_vm2, %v1851_v7, 0 }
0x1253   :  { %v2075_v51 = vsel %vm30_vm0, %v2068_v49, 0 }
0x1258   :  { %4667 = vmatmul.mubr.msk.bf16.vlgmr.msra.gmra.mrb[64].mxu0 %vm305_vm2, %v1693_v58  ;;  %v4246_v58 = vld [vmem:[%s5904_s2 + $0xe] ss:$0 sm:$0xff] }
0x1259   :  { %4678 = vmatprep.mubr.msk.bf16.mxu0 %vm5062_vm1, %v5061_v2  ;;  %4677 = vmatpush3.bf16.msra.mxu0 %v1807_v3 }
0x125a   :  { %4688 = vmatprep.subr.bf16.mxu0 %v5061_v2 }
0x132b   :  { %v1735_v52 = vpop.f32.mrb[64].mxu0 }
0x132c   :  { %v1741_v53 = vmul.f32 0.35355338, %v1735_v52  ;;  %v4668_v54 = vpop.f32.mrb[65].mxu0 }
0x132d   :  { %v1738_v55 = vpop.f32.mrb[66].mxu0 }
0x132e   :  { %v4669_v56 = vpop.f32.mrb[67].mxu0  ;;  %v1742_v57 = vsel %vm305_vm2, %v1741_v53, -inf }
0x132f   :  { %1743 = vmax.xlane.f32.xlu0 %v1742_v57 }
0x13bc   :  { %v1744_v59 = vpop.xlane.xlu0 %1743 }
0x13bd   :  { %v1745_v60 = vsub.f32 %v1741_v53, %v1744_v59  ;;  %v2118_v53 = vld [vmem:[%s5903_s1 + $0x100] sm:$0xff] }
0x13bf   :  { %v1746_v62 = vmul.f32 1.442695, %v1745_v60 }
0x13c1   :  { %4997 = vpow2.f32 %v1746_v62  ;;  %v2119_v62 = vpack.c.bf16 %v2118_v53, %v2118_v53 }
0x13c3   :  { %v2126_v1 = vsel %vm30_vm0, %v2119_v62, 0 }
0x13cb   :  { %v4998_v63 = vpop.eup %4997 }
0x13cc   :  { %v1748_v46 = vsel %vm305_vm2, %v4998_v63, 0.0 }
0x13cd   :  { %1749 = vadd.xlane.f32.xlu1 %v1748_v46 }
0x145a   :  { %v1750_v4 = vpop.xlane.xlu1 %1749 }
0x145b   :  { %4999 = vrcp.f32 %v1750_v4 }
0x1465   :  { %v5000_v5 = vpop.eup %4999 }
0x1466   :  { %v1752_v8 = vmul.f32 %v5000_v5, %v4998_v63 }
0x1468   :  { %v1753_v6 = vpack.c.bf16 %v1752_v8, %v1752_v8 }
0x146a   :  { %4673 = vmatmul.mubr.msk.bf16.vlgmr.msra.gmra.mrb[64].mxu1 %vm305_vm2, %v1753_v6 }
0x146b   :  { %4683 = vmatpush3.bf16.xpose.msra.mxu1 %v1856_v9  ;;  %4684 = vmatprep.mubr.msk.bf16.mxu1 %vm5062_vm1, %v5061_v2 }
0x146c   :  { %4694 = vmatprep.subr.bf16.mxu1 %v5061_v2 }
0x1472   :  { %4685 = vmatmul.mubr.msk.bf16.vlgmr.msra.gmra.mrb[68].mxu1 %vm305_vm2, %v1850_v10 }
0x1473   :  { %4695 = vmatpush3.bf16.msra.mxu1 %v1807_v3  ;;  %4696 = vmatprep.mubr.msk.bf16.mxu1 %vm5062_vm1, %v5061_v2 }
0x1474   :  { %4706 = vmatprep.subr.bf16.mxu1 %v5061_v2 }
0x153d   :  { %v1795_v35 = vpop.f32.mrb[64].mxu1 }
0x153e   :  { %v1801_v12 = vpack.c.bf16 %v1795_v35, %v1795_v35  ;;  %v4674_v14 = vpop.f32.mrb[65].mxu1 }
0x153f   :  { %v1798_v15 = vpop.f32.mrb[66].mxu1  ;;  %v4251_v14 = vld [vmem:[%s5904_s2 + $0x17] ss:$0 sm:$0xff] }
0x1540   :  { %v4675_v17 = vpop.f32.mrb[67].mxu1  ;;  %4679 = vmatmul.mubr.msk.bf16.vlgmr.msra.gmra.mrb[68].mxu0 %vm305_vm2, %v1801_v12 }
0x1541   :  { %4689 = vmatpush3.bf16.msra.mxu0 %v1916_v16  ;;  %4690 = vmatprep.mubr.msk.bf16.mxu0 %vm5062_vm1, %v5061_v2 }
0x1542   :  { %4700 = vmatprep.subr.bf16.mxu0 %v5061_v2 }
0x1545   :  { %v1892_v18 = vpop.f32.mrb[68].mxu1 }
0x1546   :  { %v1898_v19 = vmul.f32 0.35355338, %v1892_v18  ;;  %v4686_v20 = vpop.f32.mrb[69].mxu1 }
0x1547   :  { %v1895_v21 = vpop.f32.mrb[70].mxu1 }
0x1548   :  { %v4687_v22 = vpop.f32.mrb[71].mxu1  ;;  %v1899_v23 = vsel %vm305_vm2, %v1898_v19, -inf }
0x1549   :  { %1900 = vmax.xlane.f32.xlu0 %v1899_v23 }
0x15d6   :  { %v1901_v24 = vpop.xlane.xlu0 %1900 }
0x15d7   :  { %v1902_v25 = vsub.f32 %v1898_v19, %v1901_v24 }
0x15d9   :  { %v1903_v26 = vmul.f32 1.442695, %v1902_v25  ;;  %v2389_v25 = vld [vmem:[%s5903_s1 + $0xc8] sm:$0xff] }
0x15db   :  { %5001 = vpow2.f32 %v1903_v26 }
0x15e5   :  { %v5002_v27 = vpop.eup %5001 }
0x15e6   :  { %v1905_v28 = vsel %vm305_vm2, %v5002_v27, 0.0 }
0x15e7   :  { %1906 = vadd.xlane.f32.xlu1 %v1905_v28 }
0x1613   :  { %v1843_v13 = vpop.f32.mrb[68].mxu0 }
0x1614   :  { %v1849_v29 = vadd.f32 %v1843_v13, %v5388_v61  ;;  %v4680_v30 = vpop.f32.mrb[69].mxu0  ;;  %v2012_v61 = vld [vmem:[%s5903_s1 + $0xc0] sm:$0xff]  ;;  %v2390_v13 = vpack.c.bf16 %v2389_v25, %v2389_v25 }
0x1615   :  { %v1846_v32 = vpop.f32.mrb[70].mxu0  ;;  %v2014_v48 = vpack.c.bf16 %v2012_v61, %v2012_v61 }
0x1616   :  { %v4681_v34 = vpop.f32.mrb[71].mxu0  ;;  %v2008_v54 = vadd.f32 %v4246_v58, %v1849_v29  ;;  %v2397_v30 = vsel %vm30_vm0, %v2390_v13, 0  ;;  %v2491_v32 = vld [vmem:[%s5903_s1 + $0x108] sm:$0xff] }
0x1617   :  { %v2024_v50 = vsel %vm30_vm0, %v2014_v48, 0  ;;  %v2492_v34 = vpack.c.bf16 %v2491_v32, %v2491_v32 }
0x1618   :  { %v5498_v63 = vadd.f32 %v2008_v54, %v5155_v42  ;;  %v4249_v42 = vld [vmem:[%s5904_s2 + $0x13] ss:$0 sm:$0xff] }
0x1674   :  { %v1907_v45 = vpop.xlane.xlu1 %1906 }
0x1675   :  { %5003 = vrcp.f32 %v1907_v45  ;;  %v2499_v45 = vsel %vm30_vm0, %v2492_v34, 0  ;;  %v4259_v34 = vld [vmem:[%s5904_s2 + $0x14] ss:$0 sm:$0xff] }
0x167f   :  { %v5004_v37 = vpop.eup %5003 }
0x1680   :  { %v1909_v38 = vmul.f32 %v5004_v37, %v5002_v27 }
0x1682   :  { %v1910_v39 = vpack.c.bf16 %v1909_v38, %v1909_v38 }
0x1684   :  { %4691 = vmatmul.mubr.msk.bf16.vlgmr.msra.gmra.mrb[72].mxu0 %vm305_vm2, %v1910_v39 }
0x1685   :  { %4702 = vmatprep.mubr.msk.bf16.mxu0 %vm5062_vm1, %v5061_v2  ;;  %4701 = vmatpush3.bf16.xpose.msra.mxu0 %v2024_v50 }
0x1686   :  { %4712 = vmatprep.subr.bf16.mxu0 %v5061_v2 }
0x1757   :  { %v1952_v31 = vpop.f32.mrb[72].mxu0 }
0x1758   :  { %v1958_v33 = vpack.c.bf16 %v1952_v31, %v1952_v31  ;;  %v4692_v40 = vpop.f32.mrb[73].mxu0 }
0x1759   :  { %v1955_v41 = vpop.f32.mrb[74].mxu0 }
0x175a   :  { %v4693_v44 = vpop.f32.mrb[75].mxu0  ;;  %4697 = vmatmul.mubr.msk.bf16.vlgmr.msra.gmra.mrb[72].mxu1 %vm305_vm2, %v1958_v33 }
0x175b   :  { %4708 = vmatprep.mubr.msk.bf16.mxu1 %vm5062_vm1, %v5061_v2  ;;  %4707 = vmatpush3.bf16.xpose.msra.mxu1 %v2075_v51 }
0x175c   :  { %4718 = vmatprep.subr.bf16.mxu1 %v5061_v2 }
0x182d   :  { %v1996_v52 = vpop.f32.mrb[72].mxu1 }
0x182e   :  { %v2002_v55 = vadd.f32 %v1996_v52, %v5436_v36  ;;  %v4698_v56 = vpop.f32.mrb[73].mxu1 }
0x182f   :  { %v1999_v57 = vpop.f32.mrb[74].mxu1 }
0x1830   :  { %v2009_v59 = vadd.f32 %v4246_v58, %v2002_v55  ;;  %v4699_v60 = vpop.f32.mrb[75].mxu1  ;;  %v5569_v58 = vld [vmem:[%s5904_s2 + $0x10] ss:$0 sm:$0xff]  ;;  %v4261_v55 = vld [vmem:[%s5904_s2 + $0x18] ss:$0 sm:$0xff] }
0x1832   :  { %v5501_v46 = vadd.f32 %v2009_v59, %v5157_v43 }
0x1834   :  { %v5505_v0 = vpack.c.bf16 %v5501_v46, %v5498_v63 }
0x1836   :  { %4703 = vmatmul.mubr.msk.bf16.vlgmr.msra.gmra.mrb[76].mxu0 %vm30_vm0, %v5505_v0  ;;  %4709 = vmatmul.mubr.msk.bf16.vlgmr.msra.gmra.mrb[76].mxu1 %vm30_vm0, %v5505_v0 }
0x1837   :  { %4713 = vmatpush3.bf16.xpose.msra.mxu0 %v2126_v1  ;;  %4714 = vmatprep.mubr.msk.bf16.mxu0 %vm5062_vm1, %v5061_v2 }
0x1838   :  { %4720 = vmatprep.mubr.msk.bf16.mxu1 %vm5062_vm1, %v5061_v2  ;;  %4724 = vmatprep.subr.bf16.mxu0 %v5061_v2 }
0x183e   :  { %4715 = vmatmul.mubr.msk.bf16.vlgmr.msra.gmra.mrb[80].mxu0 %vm30_vm0, %v5505_v0 }
0x183f   :  { %4726 = vmatprep.mubr.msk.bf16.mxu0 %vm5062_vm1, %v5061_v2 }
0x1909   :  { %v2060_v43 = vpop.f32.mrb[76].mxu0  ;;  %v2111_v36 = vpop.f32.mrb[76].mxu1 }
0x190a   :  { %v2112_v3 = vadd.f32 %v4249_v42, %v2111_v36  ;;  %v4704_v4 = vpop.f32.mrb[77].mxu0  ;;  %v4710_v5 = vpop.f32.mrb[77].mxu1  ;;  %v2061_v15 = vadd.f32 %v4247_v11, %v2060_v43 }
0x190b   :  { %v2063_v7 = vpop.f32.mrb[78].mxu0  ;;  %v2114_v8 = vpop.f32.mrb[78].mxu1 }
0x190c   :  { %v2171_v6 = vpack.c.bf16 %v2112_v3, %v2112_v3  ;;  %v4705_v9 = vpop.f32.mrb[79].mxu0  ;;  %v4711_v10 = vpop.f32.mrb[79].mxu1  ;;  %v2115_v12 = vadd.f32 %v4249_v42, %v2114_v8  ;;  %v2170_v21 = vpack.c.bf16 %v2061_v15, %v2061_v15  ;;  %v2064_v28 = vadd.f32 %v4247_v11, %v2063_v7 }
0x190e   :  { %v2176_v35 = vsel %vm305_vm2, %v2171_v6, 0  ;;  %v2281_v17 = vpack.c.bf16 %v2115_v12, %v2115_v12  ;;  %v2280_v29 = vpack.c.bf16 %v2064_v28, %v2064_v28 }
0x190f   :  { %4719 = vmatpush3.bf16.xpose.msra.mxu1 %v2176_v35 }
0x1910   :  { %4730 = vmatprep.subr.bf16.mxu1 %v5061_v2  ;;  %v2286_v26 = vsel %vm305_vm2, %v2281_v17, 0 }
0x1911   :  { %v2162_v16 = vpop.f32.mrb[80].mxu0 }
0x1912   :  { %v2163_v18 = vadd.f32 %v4251_v14, %v2162_v16  ;;  %v4716_v19 = vpop.f32.mrb[81].mxu0 }
0x1913   :  { %v2165_v20 = vpop.f32.mrb[82].mxu0  ;;  %v2440_v19 = vld [vmem:[%s5903_s1 + $0xe8] sm:$0xff] }
0x1914   :  { %v2231_v22 = vpack.c.bf16 %v2163_v18, %v2163_v18  ;;  %v5532_v23 = vadd.f32 %v4251_v14, %v2165_v20  ;;  %v4717_v24 = vpop.f32.mrb[83].mxu0 }
0x1916   :  { %v2236_v27 = vsel %vm369_vm3, %v2231_v22, 0  ;;  %4721 = vmatmul.mubr.msk.bf16.vlgmr.msra.gmra.mrb[80].mxu1 %vm305_vm2, %v2170_v21  ;;  %v2341_v15 = vpack.c.bf16 %v5532_v23, %v5532_v23  ;;  %v2441_v21 = vpack.c.bf16 %v2440_v19, %v2440_v19 }
0x1917   :  { %4725 = vmatpush3.bf16.msra.mxu0 %v2236_v27  ;;  %4731 = vmatpush3.bf16.xpose.msra.mxu1 %v2286_v26 }
0x1918   :  { %4732 = vmatprep.mubr.msk.bf16.mxu1 %vm5062_vm1, %v5061_v2  ;;  %4742 = vmatprep.subr.bf16.mxu1 %v5061_v2  ;;  %v2346_v18 = vsel %vm369_vm3, %v2341_v15, 0  ;;  %v2448_v24 = vsel %vm30_vm0, %v2441_v21, 0 }
0x1919   :  { %4736 = vmatprep.subr.bf16.mxu0 %v5061_v2 }
0x191e   :  { %4733 = vmatmul.mubr.msk.bf16.vlgmr.msra.gmra.mrb[84].mxu1 %vm305_vm2, %v2280_v29 }
0x191f   :  { %4743 = vmatpush3.bf16.xpose.msra.mxu1 %v2397_v30  ;;  %4744 = vmatprep.mubr.msk.bf16.mxu1 %vm5062_vm1, %v5061_v2 }
0x1920   :  { %4754 = vmatprep.subr.bf16.mxu1 %v5061_v2 }
0x1926   :  { %4745 = vmatmul.mubr.msk.bf16.vlgmr.msra.gmra.mrb[88].mxu1 %vm30_vm0, %v5505_v0 }
0x1927   :  { %4755 = vmatpush3.bf16.xpose.msra.mxu1 %v2499_v45  ;;  %4756 = vmatprep.mubr.msk.bf16.mxu1 %vm5062_vm1, %v5061_v2 }
0x1928   :  { %4766 = vmatprep.subr.bf16.mxu1 %v5061_v2 }
0x192e   :  { %4757 = vmatmul.mubr.msk.bf16.vlgmr.msra.gmra.mrb[92].mxu1 %vm30_vm0, %v5505_v0 }
0x192f   :  { %4768 = vmatprep.mubr.msk.bf16.mxu1 %vm5062_vm1, %v5061_v2 }
0x19e9   :  { %v2212_v37 = vpop.f32.mrb[80].mxu1 }
0x19ea   :  { %v2218_v38 = vmul.f32 0.35355338, %v2212_v37  ;;  %v4722_v39 = vpop.f32.mrb[81].mxu1 }
0x19eb   :  { %v2215_v31 = vpop.f32.mrb[82].mxu1 }
0x19ec   :  { %v4723_v33 = vpop.f32.mrb[83].mxu1  ;;  %v2219_v40 = vsel %vm305_vm2, %v2218_v38, -inf }
0x19ed   :  { %2220 = vmax.xlane.f32.xlu0 %v2219_v40 }
0x19f1   :  { %v2322_v41 = vpop.f32.mrb[84].mxu1 }
0x19f2   :  { %v2328_v44 = vmul.f32 0.35355338, %v2322_v41  ;;  %v4734_v61 = vpop.f32.mrb[85].mxu1 }
0x19f3   :  { %v2325_v47 = vpop.f32.mrb[86].mxu1 }
0x19f4   :  { %v4735_v48 = vpop.f32.mrb[87].mxu1  ;;  %v2329_v49 = vsel %vm305_vm2, %v2328_v44, -inf }
0x19f5   :  { %2330 = vmax.xlane.f32.xlu1 %v2329_v49 }
0x19f9   :  { %v5564_v50 = vpop.f32.mrb[88].mxu1 }
0x19fa   :  { %v4746_v51 = vpop.f32.mrb[89].mxu1 }
0x19fb   :  { %v2436_v52 = vpop.f32.mrb[90].mxu1 }
0x19fc   :  { %v5572_v53 = vadd.f32 %v5569_v58, %v2436_v52  ;;  %v4747_v54 = vpop.f32.mrb[91].mxu1 }
0x1a01   :  { %v2535_v56 = vpop.f32.mrb[92].mxu1 }
0x1a02   :  { %v2536_v57 = vadd.f32 %v4261_v55, %v2535_v56  ;;  %v4758_v59 = vpop.f32.mrb[93].mxu1 }
0x1a03   :  { %v2538_v60 = vpop.f32.mrb[94].mxu1  ;;  %v2542_v59 = vld [vmem:[%s5903_s1 + $0x128] sm:$0xff] }
0x1a04   :  { %v2604_v62 = vpack.c.bf16 %v2536_v57, %v2536_v57  ;;  %v5577_v1 = vadd.f32 %v4261_v55, %v2538_v60  ;;  %v4759_v42 = vpop.f32.mrb[95].mxu1  ;;  %v2652_v60 = vpack.c.bf16 %v2542_v59, %v2542_v59 }
0x1a06   :  { %v2609_v43 = vsel %vm369_vm3, %v2604_v62, 0  ;;  %v2657_v62 = vsel %vm369_vm3, %v2652_v60, 0 }
0x1a07   :  { %4767 = vmatpush3.bf16.msra.mxu1 %v2609_v43  ;;  %v2169_v43 = vld [vmem:[%s5903_s1 + $0x120] sm:$0xff] }
0x1a08   :  { %4778 = vmatprep.subr.bf16.mxu1 %v5061_v2 }
0x1a7a   :  { %v2221_v36 = vpop.xlane.xlu0 %2220 }
0x1a7b   :  { %v2222_v3 = vsub.f32 %v2218_v38, %v2221_v36  ;;  %v2279_v36 = vpack.c.bf16 %v2169_v43, %v2169_v43  ;;  %v4273_v43 = vld [vmem:[%s5904_s2 + $0x15] ss:$0 sm:$0xff] }
0x1a7d   :  { %v2223_v4 = vmul.f32 1.442695, %v2222_v3 }
0x1a7f   :  { %5005 = vpow2.f32 %v2223_v4 }
0x1a82   :  { %v2331_v5 = vpop.xlane.xlu1 %2330 }
0x1a83   :  { %v2332_v7 = vsub.f32 %v2328_v44, %v2331_v5  ;;  %v2434_v44 = vadd.f32 %v5569_v58, %v5564_v50 }
0x1a85   :  { %v2333_v8 = vmul.f32 1.442695, %v2332_v7  ;;  %v2543_v61 = vpack.c.bf16 %v2434_v44, %v2434_v44  ;;  %v2703_v7 = vsel %vm369_vm3, %v2279_v36, 0 }
0x1a87   :  { %5007 = vpow2.f32 %v2333_v8  ;;  %v2806_v8 = vpack.c.bf16 %v5577_v1, %v5577_v1 }
0x1a89   :  { %v5006_v6 = vpop.eup %5005 }
0x1a8a   :  { %v2225_v9 = vsel %vm305_vm2, %v5006_v6, 0.0 }
0x1a8b   :  { %2226 = vadd.xlane.f32.xlu0 %v2225_v9  ;;  %v2811_v9 = vsel %vm369_vm3, %v2806_v8, 0 }
0x1a91   :  { %v5008_v10 = vpop.eup %5007 }
0x1a92   :  { %v2335_v11 = vsel %vm305_vm2, %v5008_v10, 0.0 }
0x1a93   :  { %2336 = vadd.xlane.f32.xlu1 %v2335_v11 }
0x1b18   :  { %v2227_v35 = vpop.xlane.xlu0 %2226 }
0x1b19   :  { %5009 = vrcp.f32 %v2227_v35 }
0x1b20   :  { %v2337_v12 = vpop.xlane.xlu1 %2336 }
0x1b21   :  { %5011 = vrcp.f32 %v2337_v12 }
0x1b23   :  { %v5010_v14 = vpop.eup %5009 }
0x1b24   :  { %v2229_v16 = vmul.f32 %v5010_v14, %v5006_v6 }
0x1b26   :  { %v2230_v17 = vpack.c.bf16 %v2229_v16, %v2229_v16 }
0x1b28   :  { %4727 = vmatmul.mubr.msk.bf16.vlgmr.msra.gmra.mrb[84].mxu0 %vm305_vm2, %v2230_v17  ;;  %v2745_v17 = vpack.c.bf16 %v5572_v53, %v5572_v53 }
0x1b29   :  { %4737 = vmatpush3.bf16.msra.mxu0 %v2346_v18  ;;  %4738 = vmatprep.mubr.msk.bf16.mxu0 %vm5062_vm1, %v5061_v2 }
0x1b2a   :  { %4748 = vmatprep.subr.bf16.mxu0 %v5061_v2 }
0x1b2b   :  { %v5012_v20 = vpop.eup %5011 }
0x1b2c   :  { %v2339_v22 = vmul.f32 %v5012_v20, %v5008_v10 }
0x1b2e   :  { %v2340_v23 = vpack.c.bf16 %v2339_v22, %v2339_v22 }
0x1b30   :  { %4739 = vmatmul.mubr.msk.bf16.vlgmr.msra.gmra.mrb[88].mxu0 %vm305_vm2, %v2340_v23 }
0x1b31   :  { %4750 = vmatprep.mubr.msk.bf16.mxu0 %vm5062_vm1, %v5061_v2 }
0x1b32   :  { %4749 = vmatpush3.bf16.xpose.msra.mxu0 %v2448_v24 }
0x1b33   :  { %4760 = vmatprep.subr.bf16.mxu0 %v5061_v2 }
0x1b39   :  { %4751 = vmatmul.mubr.msk.bf16.vlgmr.msra.gmra.mrb[92].mxu0 %vm30_vm0, %v5505_v0 }
0x1b3a   :  { %4762 = vmatprep.mubr.msk.bf16.mxu0 %vm5062_vm1, %v5061_v2 }
0x1bfb   :  { %v2272_v25 = vpop.f32.mrb[84].mxu0 }
0x1bfc   :  { %v4728_v26 = vpop.f32.mrb[85].mxu0  ;;  %v2278_v6 = vpack.c.bf16 %v2272_v25, %v2272_v25 }
0x1bfd   :  { %v2275_v27 = vpop.f32.mrb[86].mxu0 }
0x1bfe   :  { %v4729_v28 = vpop.f32.mrb[87].mxu0 }
0x1c03   :  { %v5602_v13 = vpop.f32.mrb[88].mxu0 }
0x1c04   :  { %v4740_v29 = vpop.f32.mrb[89].mxu0 }
0x1c05   :  { %v2385_v30 = vpop.f32.mrb[90].mxu0 }
0x1c06   :  { %v4741_v32 = vpop.f32.mrb[91].mxu0 }
0x1c0c   :  { %v2484_v45 = vpop.f32.mrb[92].mxu0 }
0x1c0d   :  { %v2485_v37 = vadd.f32 %v4259_v34, %v2484_v45  ;;  %v4752_v38 = vpop.f32.mrb[93].mxu0 }
0x1c0e   :  { %v2487_v39 = vpop.f32.mrb[94].mxu0 }
0x1c0f   :  { %v2544_v31 = vpack.c.bf16 %v2485_v37, %v2485_v37  ;;  %v2488_v33 = vadd.f32 %v4259_v34, %v2487_v39  ;;  %v4753_v40 = vpop.f32.mrb[95].mxu0 }
0x1c11   :  { %v2549_v41 = vsel %vm305_vm2, %v2544_v31, 0  ;;  %v2746_v10 = vpack.c.bf16 %v2488_v33, %v2488_v33 }
0x1c12   :  { %4761 = vmatpush3.bf16.xpose.msra.mxu0 %v2549_v41  ;;  %v2991_v41 = vld [vmem:[%s5903_s1 + $0xf0] sm:$0xff] }
0x1c13   :  { %4772 = vmatprep.subr.bf16.mxu0 %v5061_v2  ;;  %v2751_v15 = vsel %vm305_vm2, %v2746_v10, 0  ;;  %v2992_v44 = vpack.c.bf16 %v2991_v41, %v2991_v41 }
0x1c19   :  { %4763 = vmatmul.mubr.msk.bf16.vlgmr.msra.gmra.mrb[96].mxu0 %vm305_vm2, %v2543_v61  ;;  %v2388_v61 = vpack.c.bf16 %v5602_v13, %v5602_v13  ;;  %v2940_v13 = vld [vmem:[%s5903_s1 + $0xd0] sm:$0xff] }
0x1c1a   :  { %4774 = vmatprep.mubr.msk.bf16.mxu0 %vm5062_vm1, %v5061_v2  ;;  %4773 = vmatpush3.bf16.msra.mxu0 %v2657_v62 }
0x1c1b   :  { %4784 = vmatprep.subr.bf16.mxu0 %v5061_v2 }
0x1cec   :  { %v2585_v47 = vpop.f32.mrb[96].mxu0 }
0x1ced   :  { %v2591_v48 = vmul.f32 0.35355338, %v2585_v47  ;;  %v4764_v49 = vpop.f32.mrb[97].mxu0  ;;  %v2999_v47 = vsel %vm30_vm0, %v2992_v44, 0 }
0x1cee   :  { %v2588_v51 = vpop.f32.mrb[98].mxu0 }
0x1cef   :  { %v4765_v52 = vpop.f32.mrb[99].mxu0  ;;  %v2592_v54 = vsel %vm305_vm2, %v2591_v48, -inf }
0x1cf0   :  { %2593 = vmax.xlane.f32.xlu0 %v2592_v54 }
0x1d7d   :  { %v2594_v55 = vpop.xlane.xlu0 %2593 }
0x1d7e   :  { %v2595_v56 = vsub.f32 %v2591_v48, %v2594_v55  ;;  %v2941_v48 = vpack.c.bf16 %v2940_v13, %v2940_v13 }
0x1d80   :  { %v2596_v57 = vmul.f32 1.442695, %v2595_v56  ;;  %v2948_v54 = vsel %vm30_vm0, %v2941_v48, 0  ;;  %v3042_v56 = vld [vmem:[%s5903_s1 + $0x110] sm:$0xff] }
0x1d82   :  { %5013 = vpow2.f32 %v2596_v57 }
0x1d8c   :  { %v5014_v50 = vpop.eup %5013 }
0x1d8d   :  { %v2598_v58 = vsel %vm305_vm2, %v5014_v50, 0.0 }
0x1d8e   :  { %2599 = vadd.xlane.f32.xlu1 %v2598_v58 }
0x1e1b   :  { %v2600_v42 = vpop.xlane.xlu1 %2599 }
0x1e1c   :  { %5015 = vrcp.f32 %v2600_v42 }
0x1e26   :  { %v5016_v3 = vpop.eup %5015 }
0x1e27   :  { %v2602_v4 = vmul.f32 %v5016_v3, %v5014_v50  ;;  %v3043_v50 = vpack.c.bf16 %v3042_v56, %v3042_v56 }
0x1e29   :  { %v2603_v5 = vpack.c.bf16 %v2602_v4, %v2602_v4  ;;  %v3050_v60 = vsel %vm30_vm0, %v3043_v50, 0 }
0x1e2b   :  { %4769 = vmatmul.mubr.msk.bf16.vlgmr.msra.gmra.mrb[96].mxu1 %vm305_vm2, %v2603_v5 }
0x1e2c   :  { %4779 = vmatpush3.bf16.msra.mxu1 %v2703_v7  ;;  %4780 = vmatprep.mubr.msk.bf16.mxu1 %vm5062_vm1, %v5061_v2 }
0x1e2d   :  { %4790 = vmatprep.subr.bf16.mxu1 %v5061_v2 }
0x1e33   :  { %4781 = vmatmul.mubr.msk.bf16.vlgmr.msra.gmra.mrb[100].mxu1 %vm305_vm2, %v2278_v6 }
0x1e34   :  { %4791 = vmatpush3.bf16.msra.mxu1 %v2811_v9  ;;  %4792 = vmatprep.mubr.msk.bf16.mxu1 %vm5062_vm1, %v5061_v2 }
0x1e35   :  { %4802 = vmatprep.subr.bf16.mxu1 %v5061_v2 }
0x1efe   :  { %v2645_v11 = vpop.f32.mrb[96].mxu1 }
0x1eff   :  { %v2651_v35 = vpack.c.bf16 %v2645_v11, %v2645_v11  ;;  %v4770_v12 = vpop.f32.mrb[97].mxu1 }
0x1f00   :  { %v2648_v14 = vpop.f32.mrb[98].mxu1 }
0x1f01   :  { %v4771_v16 = vpop.f32.mrb[99].mxu1  ;;  %4775 = vmatmul.mubr.msk.bf16.vlgmr.msra.gmra.mrb[100].mxu0 %vm305_vm2, %v2651_v35 }
0x1f02   :  { %4785 = vmatpush3.bf16.xpose.msra.mxu0 %v2751_v15  ;;  %4786 = vmatprep.mubr.msk.bf16.mxu0 %vm5062_vm1, %v5061_v2  ;;  %v4271_v15 = vld [vmem:[%s5904_s2 + $0x11] ss:$0 sm:$0xff] }
0x1f03   :  { %4796 = vmatprep.subr.bf16.mxu0 %v5061_v2 }
0x1f06   :  { %v2739_v1 = vpop.f32.mrb[100].mxu1 }
0x1f07   :  { %v4782_v18 = vpop.f32.mrb[101].mxu1 }
0x1f08   :  { %v2742_v19 = vpop.f32.mrb[102].mxu1 }
0x1f09   :  { %v4783_v20 = vpop.f32.mrb[103].mxu1  ;;  %4787 = vmatmul.mubr.msk.bf16.vlgmr.msra.gmra.mrb[104].mxu0 %vm305_vm2, %v2745_v17 }
0x1f0a   :  { %4797 = vmatpush3.bf16.msra.mxu0 %v2657_v62  ;;  %4798 = vmatprep.mubr.msk.bf16.mxu0 %vm5062_vm1, %v5061_v2 }
0x1f0b   :  { %4808 = vmatprep.subr.bf16.mxu0 %v5061_v2 }
0x1fd4   :  { %v2693_v21 = vpop.f32.mrb[100].mxu0 }
0x1fd5   :  { %v5647_v22 = vadd.f32 %v2739_v1, %v2693_v21  ;;  %v4776_v23 = vpop.f32.mrb[101].mxu0 }
0x1fd6   :  { %v2696_v24 = vpop.f32.mrb[102].mxu0  ;;  %v4275_v23 = vld [vmem:[%s5904_s2 + $0x19] ss:$0 sm:$0xff] }
0x1fd7   :  { %v4777_v25 = vpop.f32.mrb[103].mxu0 }
0x1fdc   :  { %v2787_v26 = vpop.f32.mrb[104].mxu0 }
0x1fdd   :  { %v2793_v27 = vmul.f32 0.35355338, %v2787_v26  ;;  %v4788_v53 = vpop.f32.mrb[105].mxu0 }
0x1fde   :  { %v2790_v28 = vpop.f32.mrb[106].mxu0 }
0x1fdf   :  { %v4789_v29 = vpop.f32.mrb[107].mxu0  ;;  %v2794_v30 = vsel %vm305_vm2, %v2793_v27, -inf }
0x1fe0   :  { %2795 = vmax.xlane.f32.xlu0 %v2794_v30 }
0x206d   :  { %v2796_v32 = vpop.xlane.xlu0 %2795 }
0x206e   :  { %v2797_v34 = vsub.f32 %v2793_v27, %v2796_v32 }
0x2070   :  { %v2798_v45 = vmul.f32 1.442695, %v2797_v34 }
0x2072   :  { %5017 = vpow2.f32 %v2798_v45 }
0x207c   :  { %v5018_v37 = vpop.eup %5017 }
0x207d   :  { %v2800_v38 = vsel %vm305_vm2, %v5018_v37, 0.0 }
0x207e   :  { %2801 = vadd.xlane.f32.xlu1 %v2800_v38 }
0x210b   :  { %v2802_v39 = vpop.xlane.xlu1 %2801 }
0x210c   :  { %5019 = vrcp.f32 %v2802_v39 }
0x2116   :  { %v5020_v31 = vpop.eup %5019 }
0x2117   :  { %v2804_v33 = vmul.f32 %v5020_v31, %v5018_v37 }
0x2119   :  { %v2805_v40 = vpack.c.bf16 %v2804_v33, %v2804_v33 }
0x211b   :  { %4793 = vmatmul.mubr.msk.bf16.vlgmr.msra.gmra.mrb[104].mxu1 %vm305_vm2, %v2805_v40 }
0x211c   :  { %4803 = vmatpush3.bf16.msra.mxu1 %v2703_v7  ;;  %4804 = vmatprep.mubr.msk.bf16.mxu1 %vm5062_vm1, %v5061_v2 }
0x211d   :  { %4814 = vmatprep.subr.bf16.mxu1 %v5061_v2 }
0x2123   :  { %4805 = vmatmul.mubr.msk.bf16.vlgmr.msra.gmra.mrb[108].mxu1 %vm305_vm2, %v2388_v61  ;;  %v3093_v61 = vld [vmem:[%s5903_s1 + $0x130] sm:$0xff] }
0x2124   :  { %4816 = vmatprep.mubr.msk.bf16.mxu1 %vm5062_vm1, %v5061_v2 }
0x2125   :  { %4815 = vmatpush3.bf16.xpose.msra.mxu1 %v2999_v47  ;;  %v3203_v47 = vpack.c.bf16 %v3093_v61, %v3093_v61 }
0x2126   :  { %4826 = vmatprep.subr.bf16.mxu1 %v5061_v2 }
0x2127   :  { %v3208_v13 = vsel %vm369_vm3, %v3203_v47, 0 }
0x212c   :  { %4817 = vmatmul.mubr.msk.bf16.vlgmr.msra.gmra.mrb[112].mxu1 %vm30_vm0, %v5505_v0 }
0x212d   :  { %4828 = vmatprep.mubr.msk.bf16.mxu1 %vm5062_vm1, %v5061_v2 }
0x21ee   :  { %v2847_v49 = vpop.f32.mrb[104].mxu1 }
0x21ef   :  { %v2853_v51 = vpack.c.bf16 %v2847_v49, %v2847_v49  ;;  %v4794_v52 = vpop.f32.mrb[105].mxu1 }
0x21f0   :  { %v2850_v55 = vpop.f32.mrb[106].mxu1 }
0x21f1   :  { %v4795_v57 = vpop.f32.mrb[107].mxu1  ;;  %4799 = vmatmul.mubr.msk.bf16.vlgmr.msra.gmra.mrb[108].mxu0 %vm305_vm2, %v2853_v51 }
0x21f2   :  { %4809 = vmatpush3.bf16.xpose.msra.mxu0 %v2948_v54  ;;  %4810 = vmatprep.mubr.msk.bf16.mxu0 %vm5062_vm1, %v5061_v2 }
0x21f3   :  { %4820 = vmatprep.subr.bf16.mxu0 %v5061_v2 }
0x21f6   :  { %v2934_v58 = vpop.f32.mrb[108].mxu1 }
0x21f7   :  { %v4806_v59 = vpop.f32.mrb[109].mxu1 }
0x21f8   :  { %v2937_v62 = vpop.f32.mrb[110].mxu1 }
0x21f9   :  { %v4807_v42 = vpop.f32.mrb[111].mxu1  ;;  %4811 = vmatmul.mubr.msk.bf16.vlgmr.msra.gmra.mrb[112].mxu0 %vm30_vm0, %v5505_v0 }
0x21fa   :  { %4821 = vmatpush3.bf16.xpose.msra.mxu0 %v3050_v60  ;;  %4822 = vmatprep.mubr.msk.bf16.mxu0 %vm5062_vm1, %v5061_v2 }
0x21fb   :  { %4832 = vmatprep.subr.bf16.mxu0 %v5061_v2 }
0x21ff   :  { %v3035_v36 = vpop.f32.mrb[112].mxu1 }
0x2200   :  { %v3036_v3 = vadd.f32 %v4273_v43, %v3035_v36  ;;  %v4818_v4 = vpop.f32.mrb[113].mxu1 }
0x2201   :  { %v3038_v5 = vpop.f32.mrb[114].mxu1  ;;  %4823 = vmatmul.mubr.msk.bf16.vlgmr.msra.gmra.mrb[116].mxu0 %vm30_vm0, %v5505_v0 }
0x2202   :  { %v3095_v7 = vpack.c.bf16 %v3036_v3, %v3036_v3  ;;  %v3039_v8 = vadd.f32 %v4273_v43, %v3038_v5  ;;  %v4819_v6 = vpop.f32.mrb[115].mxu1  ;;  %4834 = vmatprep.mubr.msk.bf16.mxu0 %vm5062_vm1, %v5061_v2 }
0x2204   :  { %v3100_v9 = vsel %vm305_vm2, %v3095_v7, 0  ;;  %v3252_v51 = vpack.c.bf16 %v3039_v8, %v3039_v8 }
0x2205   :  { %4827 = vmatpush3.bf16.xpose.msra.mxu1 %v3100_v9 }
0x2206   :  { %4838 = vmatprep.subr.bf16.mxu1 %v5061_v2  ;;  %v3257_v55 = vsel %vm305_vm2, %v3252_v51, 0 }
0x22c4   :  { %v2891_v10 = vpop.f32.mrb[108].mxu0 }
0x22c5   :  { %v5695_v11 = vadd.f32 %v2934_v58, %v2891_v10  ;;  %v4800_v35 = vpop.f32.mrb[109].mxu0 }
0x22c6   :  { %v2894_v12 = vpop.f32.mrb[110].mxu0 }
0x22c7   :  { %v4801_v14 = vpop.f32.mrb[111].mxu0 }
0x22cc   :  { %v2984_v16 = vpop.f32.mrb[112].mxu0 }
0x22cd   :  { %v2985_v1 = vadd.f32 %v4271_v15, %v2984_v16  ;;  %v4812_v17 = vpop.f32.mrb[113].mxu0 }
0x22ce   :  { %v2987_v18 = vpop.f32.mrb[114].mxu0 }
0x22cf   :  { %v3094_v19 = vpack.c.bf16 %v2985_v1, %v2985_v1  ;;  %v2988_v20 = vadd.f32 %v4271_v15, %v2987_v18  ;;  %v4813_v21 = vpop.f32.mrb[115].mxu0  ;;  %v3404_v18 = vld [vmem:[%s5903_s1 + $0xd8] sm:$0xff] }
0x22d1   :  { %4829 = vmatmul.mubr.msk.bf16.vlgmr.msra.gmra.mrb[116].mxu1 %vm305_vm2, %v3094_v19  ;;  %v3251_v56 = vpack.c.bf16 %v2988_v20, %v2988_v20  ;;  %v3405_v19 = vpack.c.bf16 %v3404_v18, %v3404_v18 }
0x22d2   :  { %4840 = vmatprep.mubr.msk.bf16.mxu1 %vm5062_vm1, %v5061_v2  ;;  %4839 = vmatpush3.bf16.msra.mxu1 %v3208_v13 }
0x22d3   :  { %4850 = vmatprep.subr.bf16.mxu1 %v5061_v2 }
0x22d4   :  { %v3086_v24 = vpop.f32.mrb[116].mxu0 }
0x22d5   :  { %v3087_v25 = vadd.f32 %v4275_v23, %v3086_v24  ;;  %v4824_v26 = vpop.f32.mrb[117].mxu0  ;;  %v3412_v24 = vsel %vm30_vm0, %v3405_v19, 0 }
0x22d6   :  { %v3089_v27 = vpop.f32.mrb[118].mxu0 }
0x22d7   :  { %v3155_v53 = vpack.c.bf16 %v3087_v25, %v3087_v25  ;;  %v3090_v28 = vadd.f32 %v4275_v23, %v3089_v27  ;;  %v4825_v29 = vpop.f32.mrb[119].mxu0  ;;  %v3455_v27 = vld [vmem:[%s5903_s1 + $0xf8] sm:$0xff] }
0x22d9   :  { %v3160_v30 = vsel %vm369_vm3, %v3155_v53, 0  ;;  %v3312_v57 = vpack.c.bf16 %v3090_v28, %v3090_v28  ;;  %v3456_v53 = vpack.c.bf16 %v3455_v27, %v3455_v27 }
0x22da   :  { %4833 = vmatpush3.bf16.msra.mxu0 %v3160_v30 }
0x22db   :  { %4844 = vmatprep.subr.bf16.mxu0 %v5061_v2  ;;  %v3317_v62 = vsel %vm369_vm3, %v3312_v57, 0 }
0x23a4   :  { %v3136_v32 = vpop.f32.mrb[116].mxu1 }
0x23a5   :  { %v3142_v34 = vmul.f32 0.35355338, %v3136_v32  ;;  %v4830_v45 = vpop.f32.mrb[117].mxu1  ;;  %v3463_v32 = vsel %vm30_vm0, %v3456_v53, 0 }
0x23a6   :  { %v3139_v37 = vpop.f32.mrb[118].mxu1 }
0x23a7   :  { %v4831_v38 = vpop.f32.mrb[119].mxu1  ;;  %v3143_v39 = vsel %vm305_vm2, %v3142_v34, -inf }
0x23a8   :  { %3144 = vmax.xlane.f32.xlu0 %v3143_v39  ;;  %v4283_v39 = vld [vmem:[%s5904_s2 + $0x12] ss:$0 sm:$0xff] }
0x2435   :  { %v3145_v31 = vpop.xlane.xlu0 %3144 }
0x2436   :  { %v3146_v33 = vsub.f32 %v3142_v34, %v3145_v31 }
0x2438   :  { %v3147_v40 = vmul.f32 1.442695, %v3146_v33 }
0x243a   :  { %5021 = vpow2.f32 %v3147_v40 }
0x2444   :  { %v5022_v41 = vpop.eup %5021 }
0x2445   :  { %v3149_v44 = vsel %vm305_vm2, %v5022_v41, 0.0 }
0x2446   :  { %3150 = vadd.xlane.f32.xlu1 %v3149_v44 }
0x24d3   :  { %v3151_v48 = vpop.xlane.xlu1 %3150 }
0x24d4   :  { %5023 = vrcp.f32 %v3151_v48 }
0x24de   :  { %v5024_v49 = vpop.eup %5023 }
0x24df   :  { %v3153_v52 = vmul.f32 %v5024_v49, %v5022_v41  ;;  %v4287_v41 = vld [vmem:[%s5904_s2 + $0x1a] ss:$0 sm:$0xff] }
0x24e1   :  { %v3154_v54 = vpack.c.bf16 %v3153_v52, %v3153_v52 }
0x24e3   :  { %4835 = vmatmul.mubr.msk.bf16.vlgmr.msra.gmra.mrb[120].mxu0 %vm305_vm2, %v3154_v54 }
0x24e4   :  { %4845 = vmatpush3.bf16.xpose.msra.mxu0 %v3257_v55  ;;  %4846 = vmatprep.mubr.msk.bf16.mxu0 %vm5062_vm1, %v5061_v2 }
0x24e5   :  { %4856 = vmatprep.subr.bf16.mxu0 %v5061_v2 }
0x24eb   :  { %4847 = vmatmul.mubr.msk.bf16.vlgmr.msra.gmra.mrb[124].mxu0 %vm305_vm2, %v3251_v56 }
0x24ec   :  { %4857 = vmatpush3.bf16.msra.mxu0 %v3208_v13  ;;  %4858 = vmatprep.mubr.msk.bf16.mxu0 %vm5062_vm1, %v5061_v2 }
0x24ed   :  { %4868 = vmatprep.subr.bf16.mxu0 %v5061_v2 }
0x25b6   :  { %v3196_v50 = vpop.f32.mrb[120].mxu0 }
0x25b7   :  { %v3202_v58 = vpack.c.bf16 %v3196_v50, %v3196_v50  ;;  %v4836_v59 = vpop.f32.mrb[121].mxu0  ;;  %v4285_v50 = vld [vmem:[%s5904_s2 + $0x16] ss:$0 sm:$0xff] }
0x25b8   :  { %v3199_v60 = vpop.f32.mrb[122].mxu0 }
0x25b9   :  { %v4837_v42 = vpop.f32.mrb[123].mxu0  ;;  %4841 = vmatmul.mubr.msk.bf16.vlgmr.msra.gmra.mrb[120].mxu1 %vm305_vm2, %v3202_v58 }
0x25ba   :  { %4851 = vmatpush3.bf16.msra.mxu1 %v3317_v62  ;;  %4852 = vmatprep.mubr.msk.bf16.mxu1 %vm5062_vm1, %v5061_v2 }
0x25bb   :  { %4862 = vmatprep.subr.bf16.mxu1 %v5061_v2 }
0x25be   :  { %v3293_v43 = vpop.f32.mrb[124].mxu0 }
0x25bf   :  { %v3299_v36 = vmul.f32 0.35355338, %v3293_v43  ;;  %v4848_v3 = vpop.f32.mrb[125].mxu0 }
0x25c0   :  { %v3296_v4 = vpop.f32.mrb[126].mxu0 }
0x25c1   :  { %v4849_v5 = vpop.f32.mrb[127].mxu0  ;;  %v3300_v7 = vsel %vm305_vm2, %v3299_v36, -inf }
0x25c2   :  { %3301 = vmax.xlane.f32.xlu0 %v3300_v7 }
0x264f   :  { %v3302_v8 = vpop.xlane.xlu0 %3301 }
0x2650   :  { %v3303_v6 = vsub.f32 %v3299_v36, %v3302_v8 }
0x2652   :  { %v3304_v9 = vmul.f32 1.442695, %v3303_v6 }
0x2654   :  { %5025 = vpow2.f32 %v3304_v9 }
0x265e   :  { %v5026_v10 = vpop.eup %5025 }
0x265f   :  { %v3306_v35 = vsel %vm305_vm2, %v5026_v10, 0.0 }
0x2660   :  { %3307 = vadd.xlane.f32.xlu1 %v3306_v35 }
0x268c   :  { %v3244_v12 = vpop.f32.mrb[120].mxu1 }
0x268d   :  { %v5732_v14 = vadd.f32 %v3244_v12, %v5647_v22  ;;  %v4842_v15 = vpop.f32.mrb[121].mxu1  ;;  %v3506_v22 = vld [vmem:[%s5903_s1 + $0x118] sm:$0xff] }
0x268e   :  { %v3247_v16 = vpop.f32.mrb[122].mxu1  ;;  %v3507_v25 = vpack.c.bf16 %v3506_v22, %v3506_v22 }
0x268f   :  { %v4843_v1 = vpop.f32.mrb[123].mxu1 }
0x2690   :  { %v3514_v26 = vsel %vm30_vm0, %v3507_v25, 0 }
0x26ed   :  { %v3308_v17 = vpop.xlane.xlu1 %3307 }
0x26ee   :  { %5027 = vrcp.f32 %v3308_v17  ;;  %v3557_v17 = vld [vmem:[%s5903_s1 + $0x138] sm:$0xff] }
0x26ef   :  { %v3667_v18 = vpack.c.bf16 %v3557_v17, %v3557_v17 }
0x26f1   :  { %v3672_v19 = vsel %vm369_vm3, %v3667_v18, 0 }
0x26f8   :  { %v5028_v20 = vpop.eup %5027 }
0x26f9   :  { %v3310_v21 = vmul.f32 %v5028_v20, %v5026_v10 }
0x26fb   :  { %v3311_v23 = vpack.c.bf16 %v3310_v21, %v3310_v21 }
0x26fd   :  { %4853 = vmatmul.mubr.msk.bf16.vlgmr.msra.gmra.mrb[124].mxu1 %vm305_vm2, %v3311_v23 }
0x26fe   :  { %4863 = vmatpush3.bf16.xpose.msra.mxu1 %v3412_v24  ;;  %4864 = vmatprep.mubr.msk.bf16.mxu1 %vm5062_vm1, %v5061_v2 }
0x26ff   :  { %4874 = vmatprep.subr.bf16.mxu1 %v5061_v2 }
0x2705   :  { %4865 = vmatmul.mubr.msk.bf16.vlgmr.msra.gmra.mrb[128].mxu1 %vm30_vm0, %v5505_v0 }
0x2706   :  { %4875 = vmatpush3.bf16.xpose.msra.mxu1 %v3514_v26  ;;  %4876 = vmatprep.mubr.msk.bf16.mxu1 %vm5062_vm1, %v5061_v2 }
0x2707   :  { %4886 = vmatprep.subr.bf16.mxu1 %v5061_v2 }
0x270d   :  { %4877 = vmatmul.mubr.msk.bf16.vlgmr.msra.gmra.mrb[132].mxu1 %vm30_vm0, %v5505_v0 }
0x270e   :  { %4888 = vmatprep.mubr.msk.bf16.mxu1 %vm5062_vm1, %v5061_v2 }
0x27d0   :  { %v3353_v28 = vpop.f32.mrb[124].mxu1 }
0x27d1   :  { %v3359_v29 = vpack.c.bf16 %v3353_v28, %v3353_v28  ;;  %v4854_v30 = vpop.f32.mrb[125].mxu1 }
0x27d2   :  { %v3356_v34 = vpop.f32.mrb[126].mxu1 }
0x27d3   :  { %v4855_v45 = vpop.f32.mrb[127].mxu1  ;;  %4859 = vmatmul.mubr.msk.bf16.vlgmr.msra.gmra.mrb[128].mxu0 %vm305_vm2, %v3359_v29 }
0x27d4   :  { %4869 = vmatpush3.bf16.xpose.msra.mxu0 %v3463_v32  ;;  %4870 = vmatprep.mubr.msk.bf16.mxu0 %vm5062_vm1, %v5061_v2 }
0x27d5   :  { %4880 = vmatprep.subr.bf16.mxu0 %v5061_v2 }
0x27d8   :  { %v3448_v37 = vpop.f32.mrb[128].mxu1 }
0x27d9   :  { %v4866_v38 = vpop.f32.mrb[129].mxu1  ;;  %v3449_v4 = vadd.f32 %v4283_v39, %v3448_v37 }
0x27da   :  { %v3451_v31 = vpop.f32.mrb[130].mxu1 }
0x27db   :  { %v5766_v33 = vadd.f32 %v4283_v39, %v3451_v31  ;;  %v4867_v40 = vpop.f32.mrb[131].mxu1  ;;  %4871 = vmatmul.mubr.msk.bf16.vlgmr.msra.gmra.mrb[132].mxu0 %vm30_vm0, %v5505_v0 }
0x27dc   :  { %4882 = vmatprep.mubr.msk.bf16.mxu0 %vm5062_vm1, %v5061_v2 }
0x27dd   :  { %v3715_v26 = vpack.c.bf16 %v5766_v33, %v5766_v33 }
0x27e0   :  { %v3550_v44 = vpop.f32.mrb[132].mxu1 }
0x27e1   :  { %v3551_v61 = vadd.f32 %v4287_v41, %v3550_v44  ;;  %v4878_v47 = vpop.f32.mrb[133].mxu1 }
0x27e2   :  { %v3553_v13 = vpop.f32.mrb[134].mxu1 }
0x27e3   :  { %v3619_v48 = vpack.c.bf16 %v3551_v61, %v3551_v61  ;;  %v5775_v49 = vadd.f32 %v4287_v41, %v3553_v13  ;;  %v4879_v51 = vpop.f32.mrb[135].mxu1 }
0x27e5   :  { %v3624_v52 = vsel %vm369_vm3, %v3619_v48, 0  ;;  %v3776_v27 = vpack.c.bf16 %v5775_v49, %v5775_v49 }
0x27e6   :  { %4887 = vmatpush3.bf16.msra.mxu1 %v3624_v52 }
0x27e7   :  { %4898 = vmatprep.subr.bf16.mxu1 %v5061_v2  ;;  %v3781_v32 = vsel %vm369_vm3, %v3776_v27, 0 }
0x28a6   :  { %v3397_v0 = vpop.f32.mrb[128].mxu0 }
0x28a7   :  { %v5780_v54 = vadd.f32 %v3397_v0, %v5695_v11  ;;  %v4860_v55 = vpop.f32.mrb[129].mxu0  ;;  %v3558_v11 = vpack.c.bf16 %v3449_v4, %v3449_v4 }
0x28a8   :  { %v3400_v56 = vpop.f32.mrb[130].mxu0 }
0x28a9   :  { %v4861_v57 = vpop.f32.mrb[131].mxu0 }
0x28ae   :  { %v3499_v58 = vpop.f32.mrb[132].mxu0 }
0x28af   :  { %v3500_v59 = vadd.f32 %v4285_v50, %v3499_v58  ;;  %v4872_v60 = vpop.f32.mrb[133].mxu0 }
0x28b0   :  { %v3502_v62 = vpop.f32.mrb[134].mxu0  ;;  %v3939_v60 = vld [vmem:[%s5903_s1 + $0x160] sm:$0xff] }
0x28b1   :  { %v3559_v42 = vpack.c.bf16 %v3500_v59, %v3500_v59  ;;  %v3503_v43 = vadd.f32 %v4285_v50, %v3502_v62  ;;  %v4873_v36 = vpop.f32.mrb[135].mxu0  ;;  %v3877_v50 = vld [vmem:[%s5903_s1 + $0x140] sm:$0xff]  ;;  %v3940_v62 = vld [vmem:[%s5903_s1 + $0x168] sm:$0xff] }
0x28b3   :  { %v3564_v3 = vsel %vm305_vm2, %v3559_v42, 0  ;;  %v3716_v23 = vpack.c.bf16 %v3503_v43, %v3503_v43  ;;  %v3943_v42 = vpack.c.bf16 %v3940_v62, %v3939_v60 }
0x28b4   :  { %4881 = vmatpush3.bf16.xpose.msra.mxu0 %v3564_v3 }
0x28b5   :  { %4892 = vmatprep.subr.bf16.mxu0 %v5061_v2  ;;  %v3721_v25 = vsel %vm305_vm2, %v3716_v23, 0  ;;  %v3951_v4 = vsel %vm30_vm0, %v3943_v42, 0 }
0x28bb   :  { %4883 = vmatmul.mubr.msk.bf16.vlgmr.msra.gmra.mrb[136].mxu0 %vm305_vm2, %v3558_v11 }
0x28bc   :  { %4894 = vmatprep.mubr.msk.bf16.mxu0 %vm5062_vm1, %v5061_v2  ;;  %4893 = vmatpush3.bf16.msra.mxu0 %v3672_v19 }
0x28bd   :  { %4904 = vmatprep.subr.bf16.mxu0 %v5061_v2 }
0x298e   :  { %v3600_v5 = vpop.f32.mrb[136].mxu0 }
0x298f   :  { %v3606_v7 = vmul.f32 0.35355338, %v3600_v5  ;;  %v4884_v8 = vpop.f32.mrb[137].mxu0 }
0x2990   :  { %v3603_v6 = vpop.f32.mrb[138].mxu0  ;;  %v3880_v8 = vld [vmem:[%s5903_s1 + $0x158] sm:$0xff] }
0x2991   :  { %v4885_v9 = vpop.f32.mrb[139].mxu0  ;;  %v3607_v10 = vsel %vm305_vm2, %v3606_v7, -inf  ;;  %v3941_v6 = vld [vmem:[%s5903_s1 + $0x170] sm:$0xff] }
0x2992   :  { %3608 = vmax.xlane.f32.xlu0 %v3607_v10  ;;  %v3942_v10 = vld [vmem:[%s5903_s1 + $0x178] sm:$0xff] }
0x2a1f   :  { %v3609_v35 = vpop.xlane.xlu0 %3608 }
0x2a20   :  { %v3610_v12 = vsub.f32 %v3606_v7, %v3609_v35  ;;  %v3879_v7 = vld [vmem:[%s5903_s1 + $0x150] sm:$0xff]  ;;  %v3944_v35 = vpack.c.bf16 %v3942_v10, %v3941_v6 }
0x2a21   :  { %v3883_v9 = vpack.c.bf16 %v3880_v8, %v3879_v7 }
0x2a22   :  { %v3611_v15 = vmul.f32 1.442695, %v3610_v12 }
0x2a23   :  { %v3896_v12 = vsel %vm30_vm0, %v3883_v9, 0 }
0x2a24   :  { %5029 = vpow2.f32 %v3611_v15  ;;  %v3954_v15 = vsel %vm30_vm0, %v3944_v35, 0 }
0x2a2e   :  { %v5030_v16 = vpop.eup %5029 }
0x2a2f   :  { %v3613_v1 = vsel %vm305_vm2, %v5030_v16, 0.0 }
0x2a30   :  { %3614 = vadd.xlane.f32.xlu1 %v3613_v1 }
0x2abd   :  { %v3615_v20 = vpop.xlane.xlu1 %3614 }
0x2abe   :  { %5031 = vrcp.f32 %v3615_v20 }
0x2ac8   :  { %v5032_v21 = vpop.eup %5031 }
0x2ac9   :  { %v3617_v24 = vmul.f32 %v5032_v21, %v5030_v16  ;;  %v4295_v16 = vld [vmem:[%s5904_s2 + $0x1b] ss:$0 sm:$0xff] }
0x2acb   :  { %v3618_v22 = vpack.c.bf16 %v3617_v24, %v3617_v24 }
0x2acd   :  { %4889 = vmatmul.mubr.msk.bf16.vlgmr.msra.gmra.mrb[136].mxu1 %vm305_vm2, %v3618_v22 }
0x2ace   :  { %4899 = vmatpush3.bf16.xpose.msra.mxu1 %v3721_v25  ;;  %4900 = vmatprep.mubr.msk.bf16.mxu1 %vm5062_vm1, %v5061_v2 }
0x2acf   :  { %4910 = vmatprep.subr.bf16.mxu1 %v5061_v2 }
0x2ad5   :  { %4901 = vmatmul.mubr.msk.bf16.vlgmr.msra.gmra.mrb[140].mxu1 %vm305_vm2, %v3715_v26 }
0x2ad6   :  { %4911 = vmatpush3.bf16.msra.mxu1 %v3672_v19  ;;  %4912 = vmatprep.mubr.msk.bf16.mxu1 %vm5062_vm1, %v5061_v2 }
0x2ad7   :  { %4924 = vmatprep.subr.bf16.mxu1 %v5061_v2 }
0x2ba0   :  { %v3660_v53 = vpop.f32.mrb[136].mxu1 }
0x2ba1   :  { %v3666_v28 = vpack.c.bf16 %v3660_v53, %v3660_v53  ;;  %v4890_v29 = vpop.f32.mrb[137].mxu1 }
0x2ba2   :  { %v3663_v30 = vpop.f32.mrb[138].mxu1 }
0x2ba3   :  { %v4891_v34 = vpop.f32.mrb[139].mxu1  ;;  %4895 = vmatmul.mubr.msk.bf16.vlgmr.msra.gmra.mrb[140].mxu0 %vm305_vm2, %v3666_v28  ;;  %v4298_v28 = vld [vmem:[%s5904_s2 + $0x1d] ss:$0 sm:$0xff] }
0x2ba4   :  { %4905 = vmatpush3.bf16.msra.mxu0 %v3781_v32  ;;  %4906 = vmatprep.mubr.msk.bf16.mxu0 %vm5062_vm1, %v5061_v2 }
0x2ba5   :  { %4916 = vmatprep.subr.bf16.mxu0 %v5061_v2 }
0x2ba8   :  { %v3757_v45 = vpop.f32.mrb[140].mxu1 }
0x2ba9   :  { %v3763_v37 = vmul.f32 0.35355338, %v3757_v45  ;;  %v4902_v38 = vpop.f32.mrb[141].mxu1 }
0x2baa   :  { %v3760_v39 = vpop.f32.mrb[142].mxu1 }
0x2bab   :  { %v4903_v31 = vpop.f32.mrb[143].mxu1  ;;  %v3764_v33 = vsel %vm305_vm2, %v3763_v37, -inf }
0x2bac   :  { %3765 = vmax.xlane.f32.xlu0 %v3764_v33 }
0x2c39   :  { %v3766_v40 = vpop.xlane.xlu0 %3765 }
0x2c3a   :  { %v3767_v41 = vsub.f32 %v3763_v37, %v3766_v40 }
0x2c3c   :  { %v3768_v44 = vmul.f32 1.442695, %v3767_v41 }
0x2c3e   :  { %5033 = vpow2.f32 %v3768_v44 }
0x2c48   :  { %v5034_v61 = vpop.eup %5033 }
0x2c49   :  { %v3770_v47 = vsel %vm305_vm2, %v5034_v61, 0.0 }
0x2c4a   :  { %3771 = vadd.xlane.f32.xlu1 %v3770_v47 }
0x2c76   :  { %v3708_v13 = vpop.f32.mrb[140].mxu0 }
0x2c77   :  { %v3714_v48 = vadd.f32 %v3708_v13, %v5732_v14  ;;  %v4896_v49 = vpop.f32.mrb[141].mxu0  ;;  %v3878_v14 = vld [vmem:[%s5903_s1 + $0x148] sm:$0xff] }
0x2c78   :  { %v3711_v51 = vpop.f32.mrb[142].mxu0  ;;  %v3882_v58 = vpack.c.bf16 %v3878_v14, %v3877_v50 }
0x2c79   :  { %v4897_v52 = vpop.f32.mrb[143].mxu0  ;;  %v3873_v17 = vadd.f32 %v4295_v16, %v3714_v48 }
0x2c7a   :  { %v3893_v59 = vsel %vm30_vm0, %v3882_v58, 0 }
0x2c7b   :  { %v3875_v24 = vadd.f32 %v3873_v17, %v5498_v63 }
0x2cd7   :  { %v3772_v0 = vpop.xlane.xlu1 %3771 }
0x2cd8   :  { %5035 = vrcp.f32 %v3772_v0 }
0x2ce2   :  { %v5036_v55 = vpop.eup %5035 }
0x2ce3   :  { %v3774_v56 = vmul.f32 %v5036_v55, %v5034_v61 }
0x2ce5   :  { %v3775_v57 = vpack.c.bf16 %v3774_v56, %v3774_v56 }
0x2ce7   :  { %4907 = vmatmul.mubr.msk.bf16.vlgmr.msra.gmra.mrb[144].mxu0 %vm305_vm2, %v3775_v57 }
0x2ce8   :  { %4920 = vmatprep.mubr.msk.bf16.mxu0 %vm5062_vm1, %v5061_v2  ;;  %4917 = vmatpush3.bf16.xpose.msra.mxu0 %v3893_v59 }
0x2ce9   :  { %4918 = vmatprep.subr.bf16.mxu0 %v5061_v2 }
0x2cf0   :  { %4919 = vmatpush3.bf16.xpose.msra.mxu0 %v3896_v12 }
0x2cf1   :  { %4932 = vmatprep.subr.bf16.mxu0 %v5061_v2 }
0x2dba   :  { %v3817_v43 = vpop.f32.mrb[144].mxu0 }
0x2dbb   :  { %v3823_v36 = vpack.c.bf16 %v3817_v43, %v3817_v43  ;;  %v4908_v3 = vpop.f32.mrb[145].mxu0 }
0x2dbc   :  { %v3820_v11 = vpop.f32.mrb[146].mxu0 }
0x2dbd   :  { %v4909_v5 = vpop.f32.mrb[147].mxu0  ;;  %4913 = vmatmul.mubr.msk.bf16.vlgmr.msra.gmra.mrb[144].mxu1 %vm305_vm2, %v3823_v36 }
0x2dbe   :  { %4925 = vmatpush3.bf16.xpose.msra.mxu1 %v3951_v4  ;;  %4928 = vmatprep.mubr.msk.bf16.mxu1 %vm5062_vm1, %v5061_v2 }
0x2dbf   :  { %4926 = vmatprep.subr.bf16.mxu1 %v5061_v2 }
0x2dc6   :  { %4927 = vmatpush3.bf16.xpose.msra.mxu1 %v3954_v15 }
0x2dc7   :  { %4944 = vmatprep.subr.bf16.mxu1 %v5061_v2 }
0x2e90   :  { %v3861_v1 = vpop.f32.mrb[144].mxu1 }
0x2e91   :  { %v3867_v18 = vadd.f32 %v3861_v1, %v5780_v54  ;;  %v4914_v19 = vpop.f32.mrb[145].mxu1  ;;  %v4296_v54 = vld [vmem:[%s5904_s2 + $0x1c] ss:$0 sm:$0xff]  ;;  %s5063_s2 = smov [#allocation2]  }
0x2e92   :  { %v3864_v20 = vpop.f32.mrb[146].mxu1  ;;  %s4183_s30 = sshll.u32 %s5063_s2, 4  ;;  %s4184_s30 = int_to_ptr.vmem [resolvable:$true] %s4183_s30 }
0x2e93   :  { %v3874_v21 = vadd.f32 %v4295_v16, %v3867_v18  ;;  %v4915_v23 = vpop.f32.mrb[147].mxu1  ;;  %s5037_s4 = scalar_lea.vmem %s4184_s30, 256  ;;  %p5042_p1 = scmp.lt.s32.totalorder %s4184_s30, %s4184_s30 }
0x2e94   :  { %p5038_p0 = scmp.ne.s32.totalorder %s4184_s30, %s5037_s4  ;;  %p5043_p2 = scmp.lt.s32.totalorder %s5037_s4, %s5037_s4 }
0x2e95   :  { %v3876_v22 = vadd.f32 %v3874_v21, %v5501_v46 }
0x2e96   :  { %p5044_p3 = por %p5043_p2, %p5042_p1 }
0x2e97   :  { %v3881_v25 = vpack.c.bf16 %v3876_v22, %v3875_v24 }
0x2e98   :  { %p5045_p4 = pnand %p5044_p3, %p5038_p0 }
0x2e99   :  { %4921 = vmatmul.mubr.msk.bf16.vlgmr.msra.gmra.mrb[148].mxu0 %vm30_vm0, %v3881_v25  ;;  %4929 = vmatmul.mubr.msk.bf16.vlgmr.msra.gmra.mrb[148].mxu1 %vm30_vm0, %v3881_v25 }
0x2e9a   :  { %4934 = vmatprep.mubr.msk.bf16.mxu0 %vm5062_vm1, %v5061_v2  ;;  %4946 = vmatprep.mubr.msk.bf16.mxu1 %vm5062_vm1, %v5061_v2 }
0x2f6c   :  { %v3932_v26 = vpop.f32.mrb[148].mxu0  ;;  %v3990_v27 = vpop.f32.mrb[148].mxu1 }
0x2f6d   :  { %v3933_v63 = vadd.f32 %v4296_v54, %v3932_v26  ;;  %v4922_v53 = vpop.f32.mrb[149].mxu0  ;;  %v4930_v46 = vpop.f32.mrb[149].mxu1  ;;  %v3991_v39 = vadd.f32 %v4298_v28, %v3990_v27 }
0x2f6e   :  { %v3935_v29 = vpop.f32.mrb[150].mxu0  ;;  %v3993_v30 = vpop.f32.mrb[150].mxu1 }
0x2f6f   :  { %v3997_v32 = vpack.c.bf16 %v3933_v63, %v3933_v63  ;;  %v3936_v34 = vadd.f32 %v4296_v54, %v3935_v29  ;;  %v4923_v45 = vpop.f32.mrb[151].mxu0  ;;  %v4931_v37 = vpop.f32.mrb[151].mxu1  ;;  %v3994_v40 = vadd.f32 %v4298_v28, %v3993_v30  ;;  %v3998_v41 = vpack.c.bf16 %v3991_v39, %v3991_v39 }
0x2f71   :  { %v4003_v38 = vsel %vm30_vm0, %v3997_v32, 0  ;;  %v4087_v31 = vpack.c.bf16 %v3936_v34, %v3936_v34  ;;  %v4088_v44 = vpack.c.bf16 %v3994_v40, %v3994_v40  ;;  %v4000_v61 = vsel %vm30_vm0, %v3998_v41, 0 }
0x2f72   :  { %4933 = vmatpush3.bf16.xpose.msra.mxu0 %v4003_v38 }
0x2f73   :  { %v4093_v33 = vsel %vm30_vm0, %v4087_v31, 0  ;;  %4938 = vmatprep.subr.bf16.mxu0 %v5061_v2  ;;  %v4090_v47 = vsel %vm30_vm0, %v4088_v44, 0 }
0x2f74   :  { %4945 = vmatpush3.bf16.xpose.msra.mxu1 %v4093_v33 }
0x2f75   :  { %4950 = vmatprep.subr.bf16.mxu1 %v5061_v2 }
0x2f79   :  { %4935 = vmatmul.mubr.msk.bf16.vlgmr.msra.gmra.mrb[152].mxu0 %vm30_vm0, %v3998_v41 }
0x2f7a   :  { %4939 = vmatpush3.bf16.xpose.msra.mxu0 %v4000_v61  ;;  %4940 = vmatprep.mubr.msk.bf16.mxu0 %vm5062_vm1, %v5061_v2 }
0x2f7b   :  { %4947 = vmatmul.mubr.msk.bf16.vlgmr.msra.gmra.mrb[152].mxu1 %vm30_vm0, %v4088_v44 }
0x2f7c   :  { %4951 = vmatpush3.bf16.xpose.msra.mxu1 %v4090_v47  ;;  %4952 = vmatprep.mubr.msk.bf16.mxu1 %vm5062_vm1, %v5061_v2 }
0x2f85   :  { %4941 = vmatmul.mubr.msk.bf16.vlgmr.msra.gmra.mrb[152].mxu0 %vm30_vm0, %v3997_v32 }
0x2f87   :  { %4953 = vmatmul.mubr.msk.bf16.vlgmr.msra.gmra.mrb[152].mxu1 %vm30_vm0, %v4087_v31 }
0x3058   :  { %v4079_v13 = vpop.f32.mrb[152].mxu0 }
0x3059   :  { %v4085_v48 = vmul.f32 0.088388346, %v4079_v13  ;;  %v4942_v49 = vpop.f32.mrb[153].mxu0 }
0x305a   :  { %v4082_v51 = vpop.f32.mrb[154].mxu0  ;;  %v4169_v52 = vpop.f32.mrb[152].mxu1 }
0x305b   :  { %4086 = vst.msk [vmem:[#allocation2] sm:$0xff] %vm305_vm2, %v4085_v48  ;;  %v4175_v0 = vmul.f32 0.088388346, %v4169_v52  ;;  %v4943_v55 = vpop.f32.mrb[155].mxu0  ;;  %v4954_v56 = vpop.f32.mrb[153].mxu1 }
0x305c   :  { %v4172_v57 = vpop.f32.mrb[154].mxu1 }
0x305d   :  { %4177 = vst.msk [vmem:[#allocation2 + $0x8] sm:$0xff] %vm305_vm2, %v4175_v0  ;;  %v4955_v2 = vpop.f32.mrb[155].mxu1 }
0x305e   :  { %5048 = shalt.err (!%p5045_p4)
}
0x305f   :  { %s5049_s7 = scalar_lea.hbm %s5905_s3, 256 }
0x3060   :  { %p5050_p5 = scmp.ne.s32.totalorder %s5905_s3, %s5049_s7  ;;  %p5053_p6 = scmp.lt.u32.totalorder %s5049_s7, %s5905_s3 }
0x3062   :  { %p5055_p7 = pnand %p5053_p6, %p5050_p5 }
0x3064   :  { %5058 = shalt.err (!%p5055_p7)
}
0x3065   :  { %s5064_s12 = smov 128   ;;  %s5065_s13 = smov 8  }
0x3066   :  { %4189 = dma.vmem_to_hbm [thread:$0]  %s4184_s30, 256, %s5905_s3, [#allocation3], %s5064_s12, %s5064_s12, %s5065_s13  }
0x3067   :  { %5059 = dma.done.wait [#allocation3], 256  }
0x3068   :  { %5060 = vsyncadd [#allocation3], 4294967040 }
0x3069   :  { %4193 = vsyncpa [#allocation3], 1 }

</bundles_post_ra>
